<compile_context>
chip_gen: v6e
topology: v6e:2x2x1
jax: 0.10.0
libtpu: 0.0.40
codegen_flags: <defaults>
</compile_context>

<pallas_src>
import functools

import jax
import jax.numpy as jnp
from jax.experimental import pallas as pl
from jax.experimental.pallas import tpu as pltpu

LANE = 128
SUBLANE = 8


def _round_up(x, m):
    return (x + m - 1) // m * m


# ---------------------------------------------------------------------------
# Kernel: one group of Bt fused sessions per grid step.
# ---------------------------------------------------------------------------
def srgnn_cell_kernel(h_ref, a_in_ref, a_out_ref,
                      w_h5_ref, b_h5_ref,
                      w_ih_a_ref, w_ih_b_ref, b_ih_ref,
                      out_ref):
    D = h_ref.shape[-1]                       # lane-padded feature dim (multiple of 128)
    wdt = w_h5_ref.dtype                      # matmul operand dtype (f32 or bf16)
    h = h_ref[0]                              # [M, D], M = Bt*Np fused session rows

    # One fused wide matmul for every h-projection:
    #   column stripes = [ x_in | x_out | h_r | h_i | h_n ], each 128-lane aligned.
    hx = jnp.dot(h.astype(wdt), w_h5_ref[...],
                 preferred_element_type=jnp.float32) + b_h5_ref[...]
    x_in = hx[:, 0 * D:1 * D]
    x_out = hx[:, 1 * D:2 * D]
    h_r = hx[:, 2 * D:3 * D]
    h_i = hx[:, 3 * D:4 * D]
    h_n = hx[:, 4 * D:5 * D]

    # Mean aggregation over incoming / reversed edges: block-diagonal normalized
    # adjacency matmul — one full-tile MXU op per direction.
    msg_in = jnp.dot(a_in_ref[0], x_in.astype(wdt), preferred_element_type=jnp.float32)
    msg_out = jnp.dot(a_out_ref[0], x_out.astype(wdt), preferred_element_type=jnp.float32)

    # gi = [msg_in | msg_out] @ W_ih^T + b_ih with the concat folded into two matmuls
    # against pre-split, gate-major halves of W_ih.
    gi = (jnp.dot(msg_in.astype(wdt), w_ih_a_ref[...], preferred_element_type=jnp.float32)
          + jnp.dot(msg_out.astype(wdt), w_ih_b_ref[...], preferred_element_type=jnp.float32)
          + b_ih_ref[...])
    i_r = gi[:, 0 * D:1 * D]
    i_i = gi[:, 1 * D:2 * D]
    i_n = gi[:, 2 * D:3 * D]

    # Gate math stays in f32 (v5e VPU/EUP have no bf16 path).
    reset_gate = jax.nn.sigmoid(i_r + h_r)
    input_gate = jax.nn.sigmoid(i_i + h_i)
    new_gate = jnp.tanh(i_n + reset_gate * h_n)

    out_ref[0] = (1.0 - input_gate) * h + input_gate * new_gate


# ---------------------------------------------------------------------------
# Glue: weight packing + scatter-free block-diagonal adjacency construction.
# ---------------------------------------------------------------------------
def _pack_weights(params, d, D, wdt):
    """Pre-transpose, gate-split and lane-pad all weights (torch Linear: y = x @ W^T + b)."""
    def pad_block(w_t):                       # [d, d] -> [D, D] zero-padded
        return jnp.zeros((D, D), jnp.float32).at[:d, :d].set(w_t)

    def pad_bias(b):                          # [d] -> [D]
        return jnp.zeros((D,), jnp.float32).at[:d].set(b)

    w_hh, w_ih = params["w_hh"], params["w_ih"]            # [3d, d], [3d, 2d]

    # Fused h-projection weight: column stripes = [x_in | x_out | h_r | h_i | h_n].
    w_h5 = jnp.concatenate(
        [pad_block(params["w_in"].T), pad_block(params["w_out"].T),
         pad_block(w_hh[0:d].T), pad_block(w_hh[d:2 * d].T), pad_block(w_hh[2 * d:].T)],
        axis=1).astype(wdt)                                  # [D, 5D]
    b_h5 = jnp.concatenate(
        [pad_bias(params["b_in"]), pad_bias(params["b_out"]),
         pad_bias(params["b_hh"][0:d]), pad_bias(params["b_hh"][d:2 * d]),
         pad_bias(params["b_hh"][2 * d:])])[None, :]         # [1, 5D]  (f32)

    # W_ih split into msg_in / msg_out halves (removes the concat), gate-major stripes.
    w_ih_a = jnp.concatenate(
        [pad_block(w_ih[g * d:(g + 1) * d, :d].T) for g in range(3)], axis=1).astype(wdt)
    w_ih_b = jnp.concatenate(
        [pad_block(w_ih[g * d:(g + 1) * d, d:].T) for g in range(3)], axis=1).astype(wdt)
    b_ih3 = jnp.concatenate(
        [pad_bias(params["b_ih"][g * d:(g + 1) * d]) for g in range(3)])[None, :]  # [1, 3D]

    return w_h5, b_h5, w_ih_a, w_ih_b, b_ih3


@functools.partial(jax.jit, static_argnames=("num_nodes", "use_bf16", "rows_target"))
def srgnn_cell(hidden, edge_index, params, num_nodes, *, use_bf16=False, rows_target=256):
    """Batched SRGNNCell forward.

    hidden:     [B, num_nodes, d]  float32
    edge_index: [B, 2, E]          int32   (one session graph per batch element)
    """
    B, _, d = hidden.shape
    E = edge_index.shape[-1]
    D = _round_up(d, LANE)
    Np = _round_up(num_nodes, SUBLANE)

    # Sessions fused per grid step: fill ~rows_target MXU rows (256 fills v6e/v7x, >=128
    # fills v5e), but keep at least 2 grid steps so both v7x TensorCores get work.
    Bt = max(1, min(max(1, rows_target // Np), pl.cdiv(B, 2)))
    G = pl.cdiv(B, Bt)                        # grid length
    Bp = G * Bt                               # batch padded to a multiple of Bt
    M = Bt * Np                               # fused node rows per grid step

    wdt = jnp.bfloat16 if use_bf16 else jnp.float32

    # --- pack hidden: [B, N, d] -> [G, M, D] (zero-padded; padded rows are sliced off) ---
    hidden_p = jnp.zeros((Bp, Np, D), jnp.float32).at[:B, :num_nodes, :d].set(hidden)
    hidden_p = hidden_p.reshape(G, M, D)

    # --- block-diagonal, row-normalized adjacencies, built without any scatter:
    #     counts = one_hot(dst)^T @ one_hot(src) per group (MXU-friendly matmul). ---------
    ei = jnp.zeros((Bp, 2, E), jnp.int32).at[:B].set(edge_index)
    offs = (jnp.arange(Bp, dtype=jnp.int32) % Bt) * Np        # node offset of session in group
    src = (ei[:, 0] + offs[:, None]).reshape(G, Bt * E)
    dst = (ei[:, 1] + offs[:, None]).reshape(G, Bt * E)
    node_ids = jnp.arange(M, dtype=jnp.int32)
    src_oh = (src[:, :, None] == node_ids).astype(jnp.float32)   # [G, Bt*E, M]
    dst_oh = (dst[:, :, None] == node_ids).astype(jnp.float32)   # [G, Bt*E, M]

    def _norm(counts):                         # A[row, col] = count / in_deg(row)
        deg = jnp.sum(counts, axis=-1, keepdims=True)
        return counts / jnp.maximum(deg, 1.0)

    a_in = _norm(jnp.einsum("ged,ges->gds", dst_oh, src_oh)).astype(wdt)   # incoming edges
    a_out = _norm(jnp.einsum("ged,ges->gds", src_oh, dst_oh)).astype(wdt)  # reversed edges

    w_h5, b_h5, w_ih_a, w_ih_b, b_ih3 = _pack_weights(params, d, D, wdt)

    per_group = lambda shape: pl.BlockSpec((1,) + shape, lambda g: (g, 0, 0))
    shared = lambda shape: pl.BlockSpec(shape, lambda g: (0, 0))

    out_p = pl.pallas_call(
        srgnn_cell_kernel,
        out_shape=jax.ShapeDtypeStruct((G, M, D), jnp.float32),
        grid=(G,),
        in_specs=[
            per_group((M, D)),                # packed hidden
            per_group((M, M)),                # block-diag A_in
            per_group((M, M)),                # block-diag A_out
            shared((D, 5 * D)),               # fused h-projection weights
            shared((1, 5 * D)),               # fused h-projection biases
            shared((D, 3 * D)),               # w_ih, msg_in half (gate-major)
            shared((D, 3 * D)),               # w_ih, msg_out half (gate-major)
            shared((1, 3 * D)),               # b_ih (gate-major)
        ],
        out_specs=per_group((M, D)),
        input_output_aliases={0: 0},          # reuse packed-hidden HBM buffer for output
        compiler_params=pltpu.CompilerParams(
            dimension_semantics=("parallel",),
            vmem_limit_bytes=32 * 1024 * 1024,
        ),
    )(hidden_p, a_in, a_out, w_h5, b_h5, w_ih_a, w_ih_b, b_ih3)

    return out_p.reshape(Bp, Np, D)[:B, :num_nodes, :d]


# ---------------------------------------------------------------------------
# Pure-JAX reference of the PyTorch forward (single session), for verification.
# ---------------------------------------------------------------------------
def _reference_single(hidden, edge_index, params, num_nodes):
    hi = jax.lax.Precision.HIGHEST

    def mean_adj(ei):
        s, t = ei[0], ei[1]
        a = jnp.zeros((num_nodes, num_nodes), jnp.float32).at[t, s].add(1.0)
        deg = jnp.sum(a, axis=1, keepdims=True)
        return a / jnp.maximum(deg, 1.0)

    a_in = mean_adj(edge_index)
    a_out = mean_adj(jnp.flip(edge_index, axis=0))
    msg_in = jnp.dot(a_in, jnp.dot(hidden, params["w_in"].T, precision=hi) + params["b_in"],
                     precision=hi)
    msg_out = jnp.dot(a_out, jnp.dot(hidden, params["w_out"].T, precision=hi) + params["b_out"],
                      precision=hi)
    inputs = jnp.concatenate([msg_in, msg_out], axis=-1)
    gi = jnp.dot(inputs, params["w_ih"].T, precision=hi) + params["b_ih"]
    gh = jnp.dot(hidden, params["w_hh"].T, precision=hi) + params["b_hh"]
    d = hidden.shape[-1]
    i_r, i_i, i_n = gi[:, :d], gi[:, d:2 * d], gi[:, 2 * d:]
    h_r, h_i, h_n = gh[:, :d], gh[:, d:2 * d], gh[:, 2 * d:]
    reset_gate = jax.nn.sigmoid(i_r + h_r)
    input_gate = jax.nn.sigmoid(i_i + h_i)
    new_gate = jnp.tanh(i_n + reset_gate * h_n)
    return (1.0 - input_gate) * hidden + input_gate * new_gate


def init_params(key, dim):
    stdv = 1.0 / jnp.sqrt(jnp.float32(dim))
    ks = jax.random.split(key, 8)
    u = lambda k, shape: jax.random.uniform(k, shape, jnp.float32, -stdv, stdv)
    return {
        "w_in": u(ks[0], (dim, dim)), "b_in": u(ks[1], (dim,)),
        "w_out": u(ks[2], (dim, dim)), "b_out": u(ks[3], (dim,)),
        "w_ih": u(ks[4], (3 * dim, 2 * dim)), "b_ih": u(ks[5], (3 * dim,)),
        "w_hh": u(ks[6], (dim * 3, dim)), "b_hh": u(ks[7], (3 * dim,)),
    }


if __name__ == "__main__":
    batch, num_nodes, dim, num_edges = 32, 16, 32, 24
    key = jax.random.PRNGKey(0)
    k_h, k_e, k_p = jax.random.split(key, 3)

    hidden = jax.random.normal(k_h, (batch, num_nodes, dim), jnp.float32)
    edge_index = jax.random.randint(k_e, (batch, 2, num_edges), 0, num_nodes, jnp.int32)
    params = init_params(k_p, dim)

    ref = jax.vmap(lambda h, e: _reference_single(h, e, params, num_nodes))(hidden, edge_index)

    # f32-weight path (default): tight tolerance vs HIGHEST-precision reference.
    out = jax.block_until_ready(srgnn_cell(hidden, edge_index, params, num_nodes))
    assert out.shape == (batch, num_nodes, dim)
    assert jnp.allclose(out, ref, atol=1e-4, rtol=1e-4), "f32 kernel mismatch vs reference"

    # bf16-weight path: MXU-native operands, f32 accumulation; looser tolerance.
    out_bf16 = jax.block_until_ready(
        srgnn_cell(hidden, edge_index, params, num_nodes, use_bf16=True))
    assert jnp.allclose(out_bf16, ref, atol=3e-2, rtol=3e-2), "bf16 kernel mismatch vs reference"

    print("KERNEL_OK")
</pallas_src>

<mosaic_0001>
module attributes {stable_mosaic.version = 11 : i64} {
  func.func @srgnn_cell_kernel(%arg0: i32, %arg1: memref<1x256x128xf32, #tpu.memory_space<vmem>>, %arg2: memref<1x256x256xf32, #tpu.memory_space<vmem>>, %arg3: memref<1x256x256xf32, #tpu.memory_space<vmem>>, %arg4: memref<128x640xf32, #tpu.memory_space<vmem>>, %arg5: memref<1x640xf32, #tpu.memory_space<vmem>>, %arg6: memref<128x384xf32, #tpu.memory_space<vmem>>, %arg7: memref<128x384xf32, #tpu.memory_space<vmem>>, %arg8: memref<1x384xf32, #tpu.memory_space<vmem>>, %arg9: memref<1x256x128xf32, #tpu.memory_space<vmem>>) attributes {dimension_semantics = [#tpu.dimension_semantics<parallel>], iteration_bounds = array<i64: 2>, scalar_prefetch = 0 : i64, scratch_operands = 0 : i64, tpu.core_type = #tpu.core_type<tc>, window_params = [{transform_indices = @transform_0, window_bounds = array<i64: 1, 256, 128>}, {transform_indices = @transform_1, window_bounds = array<i64: 1, 256, 256>}, {transform_indices = @transform_2, window_bounds = array<i64: 1, 256, 256>}, {pipeline_mode = #tpu.pipeline_mode<synchronous>, transform_indices = @transform_3, window_bounds = array<i64: 128, 640>}, {pipeline_mode = #tpu.pipeline_mode<synchronous>, transform_indices = @transform_4, window_bounds = array<i64: 1, 640>}, {pipeline_mode = #tpu.pipeline_mode<synchronous>, transform_indices = @transform_5, window_bounds = array<i64: 128, 384>}, {pipeline_mode = #tpu.pipeline_mode<synchronous>, transform_indices = @transform_6, window_bounds = array<i64: 128, 384>}, {pipeline_mode = #tpu.pipeline_mode<synchronous>, transform_indices = @transform_7, window_bounds = array<i64: 1, 384>}, {transform_indices = @transform_8, window_bounds = array<i64: 1, 256, 128>}]} {
    %c0 = arith.constant 0 : index
    %c0_0 = arith.constant 0 : index
    %c0_1 = arith.constant 0 : index
    %0 = vector.load %arg1[%c0, %c0_0, %c0_1] : memref<1x256x128xf32, #tpu.memory_space<vmem>>, vector<1x256x128xf32>
    %1 = vector.shape_cast %0 : vector<1x256x128xf32> to vector<256x128xf32>
    %c0_2 = arith.constant 0 : index
    %c0_3 = arith.constant 0 : index
    %2 = vector.load %arg4[%c0_2, %c0_3] : memref<128x640xf32, #tpu.memory_space<vmem>>, vector<128x640xf32>
    %cst = arith.constant dense<0.000000e+00> : vector<256x640xf32>
    %3 = tpu.matmul %1, %2, %cst {dimension_numbers = #tpu.dot_dimension_numbers<[1], [0], [0], [1], [0, 0, 1, 1], [], []>} : vector<256x128xf32>, vector<128x640xf32>, vector<256x640xf32> -> vector<256x640xf32>
    %c0_4 = arith.constant 0 : index
    %c0_5 = arith.constant 0 : index
    %4 = vector.load %arg5[%c0_4, %c0_5] : memref<1x640xf32, #tpu.memory_space<vmem>>, vector<1x640xf32>
    %5 = vector.broadcast %4 : vector<1x640xf32> to vector<256x640xf32>
    %6 = arith.addf %3, %5 : vector<256x640xf32>
    %7 = vector.extract_strided_slice %6 {offsets = [0, 0], sizes = [256, 128], strides = [1, 1]} : vector<256x640xf32> to vector<256x128xf32>
    %8 = vector.extract_strided_slice %6 {offsets = [0, 128], sizes = [256, 128], strides = [1, 1]} : vector<256x640xf32> to vector<256x128xf32>
    %9 = vector.extract_strided_slice %6 {offsets = [0, 256], sizes = [256, 128], strides = [1, 1]} : vector<256x640xf32> to vector<256x128xf32>
    %10 = vector.extract_strided_slice %6 {offsets = [0, 384], sizes = [256, 128], strides = [1, 1]} : vector<256x640xf32> to vector<256x128xf32>
    %11 = vector.extract_strided_slice %6 {offsets = [0, 512], sizes = [256, 128], strides = [1, 1]} : vector<256x640xf32> to vector<256x128xf32>
    %c0_6 = arith.constant 0 : index
    %c0_7 = arith.constant 0 : index
    %c0_8 = arith.constant 0 : index
    %12 = vector.load %arg2[%c0_6, %c0_7, %c0_8] : memref<1x256x256xf32, #tpu.memory_space<vmem>>, vector<1x256x256xf32>
    %13 = vector.shape_cast %12 : vector<1x256x256xf32> to vector<256x256xf32>
    %cst_9 = arith.constant dense<0.000000e+00> : vector<256x128xf32>
    %14 = tpu.matmul %13, %7, %cst_9 {dimension_numbers = #tpu.dot_dimension_numbers<[1], [0], [0], [1], [0, 0, 1, 1], [], []>} : vector<256x256xf32>, vector<256x128xf32>, vector<256x128xf32> -> vector<256x128xf32>
    %c0_10 = arith.constant 0 : index
    %c0_11 = arith.constant 0 : index
    %c0_12 = arith.constant 0 : index
    %15 = vector.load %arg3[%c0_10, %c0_11, %c0_12] : memref<1x256x256xf32, #tpu.memory_space<vmem>>, vector<1x256x256xf32>
    %16 = vector.shape_cast %15 : vector<1x256x256xf32> to vector<256x256xf32>
    %cst_13 = arith.constant dense<0.000000e+00> : vector<256x128xf32>
    %17 = tpu.matmul %16, %8, %cst_13 {dimension_numbers = #tpu.dot_dimension_numbers<[1], [0], [0], [1], [0, 0, 1, 1], [], []>} : vector<256x256xf32>, vector<256x128xf32>, vector<256x128xf32> -> vector<256x128xf32>
    %c0_14 = arith.constant 0 : index
    %c0_15 = arith.constant 0 : index
    %18 = vector.load %arg6[%c0_14, %c0_15] : memref<128x384xf32, #tpu.memory_space<vmem>>, vector<128x384xf32>
    %cst_16 = arith.constant dense<0.000000e+00> : vector<256x384xf32>
    %19 = tpu.matmul %14, %18, %cst_16 {dimension_numbers = #tpu.dot_dimension_numbers<[1], [0], [0], [1], [0, 0, 1, 1], [], []>} : vector<256x128xf32>, vector<128x384xf32>, vector<256x384xf32> -> vector<256x384xf32>
    %c0_17 = arith.constant 0 : index
    %c0_18 = arith.constant 0 : index
    %20 = vector.load %arg7[%c0_17, %c0_18] : memref<128x384xf32, #tpu.memory_space<vmem>>, vector<128x384xf32>
    %cst_19 = arith.constant dense<0.000000e+00> : vector<256x384xf32>
    %21 = tpu.matmul %17, %20, %cst_19 {dimension_numbers = #tpu.dot_dimension_numbers<[1], [0], [0], [1], [0, 0, 1, 1], [], []>} : vector<256x128xf32>, vector<128x384xf32>, vector<256x384xf32> -> vector<256x384xf32>
    %22 = arith.addf %19, %21 : vector<256x384xf32>
    %c0_20 = arith.constant 0 : index
    %c0_21 = arith.constant 0 : index
    %23 = vector.load %arg8[%c0_20, %c0_21] : memref<1x384xf32, #tpu.memory_space<vmem>>, vector<1x384xf32>
    %24 = vector.broadcast %23 : vector<1x384xf32> to vector<256x384xf32>
    %25 = arith.addf %22, %24 : vector<256x384xf32>
    %26 = vector.extract_strided_slice %25 {offsets = [0, 0], sizes = [256, 128], strides = [1, 1]} : vector<256x384xf32> to vector<256x128xf32>
    %27 = vector.extract_strided_slice %25 {offsets = [0, 128], sizes = [256, 128], strides = [1, 1]} : vector<256x384xf32> to vector<256x128xf32>
    %28 = vector.extract_strided_slice %25 {offsets = [0, 256], sizes = [256, 128], strides = [1, 1]} : vector<256x384xf32> to vector<256x128xf32>
    %29 = arith.addf %26, %9 : vector<256x128xf32>
    %30 = arith.negf %29 : vector<256x128xf32>
    %31 = math.exp %30 : vector<256x128xf32>
    %cst_22 = arith.constant 1.000000e+00 : f32
    %32 = vector.broadcast %cst_22 : f32 to vector<256x128xf32>
    %33 = arith.addf %32, %31 : vector<256x128xf32>
    %34 = arith.divf %32, %33 : vector<256x128xf32>
    %35 = arith.addf %27, %10 : vector<256x128xf32>
    %36 = arith.negf %35 : vector<256x128xf32>
    %37 = math.exp %36 : vector<256x128xf32>
    %cst_23 = arith.constant 1.000000e+00 : f32
    %38 = vector.broadcast %cst_23 : f32 to vector<256x128xf32>
    %39 = arith.addf %38, %37 : vector<256x128xf32>
    %40 = arith.divf %38, %39 : vector<256x128xf32>
    %41 = arith.mulf %34, %11 : vector<256x128xf32>
    %42 = arith.addf %28, %41 : vector<256x128xf32>
    %43 = math.tanh %42 : vector<256x128xf32>
    %cst_24 = arith.constant 1.000000e+00 : f32
    %44 = vector.broadcast %cst_24 : f32 to vector<256x128xf32>
    %45 = arith.subf %44, %40 : vector<256x128xf32>
    %46 = arith.mulf %45, %1 : vector<256x128xf32>
    %47 = arith.mulf %40, %43 : vector<256x128xf32>
    %48 = arith.addf %46, %47 : vector<256x128xf32>
    %c0_25 = arith.constant 0 : index
    %c0_26 = arith.constant 0 : index
    %c0_27 = arith.constant 0 : index
    %49 = vector.load %arg9[%c0_25, %c0_26, %c0_27] : memref<1x256x128xf32, #tpu.memory_space<vmem>>, vector<1x256x128xf32>
    %50 = vector.shape_cast %49 : vector<1x256x128xf32> to vector<256x128xf32>
    %51 = vector.shape_cast %48 : vector<256x128xf32> to vector<1x256x128xf32>
    tpu.vector_store %arg9[%c0_25, %c0_26, %c0_27], %51 {strides = array<i32>} : memref<1x256x128xf32, #tpu.memory_space<vmem>>, vector<1x256x128xf32>,
    return
  }
  func.func @transform_0(%arg0: i32) -> (i32, i32, i32) {
    %c0_i32 = arith.constant 0 : i32
    %c0_i32_0 = arith.constant 0 : i32
    %c0_i32_1 = arith.constant 0 : i32
    return %arg0, %c0_i32, %c0_i32_0 : i32, i32, i32
  }
  func.func @transform_1(%arg0: i32) -> (i32, i32, i32) {
    %c0_i32 = arith.constant 0 : i32
    %c0_i32_0 = arith.constant 0 : i32
    %c0_i32_1 = arith.constant 0 : i32
    return %arg0, %c0_i32, %c0_i32_0 : i32, i32, i32
  }
  func.func @transform_2(%arg0: i32) -> (i32, i32, i32) {
    %c0_i32 = arith.constant 0 : i32
    %c0_i32_0 = arith.constant 0 : i32
    %c0_i32_1 = arith.constant 0 : i32
    return %arg0, %c0_i32, %c0_i32_0 : i32, i32, i32
  }
  func.func @transform_3(%arg0: i32) -> (i32, i32) {
    %c0_i32 = arith.constant 0 : i32
    %c0_i32_0 = arith.constant 0 : i32
    %c0_i32_1 = arith.constant 0 : i32
    return %c0_i32, %c0_i32_0 : i32, i32
  }
  func.func @transform_4(%arg0: i32) -> (i32, i32) {
    %c0_i32 = arith.constant 0 : i32
    %c0_i32_0 = arith.constant 0 : i32
    %c0_i32_1 = arith.constant 0 : i32
    return %c0_i32, %c0_i32_0 : i32, i32
  }
  func.func @transform_5(%arg0: i32) -> (i32, i32) {
    %c0_i32 = arith.constant 0 : i32
    %c0_i32_0 = arith.constant 0 : i32
    %c0_i32_1 = arith.constant 0 : i32
    return %c0_i32, %c0_i32_0 : i32, i32
  }
  func.func @transform_6(%arg0: i32) -> (i32, i32) {
    %c0_i32 = arith.constant 0 : i32
    %c0_i32_0 = arith.constant 0 : i32
    %c0_i32_1 = arith.constant 0 : i32
    return %c0_i32, %c0_i32_0 : i32, i32
  }
  func.func @transform_7(%arg0: i32) -> (i32, i32) {
    %c0_i32 = arith.constant 0 : i32
    %c0_i32_0 = arith.constant 0 : i32
    %c0_i32_1 = arith.constant 0 : i32
    return %c0_i32, %c0_i32_0 : i32, i32
  }
  func.func @transform_8(%arg0: i32) -> (i32, i32, i32) {
    %c0_i32 = arith.constant 0 : i32
    %c0_i32_0 = arith.constant 0 : i32
    %c0_i32_1 = arith.constant 0 : i32
    return %arg0, %c0_i32, %c0_i32_0 : i32, i32, i32
  }
}

</mosaic_0001>

<bundles_post_ra>
// kernel: custom-call
= control target key start
LH: loop header
LB: loop body
LE: loop exit
PB: predicated region body
PF: predicated region fallthrough
CT: control target
= control target key end

     0   :  { %s6_s0 = inlined_call_operand.vmem [shape: f32[640], index: 0, kind: output, shape index: {}]  }

// kernel: srgnn_cell.1
= control target key start
LH: loop header
LB: loop body
LE: loop exit
PB: predicated region body
PF: predicated region fallthrough
CT: control target
= control target key end

     0   :  { %s4643_s27 = smov 0   ;;  %s7481_s0 = inlined_call_operand.vmem [shape: f32[2,256,128], index: 0, kind: input, shape index: {}, may-alias: {0,8}]   ;;  %s7482_s1 = inlined_call_operand.vmem [shape: f32[2,256,256], index: 1, kind: input, shape index: {}]   ;;  %s7483_s2 = inlined_call_operand.vmem [shape: f32[2,256,256], index: 2, kind: input, shape index: {}]   ;;  %s7484_s3 = inlined_call_operand.vmem [shape: f32[128,640], index: 3, kind: input, shape index: {}]   ;;  %s7485_s4 = inlined_call_operand.vmem [shape: f32[1,640], index: 4, kind: input, shape index: {}]   ;;  %s7486_s5 = inlined_call_operand.vmem [shape: f32[128,384], index: 5, kind: input, shape index: {}]   ;;  %s7487_s6 = inlined_call_operand.vmem [shape: f32[128,384], index: 6, kind: input, shape index: {}]   ;;  %s7488_s7 = inlined_call_operand.vmem [shape: f32[1,384], index: 7, kind: input, shape index: {}]   ;;  %s7489_s8 = inlined_call_operand.vmem [shape: f32[2,256,128], index: 8, kind: output, shape index: {}, may-alias: {0,8}]  }
   0x1 LB: > { %s3758_s28 = sadd.s32 4294967295, %s4595_s27   ;;  %p3762_p0 = scmp.ge.s32.totalorder %s4595_s27, 1  ;;  %s4595_s27 = sphi %s4643_s27, %s18_s27  }
   0x2   : > { %p282_p1 = scmp.lt.s32.totalorder %s4595_s27, 3 }
   0x4   : > { %p283_p2 = pnand %p3762_p0, %p282_p1 }
   0x6   : > { %286 = sbr.rel (%p283_p2) target bundleno = 1109 (0x455), region = 52 }
   0xb   : > { %v454_v0 = vld [vmem:[%s7484_s3 + $0x260] sm:$0xff]  ;;  %v453_v1 = vld [vmem:[%s7484_s3 + $0x258] sm:$0xff]  ;;  %v448_v3 = vld [vmem:[%s7484_s3 + $0x230] sm:$0xff]  ;;  %v7497_v4 = vmov 0.0   ;;  %p326_p3 = scmp.lt.s32.totalorder %s3758_s28, 1 }
   0xc   : > { %v449_v2 = vld [vmem:[%s7484_s3 + $0x238] sm:$0xff]  ;;  %485 = vmatprep.subr.mxu0 %v454_v0  ;;  %549 = vmatprep.mubr.f32.mxu0 %v7497_v4  ;;  %v444_v5 = vld [vmem:[%s7484_s3 + $0x210] sm:$0xff]  ;;  %v443_v6 = vld [vmem:[%s7484_s3 + $0x208] sm:$0xff] }
   0xd   : > { %486 = vmatpush1.msra.mxu0 %v453_v1  ;;  %4225 = vmatprep.subr.mxu1 %v454_v0  ;;  %v439_v7 = vld [vmem:[%s7484_s3 + $0x1e8] sm:$0xff]  ;;  %v438_v8 = vld [vmem:[%s7484_s3 + $0x1e0] sm:$0xff]  ;;  %v433_v10 = vld [vmem:[%s7484_s3 + $0x1b8] sm:$0xff]  ;;  %s7994_s28 = smov (!%p326_p3, %s3758_s28), 1 }
   0xe   : > { %487 = vmatprep.subr.mxu0 %v449_v2  ;;  %4241 = vmatpush1.msra.mxu1 %v453_v1  ;;  %v434_v9 = vld [vmem:[%s7484_s3 + $0x1c0] sm:$0xff]  ;;  %v429_v11 = vld [vmem:[%s7484_s3 + $0x198] sm:$0xff]  ;;  %v428_v12 = vld [vmem:[%s7484_s3 + $0x190] sm:$0xff]  ;;  %s3837_s21 = sshll.u32 %s7994_s28, 8  ;;  %s3838_s22 = sshll.u32 %s7994_s28, 9 }
   0xf   : > { %488 = vmatpush1.msra.mxu0 %v448_v3  ;;  %4226 = vmatprep.subr.mxu1 %v449_v2  ;;  %v424_v13 = vld [vmem:[%s7484_s3 + $0x170] sm:$0xff]  ;;  %v423_v14 = vld [vmem:[%s7484_s3 + $0x168] sm:$0xff]  ;;  %v418_v16 = vld [vmem:[%s7484_s3 + $0x140] sm:$0xff]  ;;  %s4754_s10 = scalar_lea.vmem %s7481_s0, %s3837_s21  ;;  %s5136_s25 = scalar_lea.vmem %s7483_s2, %s3838_s22 }
  0x10   : > { %489 = vmatprep.subr.mxu0 %v444_v5  ;;  %4242 = vmatpush1.msra.mxu1 %v448_v3  ;;  %v419_v15 = vld [vmem:[%s7484_s3 + $0x148] sm:$0xff]  ;;  %v414_v17 = vld [vmem:[%s7484_s3 + $0x120] sm:$0xff]  ;;  %v413_v18 = vld [vmem:[%s7484_s3 + $0x118] sm:$0xff]  ;;  %s5242_s11 = scalar_lea.vmem %s7482_s1, %s3838_s22  ;;  %s7014_s23 = scalar_lea.vmem %s7489_s8, %s3837_s21 }
  0x11   : > { %490 = vmatpush1.msra.mxu0 %v443_v6  ;;  %4227 = vmatprep.subr.mxu1 %v444_v5  ;;  %v409_v19 = vld [vmem:[%s7484_s3 + $0xf8] sm:$0xff]  ;;  %v408_v20 = vld [vmem:[%s7484_s3 + $0xf0] sm:$0xff]  ;;  %v403_v22 = vld [vmem:[%s7484_s3 + $0xc8] sm:$0xff] }
  0x12   : > { %491 = vmatprep.subr.mxu0 %v439_v7  ;;  %4243 = vmatpush1.msra.mxu1 %v443_v6  ;;  %v404_v21 = vld [vmem:[%s7484_s3 + $0xd0] sm:$0xff]  ;;  %v399_v23 = vld [vmem:[%s7484_s3 + $0xa8] sm:$0xff]  ;;  %v398_v24 = vld [vmem:[%s7484_s3 + $0xa0] sm:$0xff] }
  0x13   : > { %492 = vmatpush1.msra.mxu0 %v438_v8  ;;  %4228 = vmatprep.subr.mxu1 %v439_v7  ;;  %v394_v25 = vld [vmem:[%s7484_s3 + $0x80] sm:$0xff]  ;;  %v393_v26 = vld [vmem:[%s7484_s3 + $0x78] sm:$0xff]  ;;  %v388_v28 = vld [vmem:[%s7484_s3 + $0x50] sm:$0xff] }
  0x14   : > { %493 = vmatprep.subr.mxu0 %v434_v9  ;;  %4244 = vmatpush1.msra.mxu1 %v438_v8  ;;  %v389_v27 = vld [vmem:[%s7484_s3 + $0x58] sm:$0xff]  ;;  %v384_v29 = vld [vmem:[%s7484_s3 + $0x30] sm:$0xff]  ;;  %v383_v30 = vld [vmem:[%s7484_s3 + $0x28] sm:$0xff] }
  0x15   : > { %494 = vmatpush1.msra.mxu0 %v433_v10  ;;  %4229 = vmatprep.subr.mxu1 %v434_v9  ;;  %v379_v31 = vld [vmem:[%s7484_s3 + $0x8] sm:$0xff]  ;;  %v378_v32 = vld [vmem:[%s7484_s3] sm:$0xff]  ;;  %v457_v35 = vld [vmem:[%s7484_s3 + $0x278] sm:$0xff] }
  0x16   : > { %495 = vmatprep.subr.mxu0 %v429_v11  ;;  %4245 = vmatpush1.msra.mxu1 %v433_v10  ;;  %v4763_v33 = vld [vmem:[%s4754_s10] sm:$0xff]  ;;  %v4774_v36 = vld [vmem:[%s4754_s10 + $0x8] sm:$0xff]  ;;  %v452_v37 = vld [vmem:[%s7484_s3 + $0x250] sm:$0xff] }
  0x17   : > { %496 = vmatpush1.msra.mxu0 %v428_v12  ;;  %4230 = vmatprep.subr.mxu1 %v429_v11  ;;  %v4766_v34 = vld [vmem:[%s4754_s10 + $0xc0] sm:$0xff]  ;;  %v4783_v38 = vld [vmem:[%s4754_s10 + $0xc8] sm:$0xff]  ;;  %v4791_v40 = vld [vmem:[%s4754_s10 + $0x10] sm:$0xff] }
  0x18   : > { %497 = vmatprep.subr.mxu0 %v424_v13  ;;  %4246 = vmatpush1.msra.mxu1 %v428_v12  ;;  %7526 = vst [vmem:[#allocation2_spill] sm:$0xff] %v4766_v34  ;;  %7527 = vst [vmem:[#allocation3_spill] sm:$0xff] %v4783_v38  ;;  %v447_v39 = vld [vmem:[%s7484_s3 + $0x228] sm:$0xff]  ;;  %v442_v41 = vld [vmem:[%s7484_s3 + $0x200] sm:$0xff] }
  0x19   : > { %498 = vmatpush1.msra.mxu0 %v423_v14  ;;  %4231 = vmatprep.subr.mxu1 %v424_v13  ;;  %7528 = vst [vmem:[#allocation4_spill] sm:$0xff] %v4791_v40  ;;  %v4799_v42 = vld [vmem:[%s4754_s10 + $0xd0] sm:$0xff]  ;;  %v437_v43 = vld [vmem:[%s7484_s3 + $0x1d8] sm:$0xff]  ;;  %v4820_v47 = vld [vmem:[%s4754_s10 + $0x20] sm:$0xff] }
  0x1a   : > { %499 = vmatprep.subr.mxu0 %v419_v15  ;;  %4247 = vmatpush1.msra.mxu1 %v423_v14  ;;  %7529 = vst [vmem:[#allocation5_spill] sm:$0xff] %v4799_v42  ;;  %v4807_v44 = vld [vmem:[%s4754_s10 + $0x18] sm:$0xff]  ;;  %v432_v45 = vld [vmem:[%s7484_s3 + $0x1b0] sm:$0xff]  ;;  %7532 = vst [vmem:[#allocation8_spill] sm:$0xff] %v4820_v47 }
  0x1b   : > { %500 = vmatpush1.msra.mxu0 %v418_v16  ;;  %4232 = vmatprep.subr.mxu1 %v419_v15  ;;  %7530 = vst [vmem:[#allocation6_spill] sm:$0xff] %v4807_v44  ;;  %v4815_v46 = vld [vmem:[%s4754_s10 + $0xd8] sm:$0xff]  ;;  %v4825_v48 = vld [vmem:[%s4754_s10 + $0xe0] sm:$0xff]  ;;  %v4830_v49 = vld [vmem:[%s4754_s10 + $0x28] sm:$0xff] }
  0x1c   : > { %501 = vmatprep.subr.mxu0 %v414_v17  ;;  %4248 = vmatpush1.msra.mxu1 %v418_v16  ;;  %7531 = vst [vmem:[#allocation7_spill] sm:$0xff] %v4815_v46  ;;  %7533 = vst [vmem:[#allocation9_spill] sm:$0xff] %v4825_v48  ;;  %v4835_v50 = vld [vmem:[%s4754_s10 + $0xe8] sm:$0xff]  ;;  %v4840_v51 = vld [vmem:[%s4754_s10 + $0x30] sm:$0xff] }
  0x1d   : > { %502 = vmatpush1.msra.mxu0 %v413_v18  ;;  %4233 = vmatprep.subr.mxu1 %v414_v17  ;;  %7534 = vst [vmem:[#allocation10_spill] sm:$0xff] %v4830_v49  ;;  %7535 = vst [vmem:[#allocation11_spill] sm:$0xff] %v4835_v50  ;;  %v4845_v52 = vld [vmem:[%s4754_s10 + $0xf0] sm:$0xff]  ;;  %v4850_v53 = vld [vmem:[%s4754_s10 + $0x38] sm:$0xff] }
  0x1e   : > { %503 = vmatprep.subr.mxu0 %v409_v19  ;;  %4249 = vmatpush1.msra.mxu1 %v413_v18  ;;  %7536 = vst [vmem:[#allocation12_spill] sm:$0xff] %v4840_v51  ;;  %7537 = vst [vmem:[#allocation13_spill] sm:$0xff] %v4845_v52  ;;  %v4855_v54 = vld [vmem:[%s4754_s10 + $0xf8] sm:$0xff]  ;;  %v4860_v55 = vld [vmem:[%s4754_s10 + $0x40] sm:$0xff] }
  0x1f   : > { %504 = vmatpush1.msra.mxu0 %v408_v20  ;;  %4234 = vmatprep.subr.mxu1 %v409_v19  ;;  %7538 = vst [vmem:[#allocation14_spill] sm:$0xff] %v4850_v53  ;;  %7539 = vst [vmem:[#allocation15_spill] sm:$0xff] %v4855_v54  ;;  %v4867_v56 = vld [vmem:[%s4754_s10 + $0x48] sm:$0xff]  ;;  %v4872_v57 = vld [vmem:[%s4754_s10 + $0x50] sm:$0xff] }
  0x20   : > { %505 = vmatprep.subr.mxu0 %v404_v21  ;;  %4250 = vmatpush1.msra.mxu1 %v408_v20  ;;  %7540 = vst [vmem:[#allocation16_spill] sm:$0xff] %v4860_v55  ;;  %7541 = vst [vmem:[#allocation17_spill] sm:$0xff] %v4867_v56  ;;  %v4877_v58 = vld [vmem:[%s4754_s10 + $0x58] sm:$0xff]  ;;  %v4882_v59 = vld [vmem:[%s4754_s10 + $0x60] sm:$0xff] }
  0x21   : > { %506 = vmatpush1.msra.mxu0 %v403_v22  ;;  %4235 = vmatprep.subr.mxu1 %v404_v21  ;;  %7542 = vst [vmem:[#allocation18_spill] sm:$0xff] %v4872_v57  ;;  %7543 = vst [vmem:[#allocation19_spill] sm:$0xff] %v4877_v58  ;;  %v4887_v60 = vld [vmem:[%s4754_s10 + $0x68] sm:$0xff]  ;;  %v4892_v61 = vld [vmem:[%s4754_s10 + $0x70] sm:$0xff] }
  0x22   : > { %507 = vmatprep.subr.mxu0 %v399_v23  ;;  %4251 = vmatpush1.msra.mxu1 %v403_v22  ;;  %7544 = vst [vmem:[#allocation20_spill] sm:$0xff] %v4882_v59  ;;  %7545 = vst [vmem:[#allocation21_spill] sm:$0xff] %v4887_v60  ;;  %v4897_v62 = vld [vmem:[%s4754_s10 + $0x78] sm:$0xff]  ;;  %v4902_v63 = vld [vmem:[%s4754_s10 + $0x80] sm:$0xff] }
  0x23   : > { %508 = vmatpush1.msra.mxu0 %v398_v24  ;;  %4236 = vmatprep.subr.mxu1 %v399_v23  ;;  %7546 = vst [vmem:[#allocation22_spill] sm:$0xff] %v4892_v61  ;;  %7547 = vst [vmem:[#allocation23_spill] sm:$0xff] %v4897_v62  ;;  %v4907_v0 = vld [vmem:[%s4754_s10 + $0x88] sm:$0xff]  ;;  %v4912_v1 = vld [vmem:[%s4754_s10 + $0x90] sm:$0xff] }
  0x24   : > { %509 = vmatprep.subr.mxu0 %v394_v25  ;;  %4252 = vmatpush1.msra.mxu1 %v398_v24  ;;  %7548 = vst [vmem:[#allocation24_spill] sm:$0xff] %v4902_v63  ;;  %7549 = vst [vmem:[#allocation25_spill] sm:$0xff] %v4907_v0  ;;  %v427_v2 = vld [vmem:[%s7484_s3 + $0x188] sm:$0xff]  ;;  %v4920_v3 = vld [vmem:[%s4754_s10 + $0x98] sm:$0xff] }
  0x25   : > { %510 = vmatpush1.msra.mxu0 %v393_v26  ;;  %4237 = vmatprep.subr.mxu1 %v394_v25  ;;  %7550 = vst [vmem:[#allocation26_spill] sm:$0xff] %v4912_v1  ;;  %7551 = vst [vmem:[#allocation27_spill] sm:$0xff] %v4920_v3  ;;  %v422_v5 = vld [vmem:[%s7484_s3 + $0x160] sm:$0xff]  ;;  %v4933_v7 = vld [vmem:[%s4754_s10 + $0xa8] sm:$0xff] }
  0x26   : > { %511 = vmatprep.subr.mxu0 %v389_v27  ;;  %4253 = vmatpush1.msra.mxu1 %v393_v26  ;;  %v4928_v6 = vld [vmem:[%s4754_s10 + $0xa0] sm:$0xff]  ;;  %7553 = vst [vmem:[#allocation29_spill] sm:$0xff] %v4933_v7  ;;  %v417_v8 = vld [vmem:[%s7484_s3 + $0x138] sm:$0xff]  ;;  %v4941_v9 = vld [vmem:[%s4754_s10 + $0xb0] sm:$0xff] }
  0x27   : > { %512 = vmatpush1.msra.mxu0 %v388_v28  ;;  %4238 = vmatprep.subr.mxu1 %v389_v27  ;;  %7552 = vst [vmem:[#allocation28_spill] sm:$0xff] %v4928_v6  ;;  %7554 = vst [vmem:[#allocation30_spill] sm:$0xff] %v4941_v9  ;;  %v412_v10 = vld [vmem:[%s7484_s3 + $0x110] sm:$0xff]  ;;  %v4949_v11 = vld [vmem:[%s4754_s10 + $0xb8] sm:$0xff] }
  0x28   : > { %513 = vmatprep.subr.mxu0 %v384_v29  ;;  %4254 = vmatpush1.msra.mxu1 %v388_v28  ;;  %7555 = vst [vmem:[#allocation31_spill] sm:$0xff] %v4949_v11  ;;  %v407_v12 = vld [vmem:[%s7484_s3 + $0xe8] sm:$0xff]  ;;  %v456_v13 = vld [vmem:[%s7484_s3 + $0x270] sm:$0xff]  ;;  %v450_v16 = vld [vmem:[%s7484_s3 + $0x240] sm:$0xff] }
  0x29   : > { %514 = vmatpush1.msra.mxu0 %v383_v30  ;;  %4239 = vmatprep.subr.mxu1 %v384_v29  ;;  %v455_v14 = vld [vmem:[%s7484_s3 + $0x268] sm:$0xff]  ;;  %v446_v17 = vld [vmem:[%s7484_s3 + $0x220] sm:$0xff]  ;;  %v445_v18 = vld [vmem:[%s7484_s3 + $0x218] sm:$0xff] }
  0x2a   : > { %515 = vmatprep.subr.mxu0 %v379_v31  ;;  %4255 = vmatpush1.msra.mxu1 %v383_v30  ;;  %v451_v15 = vld [vmem:[%s7484_s3 + $0x248] sm:$0xff]  ;;  %v402_v19 = vld [vmem:[%s7484_s3 + $0xc0] sm:$0xff]  ;;  %v441_v20 = vld [vmem:[%s7484_s3 + $0x1f8] sm:$0xff] }
  0x2b   : > { %516 = vmatpush1.msra.mxu0 %v378_v32  ;;  %4240 = vmatprep.subr.mxu1 %v379_v31  ;;  %v440_v21 = vld [vmem:[%s7484_s3 + $0x1f0] sm:$0xff]  ;;  %v435_v23 = vld [vmem:[%s7484_s3 + $0x1c8] sm:$0xff]  ;;  %v430_v25 = vld [vmem:[%s7484_s3 + $0x1a0] sm:$0xff] }
  0x2c   : > { %550 = vmatmul.mubr.f32.vlgmr.msra.gmra.mxu0 %v4763_v33  ;;  %4256 = vmatpush1.msra.mxu1 %v378_v32  ;;  %v436_v22 = vld [vmem:[%s7484_s3 + $0x1d0] sm:$0xff]  ;;  %v431_v24 = vld [vmem:[%s7484_s3 + $0x1a8] sm:$0xff]  ;;  %v397_v26 = vld [vmem:[%s7484_s3 + $0x98] sm:$0xff] }
  0x2d   : > { %555 = vmatprep.mubr.f32.mxu0 %v7497_v4  ;;  %693 = vmatprep.mubr.f32.mxu1 %v7497_v4  ;;  %v426_v27 = vld [vmem:[%s7484_s3 + $0x180] sm:$0xff]  ;;  %v425_v28 = vld [vmem:[%s7484_s3 + $0x178] sm:$0xff]  ;;  %v420_v30 = vld [vmem:[%s7484_s3 + $0x150] sm:$0xff] }
  0x2e   : > { %694 = vmatmul.mubr.f32.vlgmr.msra.gmra.mxu1 %v4766_v34  ;;  %3985 = vmatprep.subr.mxu0 %v457_v35  ;;  %v421_v29 = vld [vmem:[%s7484_s3 + $0x158] sm:$0xff]  ;;  %v416_v31 = vld [vmem:[%s7484_s3 + $0x130] sm:$0xff]  ;;  %v415_v32 = vld [vmem:[%s7484_s3 + $0x128] sm:$0xff] }
  0x2f   : > { %699 = vmatprep.mubr.f32.mxu1 %v7497_v4  ;;  %3986 = vmatpush3.msra.mxu0 %v457_v35  ;;  %v392_v35 = vld [vmem:[%s7484_s3 + $0x70] sm:$0xff] }
  0x30   : > { %556 = vmatmul.mubr.f32.gmra.mxu0 %v4774_v36  ;;  %3987 = vmatprep.subr.mxu0 %v452_v37 }
  0x31   : > { %561 = vmatprep.mubr.f32.mxu0 %v7497_v4  ;;  %3988 = vmatpush3.msra.mxu0 %v452_v37  ;;  %v411_v37 = vld [vmem:[%s7484_s3 + $0x108] sm:$0xff] }
  0x32   : > { %700 = vmatmul.mubr.f32.gmra.mxu1 %v4783_v38  ;;  %3989 = vmatprep.subr.mxu0 %v447_v39 }
  0x33   : > { %705 = vmatprep.mubr.f32.mxu1 %v7497_v4  ;;  %3990 = vmatpush3.msra.mxu0 %v447_v39  ;;  %v410_v39 = vld [vmem:[%s7484_s3 + $0x100] sm:$0xff] }
  0x34   : > { %562 = vmatmul.mubr.f32.gmra.mxu0 %v4791_v40  ;;  %3991 = vmatprep.subr.mxu0 %v442_v41 }
  0x35   : > { %567 = vmatprep.mubr.f32.mxu0 %v7497_v4  ;;  %3992 = vmatpush3.msra.mxu0 %v442_v41  ;;  %v406_v41 = vld [vmem:[%s7484_s3 + $0xe0] sm:$0xff] }
  0x36   : > { %706 = vmatmul.mubr.f32.gmra.mxu1 %v4799_v42  ;;  %3993 = vmatprep.subr.mxu0 %v437_v43 }
  0x37   : > { %711 = vmatprep.mubr.f32.mxu1 %v7497_v4  ;;  %3994 = vmatpush3.msra.mxu0 %v437_v43  ;;  %v405_v43 = vld [vmem:[%s7484_s3 + $0xd8] sm:$0xff] }
  0x38   : > { %568 = vmatmul.mubr.f32.gmra.mxu0 %v4807_v44  ;;  %3995 = vmatprep.subr.mxu0 %v432_v45 }
  0x39   : > { %573 = vmatprep.mubr.f32.mxu0 %v7497_v4  ;;  %3996 = vmatpush3.msra.mxu0 %v432_v45  ;;  %v401_v45 = vld [vmem:[%s7484_s3 + $0xb8] sm:$0xff] }
  0x3a   : > { %712 = vmatmul.mubr.f32.gmra.mxu1 %v4815_v46  ;;  %3997 = vmatprep.subr.mxu0 %v427_v2 }
  0x3b   : > { %717 = vmatprep.mubr.f32.mxu1 %v7497_v4  ;;  %3998 = vmatpush3.msra.mxu0 %v427_v2  ;;  %v400_v2 = vld [vmem:[%s7484_s3 + $0xb0] sm:$0xff] }
  0x3c   : > { %574 = vmatmul.mubr.f32.gmra.mxu0 %v4820_v47  ;;  %3999 = vmatprep.subr.mxu0 %v422_v5 }
  0x3d   : > { %579 = vmatprep.mubr.f32.mxu0 %v7497_v4  ;;  %4000 = vmatpush3.msra.mxu0 %v422_v5  ;;  %v387_v5 = vld [vmem:[%s7484_s3 + $0x48] sm:$0xff] }
  0x3e   : > { %718 = vmatmul.mubr.f32.gmra.mxu1 %v4825_v48  ;;  %4001 = vmatprep.subr.mxu0 %v417_v8 }
  0x3f   : > { %723 = vmatprep.mubr.f32.mxu1 %v7497_v4  ;;  %4002 = vmatpush3.msra.mxu0 %v417_v8  ;;  %v396_v8 = vld [vmem:[%s7484_s3 + $0x90] sm:$0xff] }
  0x40   : > { %580 = vmatmul.mubr.f32.gmra.mxu0 %v4830_v49  ;;  %4003 = vmatprep.subr.mxu0 %v412_v10 }
  0x41   : > { %585 = vmatprep.mubr.f32.mxu0 %v7497_v4  ;;  %4004 = vmatpush3.msra.mxu0 %v412_v10  ;;  %v395_v10 = vld [vmem:[%s7484_s3 + $0x88] sm:$0xff] }
  0x42   : > { %724 = vmatmul.mubr.f32.gmra.mxu1 %v4835_v50  ;;  %4005 = vmatprep.subr.mxu0 %v407_v12 }
  0x43   : > { %729 = vmatprep.mubr.f32.mxu1 %v7497_v4  ;;  %742 = vmatprep.subr.mxu1 %v456_v13  ;;  %v390_v13 = vld [vmem:[%s7484_s3 + $0x60] sm:$0xff] }
  0x44   : > { %586 = vmatmul.mubr.f32.gmra.mxu0 %v4840_v51  ;;  %743 = vmatpush1.msra.mxu1 %v455_v14  ;;  %v386_v14 = vld [vmem:[%s7484_s3 + $0x40] sm:$0xff] }
  0x45   : > { %591 = vmatprep.mubr.f32.mxu0 %v7497_v4  ;;  %4006 = vmatpush3.msra.mxu0 %v407_v12  ;;  %v391_v12 = vld [vmem:[%s7484_s3 + $0x68] sm:$0xff] }
  0x46   : > { %730 = vmatmul.mubr.f32.gmra.mxu1 %v4845_v52  ;;  %744 = vmatprep.subr.mxu1 %v451_v15  ;;  %v385_v15 = vld [vmem:[%s7484_s3 + $0x38] sm:$0xff] }
  0x47   : > { %735 = vmatprep.mubr.f32.mxu1 %v7497_v4  ;;  %745 = vmatpush1.msra.mxu1 %v450_v16  ;;  %v382_v16 = vld [vmem:[%s7484_s3 + $0x20] sm:$0xff] }
  0x48   : > { %592 = vmatmul.mubr.f32.gmra.mxu0 %v4850_v53  ;;  %746 = vmatprep.subr.mxu1 %v446_v17  ;;  %v381_v17 = vld [vmem:[%s7484_s3 + $0x18] sm:$0xff] }
  0x49   : > { %597 = vmatprep.mubr.f32.mxu0 %v7497_v4  ;;  %747 = vmatpush1.msra.mxu1 %v445_v18  ;;  %v380_v18 = vld [vmem:[%s7484_s3 + $0x10] sm:$0xff] }
  0x4a   : > { %736 = vmatmul.mubr.f32.gmra.mxu1 %v4855_v54  ;;  %4007 = vmatprep.subr.mxu0 %v402_v19 }
  0x4b   : > { %806 = vmatprep.mubr.f32.mxu1 %v7497_v4  ;;  %748 = vmatprep.subr.mxu1 %v441_v20 }
  0x4c   : > { %598 = vmatmul.mubr.f32.gmra.mxu0 %v4860_v55  ;;  %749 = vmatpush1.msra.mxu1 %v440_v21 }
  0x4d   : > { %603 = vmatprep.mubr.f32.mxu0 %v7497_v4  ;;  %4008 = vmatpush3.msra.mxu0 %v402_v19 }
  0x4e   : > { %750 = vmatprep.subr.mxu1 %v436_v22  ;;  %4009 = vmatprep.subr.mxu0 %v397_v26 }
  0x4f   : > { %751 = vmatpush1.msra.mxu1 %v435_v23  ;;  %4010 = vmatpush3.msra.mxu0 %v397_v26 }
  0x50   : > { %604 = vmatmul.mubr.f32.gmra.mxu0 %v4867_v56  ;;  %752 = vmatprep.subr.mxu1 %v431_v24 }
  0x51   : > { %609 = vmatprep.mubr.f32.mxu0 %v7497_v4  ;;  %753 = vmatpush1.msra.mxu1 %v430_v25 }
  0x52   : > { %754 = vmatprep.subr.mxu1 %v426_v27  ;;  %4011 = vmatprep.subr.mxu0 %v392_v35 }
  0x53   : > { %755 = vmatpush1.msra.mxu1 %v425_v28  ;;  %4012 = vmatpush3.msra.mxu0 %v392_v35 }
  0x54   : > { %610 = vmatmul.mubr.f32.gmra.mxu0 %v4872_v57  ;;  %756 = vmatprep.subr.mxu1 %v421_v29 }
  0x55   : > { %615 = vmatprep.mubr.f32.mxu0 %v7497_v4  ;;  %757 = vmatpush1.msra.mxu1 %v420_v30 }
  0x56   : > { %758 = vmatprep.subr.mxu1 %v416_v31  ;;  %4013 = vmatprep.subr.mxu0 %v387_v5 }
  0x57   : > { %759 = vmatpush1.msra.mxu1 %v415_v32  ;;  %4014 = vmatpush3.msra.mxu0 %v387_v5 }
  0x58   : > { %616 = vmatmul.mubr.f32.gmra.mxu0 %v4877_v58  ;;  %760 = vmatprep.subr.mxu1 %v411_v37 }
  0x59   : > { %621 = vmatprep.mubr.f32.mxu0 %v7497_v4  ;;  %761 = vmatpush1.msra.mxu1 %v410_v39 }
  0x5a   : > { %762 = vmatprep.subr.mxu1 %v406_v41  ;;  %4015 = vmatprep.subr.mxu0 %v382_v16 }
  0x5b   : > { %763 = vmatpush1.msra.mxu1 %v405_v43  ;;  %4016 = vmatpush3.msra.mxu0 %v382_v16 }
  0x5c   : > { %622 = vmatmul.mubr.f32.gmra.mxu0 %v4882_v59  ;;  %764 = vmatprep.subr.mxu1 %v401_v45 }
  0x5d   : > { %627 = vmatprep.mubr.f32.mxu0 %v7497_v4  ;;  %765 = vmatpush1.msra.mxu1 %v400_v2 }
  0x5e   : > { %766 = vmatprep.subr.mxu1 %v396_v8  ;;  %1577 = vmatprep.subr.mxu0 %v7497_v4 }
  0x5f   : > { %767 = vmatpush1.msra.mxu1 %v395_v10 }
  0x60   : > { %628 = vmatmul.mubr.f32.gmra.mxu0 %v4887_v60  ;;  %768 = vmatprep.subr.mxu1 %v391_v12 }
  0x61   : > { %633 = vmatprep.mubr.f32.mxu0 %v7497_v4  ;;  %769 = vmatpush1.msra.mxu1 %v390_v13 }
  0x62   : > { %770 = vmatprep.subr.mxu1 %v386_v14 }
  0x63   : > { %771 = vmatpush1.msra.mxu1 %v385_v15  ;;  %v460_v15 = vlaneseq }
  0x64   : > { %634 = vmatmul.mubr.f32.gmra.mxu0 %v4892_v61  ;;  %772 = vmatprep.subr.mxu1 %v381_v17 }
  0x65   : > { %639 = vmatprep.mubr.f32.mxu0 %v7497_v4  ;;  %773 = vmatpush1.msra.mxu1 %v380_v18 }
  0x66   : > { %1288 = vmatprep.subr.mxu1 %v7497_v4  ;;  %807 = vmatmul.mubr.f32.vlgmr.msra.gmra.mxu1 %v4763_v33 }
  0x67   : > { %812 = vmatprep.mubr.f32.mxu1 %v7497_v4 }
  0x68   : > { %640 = vmatmul.mubr.f32.gmra.mxu0 %v4897_v62 }
  0x69   : > { %645 = vmatprep.mubr.f32.mxu0 %v7497_v4 }
  0x6a   : > { %813 = vmatmul.mubr.f32.gmra.mxu1 %v4774_v36 }
  0x6b   : > { %818 = vmatprep.mubr.f32.mxu1 %v7497_v4 }
  0x6c   : > { %646 = vmatmul.mubr.f32.gmra.mxu0 %v4902_v63 }
  0x6d   : > { %651 = vmatprep.mubr.f32.mxu0 %v7497_v4 }
  0x6e   : > { %819 = vmatmul.mubr.f32.gmra.mxu1 %v4791_v40 }
  0x6f   : > { %824 = vmatprep.mubr.f32.mxu1 %v7497_v4 }
  0x70   : > { %652 = vmatmul.mubr.f32.gmra.mxu0 %v4907_v0 }
  0x71   : > { %657 = vmatprep.mubr.f32.mxu0 %v7497_v4 }
  0x72   : > { %825 = vmatmul.mubr.f32.gmra.mxu1 %v4807_v44 }
  0x73   : > { %830 = vmatprep.mubr.f32.mxu1 %v7497_v4 }
  0x74   : > { %658 = vmatmul.mubr.f32.gmra.mxu0 %v4912_v1 }
  0x75   : > { %663 = vmatprep.mubr.f32.mxu0 %v7497_v4 }
  0x76   : > { %831 = vmatmul.mubr.f32.gmra.mxu1 %v4820_v47 }
  0x77   : > { %836 = vmatprep.mubr.f32.mxu1 %v7497_v4 }
  0x78   : > { %664 = vmatmul.mubr.f32.gmra.mxu0 %v4920_v3 }
  0x79   : > { %669 = vmatprep.mubr.f32.mxu0 %v7497_v4 }
  0x7a   : > { %837 = vmatmul.mubr.f32.gmra.mxu1 %v4830_v49 }
  0x7b   : > { %842 = vmatprep.mubr.f32.mxu1 %v7497_v4 }
  0x7c   : > { %670 = vmatmul.mubr.f32.gmra.mxu0 %v4928_v6 }
  0x7d   : > { %675 = vmatprep.mubr.f32.mxu0 %v7497_v4 }
  0x7e   : > { %843 = vmatmul.mubr.f32.gmra.mxu1 %v4840_v51 }
  0x7f   : > { %848 = vmatprep.mubr.f32.mxu1 %v7497_v4 }
  0x80   : > { %676 = vmatmul.mubr.f32.gmra.mxu0 %v4933_v7 }
  0x81   : > { %681 = vmatprep.mubr.f32.mxu0 %v7497_v4 }
  0x82   : > { %849 = vmatmul.mubr.f32.gmra.mxu1 %v4850_v53 }
  0x83   : > { %854 = vmatprep.mubr.f32.mxu1 %v7497_v4 }
  0x84   : > { %682 = vmatmul.mubr.f32.gmra.mxu0 %v4941_v9 }
  0x85   : > { %687 = vmatprep.mubr.f32.mxu0 %v7497_v4 }
  0x86   : > { %855 = vmatmul.mubr.f32.gmra.mxu1 %v4860_v55 }
  0x87   : > { %860 = vmatprep.mubr.f32.mxu1 %v7497_v4 }
  0x88   : > { %688 = vmatmul.mubr.f32.gmra.mxu0 %v4949_v11 }
  0x89   : > { %4017 = vmatprep.mubr.f32.mxu0 %v4763_v33  ;;  %v1514_v33 = vld [vmem:[%s5136_s25 + $0x8] sm:$0xff] }
  0x8a   : > { %861 = vmatmul.mubr.f32.gmra.mxu1 %v4867_v56 }
  0x8b   : > { %866 = vmatprep.mubr.f32.mxu1 %v7497_v4 }
  0x8c   : > { %4018 = vmatmul.mubr.f32.vlgmr.msra.gmra.mxu0 %v4774_v36 }
  0x8d   : > { %4020 = vmatprep.mubr.f32.mxu0 %v4791_v40 }
  0x8e   : > { %867 = vmatmul.mubr.f32.gmra.mxu1 %v4872_v57 }
  0x8f   : > { %872 = vmatprep.mubr.f32.mxu1 %v7497_v4 }
  0x90   : > { %4021 = vmatmul.mubr.f32.gmra.mxu0 %v4807_v44 }
  0x91   : > { %4023 = vmatprep.mubr.f32.mxu0 %v4820_v47 }
  0x92   : > { %873 = vmatmul.mubr.f32.gmra.mxu1 %v4877_v58 }
  0x93   : > { %878 = vmatprep.mubr.f32.mxu1 %v7497_v4 }
  0x94   : > { %4024 = vmatmul.mubr.f32.gmra.mxu0 %v4830_v49 }
  0x95   : > { %4026 = vmatprep.mubr.f32.mxu0 %v4840_v51  ;;  %v1255_v51 = vld [vmem:[%s5242_s11 + $0xf8] sm:$0xff] }
  0x96   : > { %879 = vmatmul.mubr.f32.gmra.mxu1 %v4882_v59 }
  0x97   : > { %884 = vmatprep.mubr.f32.mxu1 %v7497_v4 }
  0x98   : > { %4027 = vmatmul.mubr.f32.gmra.mxu0 %v4850_v53 }
  0x99   : > { %4029 = vmatprep.mubr.f32.mxu0 %v4860_v55 }
  0x9a   : > { %885 = vmatmul.mubr.f32.gmra.mxu1 %v4887_v60 }
  0x9b   : > { %890 = vmatprep.mubr.f32.mxu1 %v7497_v4 }
  0x9c   : > { %4030 = vmatmul.mubr.f32.gmra.mxu0 %v4867_v56  ;;  %v1253_v56 = vld [vmem:[%s5242_s11 + $0xe8] sm:$0xff] }
  0x9d   : > { %4032 = vmatprep.mubr.f32.mxu0 %v4872_v57 }
  0x9e   : > { %891 = vmatmul.mubr.f32.gmra.mxu1 %v4892_v61 }
  0x9f   : > { %896 = vmatprep.mubr.f32.mxu1 %v7497_v4 }
  0xa0   : > { %4033 = vmatmul.mubr.f32.gmra.mxu0 %v4877_v58 }
  0xa1   : > { %4035 = vmatprep.mubr.f32.mxu0 %v4882_v59 }
  0xa2   : > { %897 = vmatmul.mubr.f32.gmra.mxu1 %v4897_v62 }
  0xa3   : > { %902 = vmatprep.mubr.f32.mxu1 %v7497_v4 }
  0xa4   : > { %4036 = vmatmul.mubr.f32.gmra.mxu0 %v4887_v60 }
  0xa5   : > { %4038 = vmatprep.mubr.f32.mxu0 %v4892_v61 }
  0xa6   : > { %903 = vmatmul.mubr.f32.gmra.mxu1 %v4902_v63 }
  0xa7   : > { %908 = vmatprep.mubr.f32.mxu1 %v7497_v4 }
  0xa8   : > { %4039 = vmatmul.mubr.f32.gmra.mxu0 %v4897_v62 }
  0xa9   : > { %4041 = vmatprep.mubr.f32.mxu0 %v4902_v63 }
  0xaa   : > { %909 = vmatmul.mubr.f32.gmra.mxu1 %v4907_v0 }
  0xab   : > { %914 = vmatprep.mubr.f32.mxu1 %v7497_v4 }
  0xac   : > { %4042 = vmatmul.mubr.f32.gmra.mxu0 %v4907_v0 }
  0xad   : > { %4044 = vmatprep.mubr.f32.mxu0 %v4912_v1 }
  0xae   : > { %915 = vmatmul.mubr.f32.gmra.mxu1 %v4912_v1 }
  0xaf   : > { %920 = vmatprep.mubr.f32.mxu1 %v7497_v4 }
  0xb0   : > { %4045 = vmatmul.mubr.f32.gmra.mxu0 %v4920_v3 }
  0xb1   : > { %4047 = vmatprep.mubr.f32.mxu0 %v4928_v6 }
  0xb2   : > { %921 = vmatmul.mubr.f32.gmra.mxu1 %v4920_v3 }
  0xb3   : > { %926 = vmatprep.mubr.f32.mxu1 %v7497_v4 }
  0xb4   : > { %4048 = vmatmul.mubr.f32.gmra.mxu0 %v4933_v7 }
  0xb5   : > { %4050 = vmatprep.mubr.f32.mxu0 %v4941_v9 }
  0xb6   : > { %927 = vmatmul.mubr.f32.gmra.mxu1 %v4928_v6  ;;  %v1225_v6 = vld [vmem:[%s5242_s11 + $0x8] sm:$0xff] }
  0xb7   : > { %932 = vmatprep.mubr.f32.mxu1 %v7497_v4 }
  0xb8   : > { %4051 = vmatmul.mubr.f32.gmra.mxu0 %v4949_v11 }
  0xb9   : > { %4053 = vmatprep.mubr.f32.mxu0 %v4766_v34 }
  0xba   : > { %933 = vmatmul.mubr.f32.gmra.mxu1 %v4933_v7 }
  0xbb   : > { %938 = vmatprep.mubr.f32.mxu1 %v7497_v4 }
  0xbc   : > { %4054 = vmatmul.mubr.f32.gmra.mxu0 %v4783_v38 }
  0xbd   : > { %4056 = vmatprep.mubr.f32.mxu0 %v4799_v42 }
  0xbe   : > { %939 = vmatmul.mubr.f32.gmra.mxu1 %v4941_v9 }
  0xbf   : > { %944 = vmatprep.mubr.f32.mxu1 %v7497_v4 }
  0xc0   : > { %4057 = vmatmul.mubr.f32.gmra.mxu0 %v4815_v46 }
  0xc1   : > { %4059 = vmatprep.mubr.f32.mxu0 %v4825_v48 }
  0xc2   : > { %945 = vmatmul.mubr.f32.gmra.mxu1 %v4949_v11 }
  0xc3   : > { %950 = vmatprep.mubr.f32.mxu1 %v7497_v4 }
  0xc4   : > { %4060 = vmatmul.mubr.f32.gmra.mxu0 %v4835_v50 }
  0xc5   : > { %4062 = vmatprep.mubr.f32.mxu0 %v4845_v52 }
  0xc6   : > { %951 = vmatmul.mubr.f32.gmra.mxu1 %v4766_v34  ;;  %v5233_v34 = vld [vmem:[%s7485_s4] sm:$0x1f] }
  0xc7   : > { %956 = vmatprep.mubr.f32.mxu1 %v7497_v4 }
  0xc8   : > { %4063 = vmatmul.mubr.f32.gmra.mxu0 %v4855_v54 }
  0xc9   : > { %1641 = vmatprep.mubr.f32.mxu0 %v1514_v33  ;;  %v5222_v33 = vshrl.u32 %v460_v15, 7 }
  0xca   : > { %957 = vmatmul.mubr.f32.gmra.mxu1 %v4783_v38 }
  0xcb   : > { %962 = vmatprep.mubr.f32.mxu1 %v7497_v4 }
  0xce   : > { %963 = vmatmul.mubr.f32.gmra.mxu1 %v4799_v42 }
  0xcf   : > { %968 = vmatprep.mubr.f32.mxu1 %v7497_v4 }
  0xd2   : > { %969 = vmatmul.mubr.f32.gmra.mxu1 %v4815_v46 }
  0xd3   : > { %974 = vmatprep.mubr.f32.mxu1 %v7497_v4 }
  0xd6   : > { %975 = vmatmul.mubr.f32.gmra.mxu1 %v4825_v48 }
  0xd7   : > { %980 = vmatprep.mubr.f32.mxu1 %v7497_v4 }
  0xda   : > { %981 = vmatmul.mubr.f32.gmra.mxu1 %v4835_v50 }
  0xdb   : > { %986 = vmatprep.mubr.f32.mxu1 %v7497_v4 }
  0xde   : > { %987 = vmatmul.mubr.f32.gmra.mxu1 %v4845_v52  ;;  %v7511_v52 = vsub.s32 1, %v5222_v33 }
  0xdf   : > { %992 = vmatprep.mubr.f32.mxu1 %v7497_v4  ;;  %v7556_v4 = vsub.s32 0, %v5222_v33 }
  0xe0   : > { %v5257_v3 = vrot.slane %v5233_v34, %v7511_v52 }
  0xe1   : > { %v5249_v11 = vrot.slane %v5233_v34, %v7556_v4  ;;  %v7557_v4 = vmov 0.0  }
  0xe2   : > { %993 = vmatmul.mubr.f32.gmra.mxu1 %v4855_v54 }
  0xe3   : > { %1352 = vmatprep.mubr.f32.mxu1 %v1225_v6 }
  0xec   : > { %v5143_v36 = vpop.f32.mrf.mxu0 }
  0xee   : > { %v5145_v19 = vpop.f32.mrf.mxu0  ;;  %v5193_v39 = vpop.f32.mrf.mxu1 }
  0xf0   : > { %v5149_v20 = vpop.f32.mrf.mxu0  ;;  %v5201_v45 = vpop.f32.mrf.mxu1 }
  0xf2   : > { %v5151_v21 = vpop.f32.mrf.mxu0  ;;  %v5209_v8 = vpop.f32.mrf.mxu1 }
  0xf4   : > { %v5155_v22 = vpop.f32.mrf.mxu0  ;;  %v5215_v13 = vpop.f32.mrf.mxu1 }
  0xf6   : > { %v5157_v23 = vpop.f32.mrf.mxu0  ;;  %v5219_v17 = vpop.f32.mrf.mxu1 }
  0xf8   : > { %v5161_v24 = vpop.f32.mrf.mxu0  ;;  %v5225_v42 = vpop.f32.mrf.mxu1 }
  0xfa   : > { %v5163_v25 = vpop.f32.mrf.mxu0  ;;  %v5235_v15 = vpop.f32.mrf.mxu1 }
  0xfc   : > { %v5167_v26 = vpop.f32.mrf.mxu0  ;;  %v5251_v7 = vpop.f32.mrf.mxu1 }
  0xfe   : > { %v5169_v27 = vpop.f32.mrf.mxu0  ;;  %v5265_v61 = vpop.f32.mrf.mxu1 }
 0x100   : > { %v5173_v28 = vpop.f32.mrf.mxu0 }
 0x102   : > { %v5175_v29 = vpop.f32.mrf.mxu0 }
 0x104   : > { %v5179_v30 = vpop.f32.mrf.mxu0 }
 0x106   : > { %v5181_v31 = vpop.f32.mrf.mxu0 }
 0x108   : > { %v5185_v32 = vpop.f32.mrf.mxu0 }
 0x10a   : > { %v5187_v35 = vpop.f32.mrf.mxu0 }
 0x10c   : > { %v5191_v37 = vpop.f32.mrf.mxu0 }
 0x10e   : > { %v5195_v41 = vpop.f32.mrf.mxu0 }
 0x110   : > { %v5199_v43 = vpop.f32.mrf.mxu0 }
 0x112   : > { %v5203_v2 = vpop.f32.mrf.mxu0 }
 0x114   : > { %v5207_v5 = vpop.f32.mrf.mxu0 }
 0x116   : > { %v5211_v10 = vpop.f32.mrf.mxu0 }
 0x118   : > { %v617_v12 = vpop.f32.mrf.mxu0 }
 0x11a   : > { %v619_v14 = vpop.f32.mrf.mxu0 }
 0x11c   : > { %v623_v16 = vpop.f32.mrf.mxu0 }
 0x11e   : > { %v625_v18 = vpop.f32.mrf.mxu0 }
 0x120   : > { %v629_v46 = vpop.f32.mrf.mxu0 }
 0x121   : > { %v630_v60 = vadd.f32 %v629_v46, %v5249_v11  ;;  %v5277_v46 = vpop.f32.mrf.mxu1 }
 0x122   : > { %v631_v38 = vpop.f32.mrf.mxu0 }
 0x123   : > { %v5292_v6 = vpop.f32.mrf.mxu1 }
 0x124   : > { %v635_v50 = vpop.f32.mrf.mxu0 }
 0x125   : > { %v636_v54 = vadd.f32 %v635_v50, %v5249_v11 }
 0x126   : > { %v637_v48 = vpop.f32.mrf.mxu0 }
 0x127   : > { %v638_v52 = vadd.f32 %v637_v48, %v5257_v3 }
 0x128   : > { %v641_v9 = vpop.f32.mrf.mxu0 }
 0x129   : > { %v642_v1 = vadd.f32 %v641_v9, %v5249_v11 }
 0x12a   : > { %v643_v0 = vpop.f32.mrf.mxu0 }
 0x12b   : > { %v644_v63 = vadd.f32 %v643_v0, %v5257_v3  ;;  %1289 = vmatpush1.msra.mxu1 %v642_v1  ;;  %v624_v0 = vadd.f32 %v623_v16, %v5249_v11  ;;  %v632_v1 = vadd.f32 %v631_v38, %v5257_v3  ;;  %v614_v16 = vadd.f32 %v5211_v10, %v5257_v3 }
 0x12c   : > { %1290 = vmatprep.subr.mxu1 %v7557_v4  ;;  %v5263_v62 = vpop.f32.mrf.mxu0 }
 0x12d   : > { %1291 = vmatpush1.msra.mxu1 %v636_v54  ;;  %1578 = vmatpush1.msra.mxu0 %v644_v63  ;;  %v618_v54 = vadd.f32 %v617_v12, %v5249_v11  ;;  %v626_v63 = vadd.f32 %v625_v18, %v5257_v3  ;;  %v606_v12 = vadd.f32 %v5199_v43, %v5249_v11  ;;  %v5310_v43 = vpop.f32.mrf.mxu1 }
 0x12e   : > { %1292 = vmatprep.subr.mxu1 %v7557_v4  ;;  %1579 = vmatprep.subr.mxu0 %v7557_v4  ;;  %v5271_v50 = vpop.f32.mrf.mxu0  ;;  %v608_v18 = vadd.f32 %v5203_v2, %v5257_v3  ;;  %v588_v2 = vadd.f32 %v5179_v30, %v5249_v11  ;;  %v576_v30 = vadd.f32 %v5167_v26, %v5249_v11 }
 0x12f   : > { %1293 = vmatpush1.msra.mxu1 %v630_v60  ;;  %1580 = vmatpush1.msra.mxu0 %v638_v52  ;;  %v612_v52 = vadd.f32 %v5207_v5, %v5249_v11  ;;  %v620_v60 = vadd.f32 %v619_v14, %v5257_v3  ;;  %v600_v14 = vadd.f32 %v5191_v37, %v5249_v11 }
 0x130   : > { %1294 = vmatprep.subr.mxu1 %v7557_v4  ;;  %1581 = vmatprep.subr.mxu0 %v7557_v4  ;;  %v5279_v48 = vpop.f32.mrf.mxu0  ;;  %v564_v26 = vadd.f32 %v5155_v22, %v5249_v11  ;;  %v552_v22 = vadd.f32 %v5143_v36, %v5249_v11 }
 0x131   : > { %1295 = vmatpush1.msra.mxu1 %v624_v0  ;;  %1582 = vmatpush1.msra.mxu0 %v632_v1  ;;  %v594_v0 = vadd.f32 %v5185_v32, %v5249_v11  ;;  %v602_v1 = vadd.f32 %v5195_v41, %v5257_v3  ;;  %v731_v32 = vpop.f32.mrf.mxu1 }
 0x132   : > { %1296 = vmatprep.subr.mxu1 %v7557_v4  ;;  %1583 = vmatprep.subr.mxu0 %v7557_v4  ;;  %v5285_v38 = vpop.f32.mrf.mxu0  ;;  %v732_v36 = vadd.f32 %v731_v32, %v5249_v11  ;;  %v728_v32 = vadd.f32 %v5310_v43, %v5257_v3  ;;  %v716_v43 = vadd.f32 %v5251_v7, %v5257_v3 }
 0x133   : > { %1297 = vmatpush1.msra.mxu1 %v618_v54  ;;  %1584 = vmatpush1.msra.mxu0 %v626_v63  ;;  %v596_v54 = vadd.f32 %v5187_v35, %v5257_v3  ;;  %v582_v63 = vadd.f32 %v5173_v28, %v5249_v11  ;;  %v584_v35 = vadd.f32 %v5175_v29, %v5257_v3  ;;  %v733_v28 = vpop.f32.mrf.mxu1 }
 0x134   : > { %1298 = vmatprep.subr.mxu1 %v7557_v4  ;;  %1585 = vmatprep.subr.mxu0 %v7557_v4  ;;  %v5294_v9 = vpop.f32.mrf.mxu0  ;;  %v572_v29 = vadd.f32 %v5163_v25, %v5257_v3  ;;  %v560_v25 = vadd.f32 %v5151_v21, %v5257_v3  ;;  %v696_v7 = vadd.f32 %v5193_v39, %v5249_v11 }
 0x135   : > { %1299 = vmatpush1.msra.mxu1 %v612_v52  ;;  %1586 = vmatpush1.msra.mxu0 %v620_v60  ;;  %v590_v52 = vadd.f32 %v5181_v31, %v5257_v3  ;;  %v570_v60 = vadd.f32 %v5161_v24, %v5249_v11  ;;  %v737_v24 = vpop.f32.mrf.mxu1 }
 0x136   : > { %1300 = vmatprep.subr.mxu1 %v7557_v4  ;;  %1587 = vmatprep.subr.mxu0 %v7557_v4  ;;  %v5302_v5 = vpop.f32.mrf.mxu0 }
 0x137   : > { %1301 = vmatpush1.msra.mxu1 %v606_v12  ;;  %1588 = vmatpush1.msra.mxu0 %v614_v16  ;;  %v578_v12 = vadd.f32 %v5169_v27, %v5257_v3  ;;  %v558_v16 = vadd.f32 %v5149_v20, %v5249_v11  ;;  %v739_v20 = vpop.f32.mrf.mxu1 }
 0x138   : > { %1302 = vmatprep.subr.mxu1 %v7557_v4  ;;  %1589 = vmatprep.subr.mxu0 %v7557_v4  ;;  %v5312_v10 = vpop.f32.mrf.mxu0  ;;  %v740_v21 = vadd.f32 %v739_v20, %v5257_v3 }
 0x139   : > { %1303 = vmatpush1.msra.mxu1 %v600_v14  ;;  %1590 = vmatpush1.msra.mxu0 %v608_v18  ;;  %v566_v14 = vadd.f32 %v5157_v23, %v5257_v3  ;;  %v738_v18 = vadd.f32 %v737_v24, %v5249_v11 }
 0x13a   : > { %1304 = vmatprep.subr.mxu1 %v7557_v4  ;;  %1591 = vmatprep.subr.mxu0 %v7557_v4  ;;  %v5320_v37 = vpop.f32.mrf.mxu0 }
 0x13b   : > { %1305 = vmatpush1.msra.mxu1 %v594_v0  ;;  %1592 = vmatpush1.msra.mxu0 %v602_v1  ;;  %v554_v0 = vadd.f32 %v5145_v19, %v5257_v3  ;;  %v726_v19 = vadd.f32 %v5292_v6, %v5249_v11  ;;  %v668_v24 = vadd.f32 %v5320_v37, %v5257_v3 }
 0x13c   : > { %1306 = vmatprep.subr.mxu1 %v7557_v4  ;;  %1593 = vmatprep.subr.mxu0 %v7557_v4  ;;  %v5328_v41 = vpop.f32.mrf.mxu0  ;;  %v656_v37 = vadd.f32 %v5285_v38, %v5257_v3  ;;  %v5470_v38 = vpop.f32.mrf.mxu1 }
 0x13d   : > { %1307 = vmatpush1.msra.mxu1 %v588_v2  ;;  %1594 = vmatpush1.msra.mxu0 %v596_v54  ;;  %v734_v2 = vadd.f32 %v733_v28, %v5257_v3  ;;  %v720_v54 = vadd.f32 %v5265_v61, %v5249_v11  ;;  %v708_v61 = vadd.f32 %v5219_v17, %v5249_v11 }
 0x13e   : > { %1308 = vmatprep.subr.mxu1 %v7557_v4  ;;  %1595 = vmatprep.subr.mxu0 %v7557_v4  ;;  %v5342_v31 = vpop.f32.mrf.mxu0  ;;  %v704_v17 = vadd.f32 %v5215_v13, %v5257_v3 }
 0x13f   : > { %1309 = vmatpush1.msra.mxu1 %v582_v63  ;;  %1596 = vmatpush1.msra.mxu0 %v590_v52  ;;  %v714_v63 = vadd.f32 %v5235_v15, %v5249_v11  ;;  %v722_v52 = vadd.f32 %v5277_v46, %v5257_v3  ;;  %v702_v46 = vadd.f32 %v5209_v8, %v5249_v11 }
 0x140   : > { %1310 = vmatprep.subr.mxu1 %v7557_v4  ;;  %1597 = vmatprep.subr.mxu0 %v7557_v4  ;;  %v5356_v27 = vpop.f32.mrf.mxu0 }
 0x141   : > { %1311 = vmatpush1.msra.mxu1 %v576_v30  ;;  %1598 = vmatpush1.msra.mxu0 %v584_v35  ;;  %v710_v30 = vadd.f32 %v5225_v42, %v5257_v3  ;;  %v698_v42 = vadd.f32 %v5201_v45, %v5257_v3  ;;  %v678_v28 = vadd.f32 %v5356_v27, %v5249_v11 }
 0x142   : > { %1312 = vmatprep.subr.mxu1 %v7557_v4  ;;  %1599 = vmatprep.subr.mxu0 %v7557_v4  ;;  %v5371_v23 = vpop.f32.mrf.mxu0  ;;  %v650_v27 = vadd.f32 %v5271_v50, %v5257_v3  ;;  %v1229_v50 = vld [vmem:[%s5242_s11 + $0x28] sm:$0xff] }
 0x143   : > { %1313 = vmatpush1.msra.mxu1 %v570_v60  ;;  %1600 = vmatpush1.msra.mxu0 %v578_v12  ;;  %v672_v60 = vadd.f32 %v5328_v41, %v5249_v11  ;;  %v680_v12 = vadd.f32 %v5371_v23, %v5257_v3  ;;  %v660_v41 = vadd.f32 %v5294_v9, %v5249_v11  ;;  %v1891_v23 = vld [vmem:[%s7487_s6 + $0x148] sm:$0xff] }
 0x144   : > { %1314 = vmatprep.subr.mxu1 %v7557_v4  ;;  %1601 = vmatprep.subr.mxu0 %v7557_v4  ;;  %v683_v1 = vpop.f32.mrf.mxu0  ;;  %v648_v9 = vadd.f32 %v5263_v62, %v5249_v11  ;;  %v1897_v62 = vld [vmem:[%s7487_s6 + $0x178] sm:$0xff] }
 0x145   : > { %1315 = vmatpush1.msra.mxu1 %v564_v26  ;;  %1602 = vmatpush1.msra.mxu0 %v572_v29  ;;  %v684_v39 = vadd.f32 %v683_v1, %v5249_v11  ;;  %v666_v26 = vadd.f32 %v5312_v10, %v5249_v11  ;;  %v674_v29 = vadd.f32 %v5342_v31, %v5257_v3 }
 0x146   : > { %1316 = vmatprep.subr.mxu1 %v7557_v4  ;;  %1603 = vmatprep.subr.mxu0 %v7557_v4  ;;  %v685_v6 = vpop.f32.mrf.mxu0  ;;  %v654_v10 = vadd.f32 %v5279_v48, %v5249_v11  ;;  %v662_v31 = vadd.f32 %v5302_v5, %v5257_v3  ;;  %v1224_v48 = vld [vmem:[%s5242_s11] sm:$0xff]  ;;  %v1227_v5 = vld [vmem:[%s5242_s11 + $0x18] sm:$0xff] }
 0x147   : > { %1317 = vmatpush1.msra.mxu1 %v558_v16  ;;  %1604 = vmatpush1.msra.mxu0 %v566_v14  ;;  %v686_v45 = vadd.f32 %v685_v6, %v5257_v3  ;;  %v1513_v16 = vld [vmem:[%s5136_s25] sm:$0xff]  ;;  %v1226_v14 = vld [vmem:[%s5242_s11 + $0x10] sm:$0xff] }
 0x148   : > { %1318 = vmatprep.subr.mxu1 %v7557_v4  ;;  %1605 = vmatprep.subr.mxu0 %v7557_v4  ;;  %v689_v15 = vpop.f32.mrf.mxu0 }
 0x149   : > { %1319 = vmatpush1.msra.mxu1 %v552_v22  ;;  %1606 = vmatpush1.msra.mxu0 %v560_v25  ;;  %v690_v35 = vadd.f32 %v689_v15, %v5249_v11  ;;  %v1516_v11 = vld [vmem:[%s5136_s25 + $0x18] sm:$0xff]  ;;  %v5479_v25 = vpop.f32.mrf.mxu1  ;;  %v1230_v15 = vld [vmem:[%s5242_s11 + $0x30] sm:$0xff] }
 0x14a   : > { %1320 = vmatprep.subr.mxu1 %v7557_v4  ;;  %1607 = vmatprep.subr.mxu0 %v7557_v4  ;;  %v691_v8 = vpop.f32.mrf.mxu0 }
 0x14b   : > { %1321 = vmatpush2.msra.mxu1 %v738_v18  ;;  %1608 = vmatpush1.msra.mxu0 %v554_v0  ;;  %v692_v13 = vadd.f32 %v691_v8, %v5257_v3  ;;  %v1894_v3 = vld [vmem:[%s7487_s6 + $0x160] sm:$0xff]  ;;  %v1515_v18 = vld [vmem:[%s5136_s25 + $0x10] sm:$0xff]  ;;  %v1518_v0 = vld [vmem:[%s5136_s25 + $0x28] sm:$0xff] }
 0x14c   : > { %1322 = vmatprep.subr.mxu1 %v7557_v4  ;;  %1609 = vmatprep.subr.mxu0 %v7557_v4  ;;  %v5473_v22 = vpop.f32.mrf.mxu0 }
 0x14d   : > { %1323 = vmatpush2.msra.mxu1 %v732_v36  ;;  %1610 = vmatpush2.msra.mxu0 %v740_v21  ;;  %v5488_v36 = vpop.f32.mrf.mxu1  ;;  %v1228_v21 = vld [vmem:[%s5242_s11 + $0x20] sm:$0xff] }
 0x14e   : > { %1324 = vmatprep.subr.mxu1 %v7557_v4  ;;  %1611 = vmatprep.subr.mxu0 %v7557_v4  ;;  %v5482_v20 = vpop.f32.mrf.mxu0 }
 0x14f   : > { %1325 = vmatpush2.msra.mxu1 %v726_v19  ;;  %1612 = vmatpush2.msra.mxu0 %v734_v2  ;;  %v1888_v19 = vld [vmem:[%s7487_s6 + $0x130] sm:$0xff]  ;;  %v1231_v2 = vld [vmem:[%s5242_s11 + $0x38] sm:$0xff] }
 0x150   : > { %1326 = vmatprep.subr.mxu1 %v7557_v4  ;;  %1613 = vmatprep.subr.mxu0 %v7557_v4  ;;  %v5491_v1 = vpop.f32.mrf.mxu0 }
 0x151   : > { %1327 = vmatpush2.msra.mxu1 %v720_v54  ;;  %1614 = vmatpush2.msra.mxu0 %v728_v32  ;;  %v5497_v54 = vpop.f32.mrf.mxu1  ;;  %v1517_v32 = vld [vmem:[%s5136_s25 + $0x20] sm:$0xff] }
 0x152   : > { %1328 = vmatprep.subr.mxu1 %v7557_v4  ;;  %1615 = vmatprep.subr.mxu0 %v7557_v4  ;;  %v5500_v6 = vpop.f32.mrf.mxu0 }
 0x153   : > { %1329 = vmatpush2.msra.mxu1 %v714_v63  ;;  %1616 = vmatpush2.msra.mxu0 %v722_v52  ;;  %v1896_v63 = vld [vmem:[%s7487_s6 + $0x170] sm:$0xff]  ;;  %v1520_v52 = vld [vmem:[%s5136_s25 + $0x38] sm:$0xff] }
 0x154   : > { %1330 = vmatprep.subr.mxu1 %v7557_v4  ;;  %1617 = vmatprep.subr.mxu0 %v7557_v4 }
 0x155   : > { %1331 = vmatpush2.msra.mxu1 %v708_v61  ;;  %1618 = vmatpush2.msra.mxu0 %v716_v43  ;;  %v5506_v61 = vpop.f32.mrf.mxu1  ;;  %v1885_v43 = vld [vmem:[%s7487_s6 + $0x118] sm:$0xff] }
 0x156   : > { %1332 = vmatprep.subr.mxu1 %v7557_v4  ;;  %1619 = vmatprep.subr.mxu0 %v7557_v4 }
 0x157   : > { %1333 = vmatpush2.msra.mxu1 %v702_v46  ;;  %1620 = vmatpush2.msra.mxu0 %v710_v30  ;;  %v5512_v46 = vpop.f32.mrf.mxu0  ;;  %v1233_v30 = vld [vmem:[%s5242_s11 + $0x48] sm:$0xff] }
 0x158   : > { %1334 = vmatprep.subr.mxu1 %v7557_v4  ;;  %1621 = vmatprep.subr.mxu0 %v7557_v4 }
 0x159   : > { %1335 = vmatpush2.msra.mxu1 %v696_v7  ;;  %1622 = vmatpush2.msra.mxu0 %v704_v17  ;;  %v5515_v7 = vpop.f32.mrf.mxu1  ;;  %v1895_v17 = vld [vmem:[%s7487_s6 + $0x168] sm:$0xff]  ;;  %v5521_v8 = vpop.f32.mrf.mxu0 }
 0x15a   : > { %1336 = vmatprep.subr.mxu1 %v7557_v4  ;;  %1623 = vmatprep.subr.mxu0 %v7557_v4 }
 0x15b   : > { %1337 = vmatpush2.msra.mxu1 %v690_v35  ;;  %1624 = vmatpush2.msra.mxu0 %v698_v42  ;;  %v1519_v35 = vld [vmem:[%s5136_s25 + $0x30] sm:$0xff]  ;;  %v1893_v42 = vld [vmem:[%s7487_s6 + $0x158] sm:$0xff] }
 0x15c   : > { %1338 = vmatprep.subr.mxu1 %v7557_v4  ;;  %1625 = vmatprep.subr.mxu0 %v7557_v4 }
 0x15d   : > { %1339 = vmatpush2.msra.mxu1 %v684_v39  ;;  %1626 = vmatpush2.msra.mxu0 %v692_v13  ;;  %v1522_v39 = vld [vmem:[%s5136_s25 + $0x48] sm:$0xff]  ;;  %v5527_v13 = vpop.f32.mrf.mxu1 }
 0x15e   : > { %1340 = vmatprep.subr.mxu1 %v7557_v4  ;;  %1627 = vmatprep.subr.mxu0 %v7557_v4 }
 0x15f   : > { %1341 = vmatpush2.msra.mxu1 %v678_v28  ;;  %1628 = vmatpush2.msra.mxu0 %v686_v45  ;;  %v1892_v28 = vld [vmem:[%s7487_s6 + $0x150] sm:$0xff]  ;;  %v1232_v45 = vld [vmem:[%s5242_s11 + $0x40] sm:$0xff] }
 0x160   : > { %1342 = vmatprep.subr.mxu1 %v7557_v4  ;;  %1629 = vmatprep.subr.mxu0 %v7557_v4 }
 0x161   : > { %1343 = vmatpush2.msra.mxu1 %v672_v60  ;;  %1630 = vmatpush2.msra.mxu0 %v680_v12  ;;  %v5533_v60 = vpop.f32.mrf.mxu0  ;;  %v1890_v12 = vld [vmem:[%s7487_s6 + $0x140] sm:$0xff] }
 0x162   : > { %1344 = vmatprep.subr.mxu1 %v7557_v4  ;;  %1631 = vmatprep.subr.mxu0 %v7557_v4 }
 0x163   : > { %1345 = vmatpush2.msra.mxu1 %v666_v26  ;;  %1632 = vmatpush2.msra.mxu0 %v674_v29  ;;  %v1235_v26 = vld [vmem:[%s5242_s11 + $0x58] sm:$0xff]  ;;  %v5539_v29 = vpop.f32.mrf.mxu1 }
 0x164   : > { %1346 = vmatprep.subr.mxu1 %v7557_v4  ;;  %1633 = vmatprep.subr.mxu0 %v7557_v4 }
 0x165   : > { %1347 = vmatpush2.msra.mxu1 %v660_v41  ;;  %1634 = vmatpush2.msra.mxu0 %v668_v24  ;;  %v1889_v41 = vld [vmem:[%s7487_s6 + $0x138] sm:$0xff]  ;;  %v1521_v24 = vld [vmem:[%s5136_s25 + $0x40] sm:$0xff] }
 0x166   : > { %1348 = vmatprep.subr.mxu1 %v7557_v4  ;;  %1635 = vmatprep.subr.mxu0 %v7557_v4 }
 0x167   : > { %1349 = vmatpush2.msra.mxu1 %v654_v10  ;;  %1636 = vmatpush2.msra.mxu0 %v662_v31  ;;  %v5545_v10 = vpop.f32.mrf.mxu0  ;;  %v1887_v31 = vld [vmem:[%s7487_s6 + $0x128] sm:$0xff] }
 0x168   : > { %1350 = vmatprep.subr.mxu1 %v7557_v4  ;;  %1637 = vmatprep.subr.mxu0 %v7557_v4 }
 0x169   : > { %1351 = vmatpush2.msra.mxu1 %v648_v9  ;;  %1638 = vmatpush2.msra.mxu0 %v656_v37  ;;  %v1524_v9 = vld [vmem:[%s5136_s25 + $0x58] sm:$0xff]  ;;  %v5551_v37 = vpop.f32.mrf.mxu1 }
 0x16a   : > { %1639 = vmatprep.subr.mxu0 %v7557_v4  ;;  %1353 = vmatmul.mubr.f32.vlgmr.msra.gmra.mxu1 %v1224_v48  ;;  %v1886_v48 = vld [vmem:[%s7487_s6 + $0x120] sm:$0xff] }
 0x16b   : > { %1640 = vmatpush2.msra.mxu0 %v650_v27  ;;  %1357 = vmatprep.mubr.f32.mxu1 %v1227_v5  ;;  %v1234_v5 = vld [vmem:[%s5242_s11 + $0x50] sm:$0xff]  ;;  %v5557_v27 = vpop.f32.mrf.mxu0 }
 0x16c   : > { %1642 = vmatmul.mubr.f32.vlgmr.msra.gmra.mxu0 %v1513_v16  ;;  %4065 = vmatprep.subr.mxu0 %v1897_v62  ;;  %v1884_v16 = vld [vmem:[%s7487_s6 + $0x110] sm:$0xff] }
 0x16d   : > { %1646 = vmatprep.mubr.f32.mxu0 %v1516_v11  ;;  %4066 = vmatpush3.msra.mxu0 %v1897_v62  ;;  %v1237_v62 = vld [vmem:[%s5242_s11 + $0x68] sm:$0xff]  ;;  %v5563_v11 = vpop.f32.mrf.mxu1 }
 0x16e   : > { %1358 = vmatmul.mubr.f32.gmra.mxu1 %v1226_v14  ;;  %4067 = vmatprep.subr.mxu0 %v1894_v3  ;;  %v1882_v14 = vld [vmem:[%s7487_s6 + $0x100] sm:$0xff] }
 0x16f   : > { %1362 = vmatprep.mubr.f32.mxu1 %v1229_v50  ;;  %4068 = vmatpush3.msra.mxu0 %v1894_v3  ;;  %v1523_v3 = vld [vmem:[%s5136_s25 + $0x50] sm:$0xff]  ;;  %v5569_v50 = vpop.f32.mrf.mxu0 }
 0x170   : > { %1647 = vmatmul.mubr.f32.gmra.mxu0 %v1515_v18  ;;  %4069 = vmatprep.subr.mxu0 %v1891_v23  ;;  %v1883_v18 = vld [vmem:[%s7487_s6 + $0x108] sm:$0xff] }
 0x171   : > { %1651 = vmatprep.mubr.f32.mxu0 %v1518_v0  ;;  %4070 = vmatpush3.msra.mxu0 %v1891_v23  ;;  %v1526_v23 = vld [vmem:[%s5136_s25 + $0x68] sm:$0xff]  ;;  %v478_v0 = vsub.s32 4, %v5222_v33 }
 0x172   : > { %1363 = vmatmul.mubr.f32.gmra.mxu1 %v1228_v21  ;;  %4071 = vmatprep.subr.mxu0 %v1888_v19  ;;  %v5576_v21 = vpop.f32.mrf.mxu1 }
 0x173   : > { %1367 = vmatprep.mubr.f32.mxu1 %v1231_v2  ;;  %4072 = vmatpush3.msra.mxu0 %v1888_v19  ;;  %v1236_v19 = vld [vmem:[%s5242_s11 + $0x60] sm:$0xff]  ;;  %v5579_v2 = vpop.f32.mrf.mxu0 }
 0x174   : > { %1652 = vmatmul.mubr.f32.gmra.mxu0 %v1517_v32  ;;  %1898 = vmatprep.subr.mxu1 %v1896_v63  ;;  %7558 = vst [vmem:[#allocation32_spill] sm:$0xff] %v5579_v2  ;;  %v1881_v32 = vld [vmem:[%s7487_s6 + $0xf8] sm:$0xff] }
 0x175   : > { %1656 = vmatprep.mubr.f32.mxu0 %v1520_v52  ;;  %4073 = vmatprep.subr.mxu0 %v1885_v43  ;;  %v1239_v63 = vld [vmem:[%s5242_s11 + $0x78] sm:$0xff]  ;;  %v5585_v52 = vpop.f32.mrf.mxu1 }
 0x176   : > { %1368 = vmatmul.mubr.f32.gmra.mxu1 %v1230_v15  ;;  %4074 = vmatpush3.msra.mxu0 %v1885_v43  ;;  %7559 = vst [vmem:[#allocation33_spill] sm:$0xff] %v5585_v52  ;;  %v1880_v43 = vld [vmem:[%s7487_s6 + $0xf0] sm:$0xff]  ;;  %v1525_v15 = vld [vmem:[%s5136_s25 + $0x60] sm:$0xff] }
 0x177   : > { %1372 = vmatprep.mubr.f32.mxu1 %v1233_v30  ;;  %1899 = vmatpush1.msra.mxu1 %v1895_v17  ;;  %v5591_v30 = vpop.f32.mrf.mxu0  ;;  %v1878_v17 = vld [vmem:[%s7487_s6 + $0xe0] sm:$0xff] }
 0x178   : > { %1657 = vmatmul.mubr.f32.gmra.mxu0 %v1519_v35  ;;  %1900 = vmatprep.subr.mxu1 %v1893_v42  ;;  %7560 = vst [vmem:[#allocation34_spill] sm:$0xff] %v5591_v30  ;;  %v1528_v35 = vld [vmem:[%s5136_s25 + $0x78] sm:$0xff]  ;;  %v5598_v42 = vrot.slane %v5233_v34, %v478_v0  ;;  %v1241_v34 = vld [vmem:[%s5242_s11 + $0x88] sm:$0xff] }
 0x179   : > { %1661 = vmatprep.mubr.f32.mxu0 %v1522_v39  ;;  %1901 = vmatpush1.msra.mxu1 %v1892_v28  ;;  %v5600_v39 = vpop.f32.mrf.mxu1  ;;  %v1877_v28 = vld [vmem:[%s7487_s6 + $0xd8] sm:$0xff] }
 0x17a   : > { %1373 = vmatmul.mubr.f32.gmra.mxu1 %v1232_v45  ;;  %1902 = vmatprep.subr.mxu1 %v1890_v12  ;;  %7561 = vst [vmem:[#allocation35_spill] sm:$0xff] %v5598_v42  ;;  %7562 = vst [vmem:[#allocation36_spill] sm:$0xff] %v5600_v39  ;;  %v1238_v45 = vld [vmem:[%s5242_s11 + $0x70] sm:$0xff]  ;;  %v4037_v12 = vpop.f32.mrf.mxu0 }
 0x17b   : > { %1377 = vmatprep.mubr.f32.mxu1 %v1235_v26  ;;  %1903 = vmatpush1.msra.mxu1 %v1889_v41  ;;  %v1875_v26 = vld [vmem:[%s7487_s6 + $0xc8] sm:$0xff]  ;;  %v5611_v41 = vadd.f32 %v4037_v12, %v5598_v42 }
 0x17c   : > { %1662 = vmatmul.mubr.f32.gmra.mxu0 %v1521_v24  ;;  %1904 = vmatprep.subr.mxu1 %v1887_v31  ;;  %v5613_v24 = vpop.f32.mrf.mxu1  ;;  %v1874_v31 = vld [vmem:[%s7487_s6 + $0xc0] sm:$0xff] }
 0x17d   : > { %1666 = vmatprep.mubr.f32.mxu0 %v1524_v9  ;;  %1905 = vmatpush1.msra.mxu1 %v1886_v48  ;;  %7563 = vst [vmem:[#allocation37_spill] sm:$0xff] %v5611_v41  ;;  %7564 = vst [vmem:[#allocation38_spill] sm:$0xff] %v5613_v24  ;;  %v1527_v9 = vld [vmem:[%s5136_s25 + $0x70] sm:$0xff]  ;;  %v5619_v48 = vpop.f32.mrf.mxu0  ;;  %v1251_v41 = vld [vmem:[%s5242_s11 + $0xd8] sm:$0xff] }
 0x17e   : > { %1378 = vmatmul.mubr.f32.gmra.mxu1 %v1234_v5  ;;  %1906 = vmatprep.subr.mxu1 %v1884_v16  ;;  %7565 = vst [vmem:[#allocation39_spill] sm:$0xff] %v5619_v48  ;;  %v1872_v5 = vld [vmem:[%s7487_s6 + $0xb0] sm:$0xff]  ;;  %v1530_v16 = vld [vmem:[%s5136_s25 + $0x88] sm:$0xff] }
 0x17f   : > { %1382 = vmatprep.mubr.f32.mxu1 %v1237_v62  ;;  %4075 = vmatprep.subr.mxu0 %v1882_v14  ;;  %v5625_v62 = vpop.f32.mrf.mxu1 }
 0x180   : > { %1667 = vmatmul.mubr.f32.gmra.mxu0 %v1523_v3  ;;  %1907 = vmatpush1.msra.mxu1 %v1883_v18  ;;  %7566 = vst [vmem:[#allocation40_spill] sm:$0xff] %v5625_v62  ;;  %v1240_v3 = vld [vmem:[%s5242_s11 + $0x80] sm:$0xff]  ;;  %v4040_v18 = vpop.f32.mrf.mxu0 }
 0x181   : > { %1671 = vmatprep.mubr.f32.mxu0 %v1526_v23  ;;  %4076 = vmatpush3.msra.mxu0 %v1882_v14  ;;  %v1879_v14 = vld [vmem:[%s7487_s6 + $0xe8] sm:$0xff]  ;;  %v1243_v23 = vld [vmem:[%s5242_s11 + $0x98] sm:$0xff]  ;;  %v5633_v0 = vadd.f32 %v4040_v18, %v5598_v42 }
 0x182   : > { %1383 = vmatmul.mubr.f32.gmra.mxu1 %v1236_v19  ;;  %1908 = vmatprep.subr.mxu1 %v1881_v32  ;;  %v5635_v19 = vpop.f32.mrf.mxu1  ;;  %v1871_v32 = vld [vmem:[%s7487_s6 + $0xa8] sm:$0xff] }
 0x183   : > { %1387 = vmatprep.mubr.f32.mxu1 %v1239_v63  ;;  %1909 = vmatpush1.msra.mxu1 %v1880_v43  ;;  %7567 = vst [vmem:[#allocation41_spill] sm:$0xff] %v5633_v0  ;;  %7568 = vst [vmem:[#allocation42_spill] sm:$0xff] %v5635_v19  ;;  %v1529_v63 = vld [vmem:[%s5136_s25 + $0x80] sm:$0xff]  ;;  %v5641_v43 = vpop.f32.mrf.mxu0 }
 0x184   : > { %1672 = vmatmul.mubr.f32.gmra.mxu0 %v1525_v15  ;;  %1910 = vmatprep.subr.mxu1 %v1878_v17  ;;  %7569 = vst [vmem:[#allocation43_spill] sm:$0xff] %v5641_v43  ;;  %v1869_v15 = vld [vmem:[%s7487_s6 + $0x98] sm:$0xff] }
 0x185   : > { %1676 = vmatprep.mubr.f32.mxu0 %v1528_v35  ;;  %1911 = vmatpush1.msra.mxu1 %v1877_v28  ;;  %v1532_v17 = vld [vmem:[%s5136_s25 + $0x98] sm:$0xff]  ;;  %v5647_v35 = vpop.f32.mrf.mxu1  ;;  %v1876_v28 = vld [vmem:[%s7487_s6 + $0xd0] sm:$0xff]  ;;  %v4043_v12 = vpop.f32.mrf.mxu0 }
 0x186   : > { %1388 = vmatmul.mubr.f32.gmra.mxu1 %v1238_v45  ;;  %1912 = vmatprep.subr.mxu1 %v1875_v26  ;;  %7570 = vst [vmem:[#allocation44_spill] sm:$0xff] %v5647_v35  ;;  %v1242_v45 = vld [vmem:[%s5242_s11 + $0x90] sm:$0xff]  ;;  %v1245_v26 = vld [vmem:[%s5242_s11 + $0xa8] sm:$0xff] }
 0x187   : > { %1392 = vmatprep.mubr.f32.mxu1 %v1241_v34  ;;  %1913 = vmatpush1.msra.mxu1 %v1874_v31  ;;  %v5655_v34 = vadd.f32 %v4043_v12, %v5598_v42  ;;  %v5657_v31 = vpop.f32.mrf.mxu1 }
 0x188   : > { %1677 = vmatmul.mubr.f32.gmra.mxu0 %v1527_v9  ;;  %1914 = vmatprep.subr.mxu1 %v1872_v5  ;;  %7572 = vst [vmem:[#allocation46_spill] sm:$0xff] %v5657_v31  ;;  %v1868_v9 = vld [vmem:[%s7487_s6 + $0x90] sm:$0xff] }
 0x189   : > { %1681 = vmatprep.mubr.f32.mxu0 %v1530_v16  ;;  %4077 = vmatprep.subr.mxu0 %v1879_v14  ;;  %7571 = vst [vmem:[#allocation45_spill] sm:$0xff] %v5655_v34  ;;  %v1531_v5 = vld [vmem:[%s5136_s25 + $0x90] sm:$0xff]  ;;  %v5663_v16 = vpop.f32.mrf.mxu0  ;;  %v5669_v18 = vpop.f32.mrf.mxu1  ;;  %v1249_v34 = vld [vmem:[%s5242_s11 + $0xc8] sm:$0xff] }
 0x18a   : > { %1393 = vmatmul.mubr.f32.gmra.mxu1 %v1240_v3  ;;  %4078 = vmatpush3.msra.mxu0 %v1879_v14  ;;  %7573 = vst [vmem:[#allocation47_spill] sm:$0xff] %v5663_v16  ;;  %v1866_v14 = vld [vmem:[%s7487_s6 + $0x80] sm:$0xff]  ;;  %v1534_v3 = vld [vmem:[%s5136_s25 + $0xa8] sm:$0xff]  ;;  %7574 = vst [vmem:[#allocation48_spill] sm:$0xff] %v5669_v18 }
 0x18b   : > { %1397 = vmatprep.mubr.f32.mxu1 %v1243_v23  ;;  %1915 = vmatpush1.msra.mxu1 %v1871_v32  ;;  %v1873_v23 = vld [vmem:[%s7487_s6 + $0xb8] sm:$0xff]  ;;  %v1244_v32 = vld [vmem:[%s5242_s11 + $0xa0] sm:$0xff]  ;;  %v5679_v12 = vpop.f32.mrf.mxu1 }
 0x18c   : > { %1682 = vmatmul.mubr.f32.gmra.mxu0 %v1529_v63  ;;  %1916 = vmatprep.subr.mxu1 %v1869_v15  ;;  %v4046_v63 = vpop.f32.mrf.mxu0  ;;  %v1247_v15 = vld [vmem:[%s5242_s11 + $0xb8] sm:$0xff]  ;;  %7576 = vst [vmem:[#allocation50_spill] sm:$0xff] %v5679_v12 }
 0x18d   : > { %1686 = vmatprep.mubr.f32.mxu0 %v1532_v17  ;;  %4079 = vmatprep.subr.mxu0 %v1876_v28  ;;  %v5677_v17 = vadd.f32 %v4046_v63, %v5598_v42  ;;  %v5691_v63 = vpop.f32.mrf.mxu1 }
 0x18e   : > { %1398 = vmatmul.mubr.f32.gmra.mxu1 %v1242_v45  ;;  %4080 = vmatpush3.msra.mxu0 %v1876_v28  ;;  %v1865_v28 = vld [vmem:[%s7487_s6 + $0x78] sm:$0xff]  ;;  %v1533_v45 = vld [vmem:[%s5136_s25 + $0xa0] sm:$0xff]  ;;  %7578 = vst [vmem:[#allocation52_spill] sm:$0xff] %v5691_v63 }
 0x18f   : > { %1402 = vmatprep.mubr.f32.mxu1 %v1245_v26  ;;  %1917 = vmatpush1.msra.mxu1 %v1868_v9  ;;  %7575 = vst [vmem:[#allocation49_spill] sm:$0xff] %v5677_v17  ;;  %v5685_v26 = vpop.f32.mrf.mxu0  ;;  %v1863_v9 = vld [vmem:[%s7487_s6 + $0x68] sm:$0xff]  ;;  %v5701_v59 = vpop.f32.mrf.mxu1 }
 0x190   : > { %1687 = vmatmul.mubr.f32.gmra.mxu0 %v1531_v5  ;;  %1918 = vmatprep.subr.mxu1 %v1866_v14  ;;  %7577 = vst [vmem:[#allocation51_spill] sm:$0xff] %v5685_v26  ;;  %v1536_v5 = vld [vmem:[%s5136_s25 + $0xb8] sm:$0xff]  ;;  %v1870_v14 = vld [vmem:[%s7487_s6 + $0xa0] sm:$0xff]  ;;  %7580 = vst [vmem:[#allocation54_spill] sm:$0xff] %v5701_v59 }
 0x191   : > { %1691 = vmatprep.mubr.f32.mxu0 %v1534_v3  ;;  %4081 = vmatprep.subr.mxu0 %v1873_v23  ;;  %v1246_v3 = vld [vmem:[%s5242_s11 + $0xb0] sm:$0xff]  ;;  %v4049_v17 = vpop.f32.mrf.mxu0 }
 0x192   : > { %1403 = vmatmul.mubr.f32.gmra.mxu1 %v1244_v32  ;;  %4082 = vmatpush3.msra.mxu0 %v1873_v23  ;;  %v5699_v0 = vadd.f32 %v4049_v17, %v5598_v42  ;;  %v1862_v23 = vld [vmem:[%s7487_s6 + $0x60] sm:$0xff]  ;;  %v1535_v32 = vld [vmem:[%s5136_s25 + $0xb0] sm:$0xff]  ;;  %v5713_v17 = vpop.f32.mrf.mxu1 }
 0x193   : > { %1407 = vmatprep.mubr.f32.mxu1 %v1247_v15  ;;  %1919 = vmatpush1.msra.mxu1 %v1865_v28  ;;  %v5707_v15 = vpop.f32.mrf.mxu0  ;;  %v1860_v28 = vld [vmem:[%s7487_s6 + $0x50] sm:$0xff]  ;;  %7582 = vst [vmem:[#allocation56_spill] sm:$0xff] %v5713_v17 }
 0x194   : > { %1692 = vmatmul.mubr.f32.gmra.mxu0 %v1533_v45  ;;  %7579 = vst [vmem:[#allocation53_spill] sm:$0xff] %v5699_v0  ;;  %1920 = vmatprep.subr.mxu1 %v1863_v9  ;;  %7581 = vst [vmem:[#allocation55_spill] sm:$0xff] %v5707_v15  ;;  %v1538_v45 = vld [vmem:[%s5136_s25 + $0xc8] sm:$0xff]  ;;  %v5723_v57 = vpop.f32.mrf.mxu1 }
 0x195   : > { %1696 = vmatprep.mubr.f32.mxu0 %v1536_v5  ;;  %4083 = vmatprep.subr.mxu0 %v1870_v14  ;;  %v1867_v9 = vld [vmem:[%s7487_s6 + $0x88] sm:$0xff]  ;;  %v1248_v5 = vld [vmem:[%s5242_s11 + $0xc0] sm:$0xff]  ;;  %v4052_v0 = vpop.f32.mrf.mxu0  ;;  %7584 = vst [vmem:[#allocation58_spill] sm:$0xff] %v5723_v57 }
 0x196   : > { %1408 = vmatmul.mubr.f32.gmra.mxu1 %v1246_v3  ;;  %4084 = vmatpush3.msra.mxu0 %v1870_v14  ;;  %v5721_v58 = vadd.f32 %v4052_v0, %v5598_v42  ;;  %v1859_v14 = vld [vmem:[%s7487_s6 + $0x48] sm:$0xff]  ;;  %v1537_v3 = vld [vmem:[%s5136_s25 + $0xc0] sm:$0xff]  ;;  %v5735_v0 = vpop.f32.mrf.mxu1 }
 0x197   : > { %1412 = vmatprep.mubr.f32.mxu1 %v1249_v34  ;;  %1921 = vmatpush1.msra.mxu1 %v1862_v23  ;;  %v5729_v34 = vpop.f32.mrf.mxu0  ;;  %v1857_v23 = vld [vmem:[%s7487_s6 + $0x38] sm:$0xff]  ;;  %7586 = vst [vmem:[#allocation60_spill] sm:$0xff] %v5735_v0 }
 0x198   : > { %1697 = vmatmul.mubr.f32.gmra.mxu0 %v1535_v32  ;;  %7583 = vst [vmem:[#allocation57_spill] sm:$0xff] %v5721_v58  ;;  %1922 = vmatprep.subr.mxu1 %v1860_v28  ;;  %7585 = vst [vmem:[#allocation59_spill] sm:$0xff] %v5729_v34  ;;  %v1540_v32 = vld [vmem:[%s5136_s25 + $0xd8] sm:$0xff]  ;;  %v1864_v28 = vld [vmem:[%s7487_s6 + $0x70] sm:$0xff]  ;;  %v5745_v53 = vpop.f32.mrf.mxu1 }
 0x199   : > { %1701 = vmatprep.mubr.f32.mxu0 %v1538_v45  ;;  %4085 = vmatprep.subr.mxu0 %v1867_v9  ;;  %v1250_v45 = vld [vmem:[%s5242_s11 + $0xd0] sm:$0xff]  ;;  %v4055_v58 = vpop.f32.mrf.mxu0  ;;  %7588 = vst [vmem:[#allocation62_spill] sm:$0xff] %v5745_v53  ;;  %v1803_v34 = vld [vmem:[%s7486_s5 + $0x8] sm:$0xff] }
 0x19a   : > { %1413 = vmatmul.mubr.f32.gmra.mxu1 %v1248_v5  ;;  %4086 = vmatpush3.msra.mxu0 %v1867_v9  ;;  %v5743_v55 = vadd.f32 %v4055_v58, %v5598_v42  ;;  %v1856_v9 = vld [vmem:[%s7487_s6 + $0x30] sm:$0xff]  ;;  %v5757_v58 = vpop.f32.mrf.mxu1 }
 0x19b   : > { %1417 = vmatprep.mubr.f32.mxu1 %v1251_v41  ;;  %1923 = vmatpush1.msra.mxu1 %v1859_v14  ;;  %v1539_v5 = vld [vmem:[%s5136_s25 + $0xd0] sm:$0xff]  ;;  %v5751_v41 = vpop.f32.mrf.mxu0  ;;  %v1854_v14 = vld [vmem:[%s7487_s6 + $0x20] sm:$0xff]  ;;  %7590 = vst [vmem:[#allocation64_spill] sm:$0xff] %v5757_v58 }
 0x19c   : > { %1702 = vmatmul.mubr.f32.gmra.mxu0 %v1537_v3  ;;  %7587 = vst [vmem:[#allocation61_spill] sm:$0xff] %v5743_v55  ;;  %1924 = vmatprep.subr.mxu1 %v1857_v23  ;;  %7589 = vst [vmem:[#allocation63_spill] sm:$0xff] %v5751_v41  ;;  %v1542_v3 = vld [vmem:[%s5136_s25 + $0xe8] sm:$0xff]  ;;  %v1861_v23 = vld [vmem:[%s7487_s6 + $0x58] sm:$0xff]  ;;  %v5767_v47 = vpop.f32.mrf.mxu1 }
 0x19d   : > { %1706 = vmatprep.mubr.f32.mxu0 %v1540_v32  ;;  %4087 = vmatprep.subr.mxu0 %v1864_v28  ;;  %v1252_v32 = vld [vmem:[%s5242_s11 + $0xe0] sm:$0xff]  ;;  %v4058_v55 = vpop.f32.mrf.mxu0  ;;  %7592 = vst [vmem:[#allocation66_spill] sm:$0xff] %v5767_v47 }
 0x19e   : > { %1418 = vmatmul.mubr.f32.gmra.mxu1 %v1250_v45  ;;  %4088 = vmatpush3.msra.mxu0 %v1864_v28  ;;  %v5765_v49 = vadd.f32 %v4058_v55, %v5598_v42  ;;  %v1853_v28 = vld [vmem:[%s7487_s6 + $0x18] sm:$0xff]  ;;  %v1541_v45 = vld [vmem:[%s5136_s25 + $0xe0] sm:$0xff] }
 0x19f   : > { %1422 = vmatprep.mubr.f32.mxu1 %v1253_v56  ;;  %1925 = vmatpush1.msra.mxu1 %v1856_v9  ;;  %v5773_v56 = vpop.f32.mrf.mxu0  ;;  %v1851_v9 = vld [vmem:[%s7487_s6 + $0x8] sm:$0xff]  ;;  %v1544_v55 = vld [vmem:[%s5136_s25 + $0xf8] sm:$0xff] }
 0x1a0   : > { %1707 = vmatmul.mubr.f32.gmra.mxu0 %v1539_v5  ;;  %7591 = vst [vmem:[#allocation65_spill] sm:$0xff] %v5765_v49  ;;  %1926 = vmatprep.subr.mxu1 %v1854_v14  ;;  %7593 = vst [vmem:[#allocation67_spill] sm:$0xff] %v5773_v56  ;;  %v5779_v5 = vpop.f32.mrf.mxu1  ;;  %v1858_v14 = vld [vmem:[%s7487_s6 + $0x40] sm:$0xff]  ;;  %v1257_v56 = vld [vmem:[%s5242_s11 + $0x108] sm:$0xff] }
 0x1a1   : > { %1711 = vmatprep.mubr.f32.mxu0 %v1542_v3  ;;  %4089 = vmatprep.subr.mxu0 %v1861_v23  ;;  %7594 = vst [vmem:[#allocation68_spill] sm:$0xff] %v5779_v5  ;;  %v1254_v3 = vld [vmem:[%s5242_s11 + $0xf0] sm:$0xff]  ;;  %v4061_v49 = vpop.f32.mrf.mxu0 }
 0x1a2   : > { %1423 = vmatmul.mubr.f32.gmra.mxu1 %v1252_v32  ;;  %4090 = vmatpush3.msra.mxu0 %v1861_v23  ;;  %v5787_v44 = vadd.f32 %v4061_v49, %v5598_v42  ;;  %v5789_v32 = vpop.f32.mrf.mxu1  ;;  %v1543_v23 = vld [vmem:[%s5136_s25 + $0xf0] sm:$0xff]  ;;  %v1256_v49 = vld [vmem:[%s5242_s11 + $0x100] sm:$0xff] }
 0x1a3   : > { %1427 = vmatprep.mubr.f32.mxu1 %v1255_v51  ;;  %1927 = vmatpush1.msra.mxu1 %v1853_v28  ;;  %7596 = vst [vmem:[#allocation70_spill] sm:$0xff] %v5789_v32  ;;  %v5792_v40 = vpop.f32.mrf.mxu0  ;;  %v1546_v51 = vld [vmem:[%s5136_s25 + $0x108] sm:$0xff] }
 0x1a4   : > { %1712 = vmatmul.mubr.f32.gmra.mxu0 %v1541_v45  ;;  %7595 = vst [vmem:[#allocation69_spill] sm:$0xff] %v5787_v44  ;;  %1928 = vmatprep.subr.mxu1 %v1851_v9  ;;  %7597 = vst [vmem:[#allocation71_spill] sm:$0xff] %v5792_v40  ;;  %v5795_v28 = vpop.f32.mrf.mxu1  ;;  %v1259_v44 = vld [vmem:[%s5242_s11 + $0x118] sm:$0xff]  ;;  %v1545_v40 = vld [vmem:[%s5136_s25 + $0x100] sm:$0xff] }
 0x1a5   : > { %1716 = vmatprep.mubr.f32.mxu0 %v1544_v55  ;;  %4091 = vmatprep.subr.mxu0 %v1858_v14  ;;  %7598 = vst [vmem:[#allocation72_spill] sm:$0xff] %v5795_v28  ;;  %v4064_v45 = vpop.f32.mrf.mxu0 }
 0x1a6   : > { %1428 = vmatmul.mubr.f32.gmra.mxu1 %v1254_v3  ;;  %4092 = vmatpush3.msra.mxu0 %v1858_v14  ;;  %v5800_v9 = vadd.f32 %v4064_v45, %v5598_v42  ;;  %v5802_v55 = vpop.f32.mrf.mxu1  ;;  %v1548_v3 = vld [vmem:[%s5136_s25 + $0x118] sm:$0xff]  ;;  %v1850_v14 = vld [vmem:[%s7487_s6] sm:$0xff] }
 0x1a7   : > { %1432 = vmatprep.mubr.f32.mxu1 %v1257_v56  ;;  %7600 = vst [vmem:[#allocation74_spill] sm:$0xff] %v5802_v55  ;;  %v1258_v56 = vld [vmem:[%s5242_s11 + $0x110] sm:$0xff]  ;;  %1929 = vmatpush1.msra.mxu1 %v1850_v14  ;;  %v1260_v14 = vld [vmem:[%s5242_s11 + $0x120] sm:$0xff] }
 0x1a8   : > { %1717 = vmatmul.mubr.f32.gmra.mxu0 %v1543_v23  ;;  %7599 = vst [vmem:[#allocation73_spill] sm:$0xff] %v5800_v9  ;;  %v5806_v32 = vpop.f32.mrf.mxu1  ;;  %v1261_v23 = vld [vmem:[%s5242_s11 + $0x128] sm:$0xff]  ;;  %v1549_v9 = vld [vmem:[%s5136_s25 + $0x120] sm:$0xff] }
 0x1a9   : > { %1721 = vmatprep.mubr.f32.mxu0 %v1546_v51  ;;  %7601 = vst [vmem:[#allocation75_spill] sm:$0xff] %v5806_v32  ;;  %v1855_v51 = vld [vmem:[%s7487_s6 + $0x28] sm:$0xff]  ;;  %v1551_v32 = vld [vmem:[%s5136_s25 + $0x130] sm:$0xff]  ;;  %v1573_v55 = vld [vmem:[%s5136_s25 + $0x1e0] sm:$0xff] }
 0x1aa   : > { %1433 = vmatmul.mubr.f32.gmra.mxu1 %v1256_v49  ;;  %v1547_v49 = vld [vmem:[%s5136_s25 + $0x110] sm:$0xff]  ;;  %4093 = vmatprep.subr.mxu0 %v1855_v51  ;;  %v5818_v45 = vpop.f32.mrf.mxu1 }
 0x1ab   : > { %1437 = vmatprep.mubr.f32.mxu1 %v1259_v44  ;;  %v1550_v44 = vld [vmem:[%s5136_s25 + $0x128] sm:$0xff]  ;;  %7602 = vst [vmem:[#allocation76_spill] sm:$0xff] %v5818_v45  ;;  %4094 = vmatpush3.msra.mxu0 %v1855_v51  ;;  %v1262_v45 = vld [vmem:[%s5242_s11 + $0x130] sm:$0xff] }
 0x1ac   : > { %1722 = vmatmul.mubr.f32.gmra.mxu0 %v1545_v40  ;;  %v1852_v40 = vld [vmem:[%s7487_s6 + $0x10] sm:$0xff]  ;;  %v5827_v51 = vpop.f32.mrf.mxu1 }
 0x1ad   : > { %1726 = vmatprep.mubr.f32.mxu0 %v1548_v3  ;;  %4095 = vmatprep.subr.mxu0 %v1852_v40  ;;  %v1263_v3 = vld [vmem:[%s5242_s11 + $0x138] sm:$0xff]  ;;  %7603 = vst [vmem:[#allocation77_spill] sm:$0xff] %v5827_v51  ;;  %v1269_v51 = vld [vmem:[%s5242_s11 + $0x168] sm:$0xff] }
 0x1ae   : > { %1438 = vmatmul.mubr.f32.gmra.mxu1 %v1258_v56  ;;  %4096 = vmatpush3.msra.mxu0 %v1852_v40  ;;  %v1552_v56 = vld [vmem:[%s5136_s25 + $0x138] sm:$0xff]  ;;  %v1264_v40 = vld [vmem:[%s5242_s11 + $0x140] sm:$0xff] }
 0x1af   : > { %1442 = vmatprep.mubr.f32.mxu1 %v1261_v23  ;;  %v1265_v23 = vld [vmem:[%s5242_s11 + $0x148] sm:$0xff] }
 0x1b0   : > { %1727 = vmatmul.mubr.f32.gmra.mxu0 %v1547_v49  ;;  %v1554_v49 = vld [vmem:[%s5136_s25 + $0x148] sm:$0xff] }
 0x1b1   : > { %1731 = vmatprep.mubr.f32.mxu0 %v1550_v44  ;;  %v5833_v44 = vpop.f32.mrf.mxu1 }
 0x1b2   : > { %1443 = vmatmul.mubr.f32.gmra.mxu1 %v1260_v14  ;;  %7604 = vst [vmem:[#allocation78_spill] sm:$0xff] %v5833_v44  ;;  %v1267_v14 = vld [vmem:[%s5242_s11 + $0x158] sm:$0xff] }
 0x1b3   : > { %1447 = vmatprep.mubr.f32.mxu1 %v1263_v3  ;;  %v1553_v3 = vld [vmem:[%s5136_s25 + $0x140] sm:$0xff]  ;;  %v1271_v44 = vld [vmem:[%s5242_s11 + $0x178] sm:$0xff] }
 0x1b4   : > { %1732 = vmatmul.mubr.f32.gmra.mxu0 %v1549_v9  ;;  %v1556_v9 = vld [vmem:[%s5136_s25 + $0x158] sm:$0xff] }
 0x1b5   : > { %1736 = vmatprep.mubr.f32.mxu0 %v1552_v56  ;;  %v5839_v56 = vpop.f32.mrf.mxu1 }
 0x1b6   : > { %1448 = vmatmul.mubr.f32.gmra.mxu1 %v1262_v45  ;;  %7605 = vst [vmem:[#allocation79_spill] sm:$0xff] %v5839_v56  ;;  %v1266_v45 = vld [vmem:[%s5242_s11 + $0x150] sm:$0xff]  ;;  %v1273_v56 = vld [vmem:[%s5242_s11 + $0x188] sm:$0xff] }
 0x1b7   : > { %1452 = vmatprep.mubr.f32.mxu1 %v1265_v23  ;;  %v1555_v23 = vld [vmem:[%s5136_s25 + $0x150] sm:$0xff] }
 0x1b8   : > { %1737 = vmatmul.mubr.f32.gmra.mxu0 %v1551_v32  ;;  %v1558_v32 = vld [vmem:[%s5136_s25 + $0x168] sm:$0xff] }
 0x1b9   : > { %1741 = vmatprep.mubr.f32.mxu0 %v1554_v49  ;;  %v5845_v49 = vpop.f32.mrf.mxu1 }
 0x1ba   : > { %1453 = vmatmul.mubr.f32.gmra.mxu1 %v1264_v40  ;;  %7606 = vst [vmem:[#allocation80_spill] sm:$0xff] %v5845_v49  ;;  %v1268_v40 = vld [vmem:[%s5242_s11 + $0x160] sm:$0xff]  ;;  %v1275_v49 = vld [vmem:[%s5242_s11 + $0x198] sm:$0xff] }
 0x1bb   : > { %1457 = vmatprep.mubr.f32.mxu1 %v1267_v14  ;;  %v1557_v14 = vld [vmem:[%s5136_s25 + $0x160] sm:$0xff] }
 0x1bc   : > { %1742 = vmatmul.mubr.f32.gmra.mxu0 %v1553_v3  ;;  %v1560_v3 = vld [vmem:[%s5136_s25 + $0x178] sm:$0xff] }
 0x1bd   : > { %1746 = vmatprep.mubr.f32.mxu0 %v1556_v9  ;;  %v5851_v9 = vpop.f32.mrf.mxu1 }
 0x1be   : > { %1458 = vmatmul.mubr.f32.gmra.mxu1 %v1266_v45  ;;  %7607 = vst [vmem:[#allocation81_spill] sm:$0xff] %v5851_v9  ;;  %v1270_v45 = vld [vmem:[%s5242_s11 + $0x170] sm:$0xff]  ;;  %v1277_v9 = vld [vmem:[%s5242_s11 + $0x1a8] sm:$0xff] }
 0x1bf   : > { %1462 = vmatprep.mubr.f32.mxu1 %v1269_v51  ;;  %v1559_v51 = vld [vmem:[%s5136_s25 + $0x170] sm:$0xff] }
 0x1c0   : > { %1747 = vmatmul.mubr.f32.gmra.mxu0 %v1555_v23  ;;  %v1562_v23 = vld [vmem:[%s5136_s25 + $0x188] sm:$0xff] }
 0x1c1   : > { %1751 = vmatprep.mubr.f32.mxu0 %v1558_v32  ;;  %v5857_v32 = vpop.f32.mrf.mxu1 }
 0x1c2   : > { %1463 = vmatmul.mubr.f32.gmra.mxu1 %v1268_v40  ;;  %7608 = vst [vmem:[#allocation82_spill] sm:$0xff] %v5857_v32  ;;  %v1272_v40 = vld [vmem:[%s5242_s11 + $0x180] sm:$0xff]  ;;  %v1279_v32 = vld [vmem:[%s5242_s11 + $0x1b8] sm:$0xff] }
 0x1c3   : > { %1467 = vmatprep.mubr.f32.mxu1 %v1271_v44  ;;  %v1561_v44 = vld [vmem:[%s5136_s25 + $0x180] sm:$0xff] }
 0x1c4   : > { %1752 = vmatmul.mubr.f32.gmra.mxu0 %v1557_v14  ;;  %v1564_v14 = vld [vmem:[%s5136_s25 + $0x198] sm:$0xff] }
 0x1c5   : > { %1756 = vmatprep.mubr.f32.mxu0 %v1560_v3  ;;  %v5863_v3 = vpop.f32.mrf.mxu1 }
 0x1c6   : > { %1468 = vmatmul.mubr.f32.gmra.mxu1 %v1270_v45  ;;  %7609 = vst [vmem:[#allocation83_spill] sm:$0xff] %v5863_v3  ;;  %v1274_v45 = vld [vmem:[%s5242_s11 + $0x190] sm:$0xff]  ;;  %v1281_v3 = vld [vmem:[%s5242_s11 + $0x1c8] sm:$0xff] }
 0x1c7   : > { %1472 = vmatprep.mubr.f32.mxu1 %v1273_v56  ;;  %v1563_v56 = vld [vmem:[%s5136_s25 + $0x190] sm:$0xff] }
 0x1c8   : > { %1757 = vmatmul.mubr.f32.gmra.mxu0 %v1559_v51  ;;  %v1566_v51 = vld [vmem:[%s5136_s25 + $0x1a8] sm:$0xff] }
 0x1c9   : > { %1761 = vmatprep.mubr.f32.mxu0 %v1562_v23  ;;  %v5869_v23 = vpop.f32.mrf.mxu1 }
 0x1ca   : > { %1473 = vmatmul.mubr.f32.gmra.mxu1 %v1272_v40  ;;  %7610 = vst [vmem:[#allocation84_spill] sm:$0xff] %v5869_v23  ;;  %v1276_v40 = vld [vmem:[%s5242_s11 + $0x1a0] sm:$0xff]  ;;  %v1283_v23 = vld [vmem:[%s5242_s11 + $0x1d8] sm:$0xff] }
 0x1cb   : > { %1477 = vmatprep.mubr.f32.mxu1 %v1275_v49  ;;  %v1565_v49 = vld [vmem:[%s5136_s25 + $0x1a0] sm:$0xff] }
 0x1cc   : > { %1762 = vmatmul.mubr.f32.gmra.mxu0 %v1561_v44  ;;  %v1568_v44 = vld [vmem:[%s5136_s25 + $0x1b8] sm:$0xff] }
 0x1cd   : > { %1766 = vmatprep.mubr.f32.mxu0 %v1564_v14  ;;  %v5875_v14 = vpop.f32.mrf.mxu1 }
 0x1ce   : > { %1478 = vmatmul.mubr.f32.gmra.mxu1 %v1274_v45  ;;  %7611 = vst [vmem:[#allocation85_spill] sm:$0xff] %v5875_v14  ;;  %v1278_v45 = vld [vmem:[%s5242_s11 + $0x1b0] sm:$0xff]  ;;  %v1285_v14 = vld [vmem:[%s5242_s11 + $0x1e8] sm:$0xff] }
 0x1cf   : > { %1482 = vmatprep.mubr.f32.mxu1 %v1277_v9  ;;  %v1567_v9 = vld [vmem:[%s5136_s25 + $0x1b0] sm:$0xff] }
 0x1d0   : > { %1767 = vmatmul.mubr.f32.gmra.mxu0 %v1563_v56  ;;  %v1570_v56 = vld [vmem:[%s5136_s25 + $0x1c8] sm:$0xff] }
 0x1d1   : > { %1771 = vmatprep.mubr.f32.mxu0 %v1566_v51  ;;  %v5881_v51 = vpop.f32.mrf.mxu1 }
 0x1d2   : > { %1483 = vmatmul.mubr.f32.gmra.mxu1 %v1276_v40  ;;  %7612 = vst [vmem:[#allocation86_spill] sm:$0xff] %v5881_v51  ;;  %v1280_v40 = vld [vmem:[%s5242_s11 + $0x1c0] sm:$0xff]  ;;  %v1574_v51 = vld [vmem:[%s5136_s25 + $0x1e8] sm:$0xff] }
 0x1d3   : > { %1487 = vmatprep.mubr.f32.mxu1 %v1279_v32  ;;  %v1569_v32 = vld [vmem:[%s5136_s25 + $0x1c0] sm:$0xff] }
 0x1d4   : > { %1772 = vmatmul.mubr.f32.gmra.mxu0 %v1565_v49  ;;  %v1572_v49 = vld [vmem:[%s5136_s25 + $0x1d8] sm:$0xff] }
 0x1d5   : > { %1776 = vmatprep.mubr.f32.mxu0 %v1568_v44  ;;  %v5887_v44 = vpop.f32.mrf.mxu1 }
 0x1d6   : > { %1488 = vmatmul.mubr.f32.gmra.mxu1 %v1278_v45  ;;  %7613 = vst [vmem:[#allocation87_spill] sm:$0xff] %v5887_v44  ;;  %v1282_v45 = vld [vmem:[%s5242_s11 + $0x1d0] sm:$0xff]  ;;  %v1576_v44 = vld [vmem:[%s5136_s25 + $0x1f8] sm:$0xff] }
 0x1d7   : > { %1492 = vmatprep.mubr.f32.mxu1 %v1281_v3  ;;  %v1571_v3 = vld [vmem:[%s5136_s25 + $0x1d0] sm:$0xff] }
 0x1d8   : > { %1777 = vmatmul.mubr.f32.gmra.mxu0 %v1567_v9  ;;  %v5893_v9 = vpop.f32.mrf.mxu1 }
 0x1d9   : > { %1781 = vmatprep.mubr.f32.mxu0 %v1570_v56  ;;  %7614 = vst [vmem:[#allocation88_spill] sm:$0xff] %v5893_v9  ;;  %v1284_v56 = vld [vmem:[%s5242_s11 + $0x1e0] sm:$0xff] }
 0x1da   : > { %1493 = vmatmul.mubr.f32.gmra.mxu1 %v1280_v40  ;;  %v1287_v40 = vld [vmem:[%s5242_s11 + $0x1f8] sm:$0xff] }
 0x1db   : > { %1497 = vmatprep.mubr.f32.mxu1 %v1283_v23  ;;  %v5899_v23 = vpop.f32.mrf.mxu1 }
 0x1dc   : > { %1782 = vmatmul.mubr.f32.gmra.mxu0 %v1569_v32  ;;  %7615 = vst [vmem:[#allocation89_spill] sm:$0xff] %v5899_v23  ;;  %v1286_v32 = vld [vmem:[%s5242_s11 + $0x1f0] sm:$0xff] }
 0x1dd   : > { %1786 = vmatprep.mubr.f32.mxu0 %v1572_v49  ;;  %v1575_v49 = vld [vmem:[%s5136_s25 + $0x1f0] sm:$0xff]  ;;  %v5903_v28 = vpop.f32.mrf.mxu1 }
 0x1de   : > { %1498 = vmatmul.mubr.f32.gmra.mxu1 %v1282_v45  ;;  %7616 = vst [vmem:[#allocation90_spill] sm:$0xff] %v5903_v28 }
 0x1df   : > { %1502 = vmatprep.mubr.f32.mxu1 %v1285_v14  ;;  %v5906_v14 = vpop.f32.mrf.mxu1 }
 0x1e0   : > { %1787 = vmatmul.mubr.f32.gmra.mxu0 %v1571_v3  ;;  %7617 = vst [vmem:[#allocation91_spill] sm:$0xff] %v5906_v14  ;;  %v1849_v14 = vld [vmem:[%s7486_s5 + $0x178] sm:$0xff] }
 0x1e1   : > { %1791 = vmatprep.mubr.f32.mxu0 %v1574_v51  ;;  %v1848_v51 = vld [vmem:[%s7486_s5 + $0x170] sm:$0xff]  ;;  %v5911_v45 = vpop.f32.mrf.mxu1  ;;  %4145 = vmatprep.subr.mxu1 %v1849_v14 }
 0x1e2   : > { %1503 = vmatmul.mubr.f32.gmra.mxu1 %v1284_v56  ;;  %7618 = vst [vmem:[#allocation92_spill] sm:$0xff] %v5911_v45  ;;  %2380 = vmatprep.subr.mxu0 %v1848_v51 }
 0x1e3   : > { %1507 = vmatprep.mubr.f32.mxu1 %v1287_v40  ;;  %v5913_v3 = vpop.f32.mrf.mxu1 }
 0x1e4   : > { %1792 = vmatmul.mubr.f32.gmra.mxu0 %v1573_v55  ;;  %7619 = vst [vmem:[#allocation93_spill] sm:$0xff] %v5913_v3 }
 0x1e5   : > { %1796 = vmatprep.mubr.f32.mxu0 %v1576_v44  ;;  %v5915_v55 = vpop.f32.mrf.mxu1 }
 0x1e6   : > { %1508 = vmatmul.mubr.f32.gmra.mxu1 %v1286_v32  ;;  %7620 = vst [vmem:[#allocation94_spill] sm:$0xff] %v5915_v55 }
 0x1e7   : > { %1962 = vmatprep.mubr.f32.mxu1 %v7557_v4  ;;  %v5917_v44 = vpop.f32.mrf.mxu1 }
 0x1e8   : > { %1797 = vmatmul.mubr.f32.gmra.mxu0 %v1575_v49  ;;  %7621 = vst [vmem:[#allocation95_spill] sm:$0xff] %v5917_v44 }
 0x1e9   : > { %v5919_v56 = vpop.f32.mrf.mxu1 }
 0x1ea   : > { %7622 = vst [vmem:[#allocation96_spill] sm:$0xff] %v5919_v56 }
 0x1eb   : > { %v5921_v40 = vpop.f32.mrf.mxu1 }
 0x1ec   : > { %7623 = vst [vmem:[#allocation97_spill] sm:$0xff] %v5921_v40 }
 0x1ed   : > { %v5923_v32 = vpop.f32.mrf.mxu1 }
 0x1ee   : > { %7624 = vst [vmem:[#allocation98_spill] sm:$0xff] %v5923_v32 }
 0x1ef   : > { %v5925_v49 = vpop.f32.mrf.mxu1 }
 0x1f0   : > { %7625 = vst [vmem:[#allocation99_spill] sm:$0xff] %v5925_v49  ;;  %v5944_v49 = vpop.f32.mrf.mxu0 }
 0x1f1   : > { %v5930_v51 = vpop.f32.mrf.mxu1  ;;  %7633 = vst [vmem:[#allocation107_spill] sm:$0xff] %v5944_v49  ;;  %v1847_v49 = vld [vmem:[%s7486_s5 + $0x168] sm:$0xff] }
 0x1f2   : > { %7626 = vst [vmem:[#allocation100_spill] sm:$0xff] %v5930_v51 }
 0x1f3   : > { %v5932_v3 = vpop.f32.mrf.mxu1 }
 0x1f4   : > { %7627 = vst [vmem:[#allocation101_spill] sm:$0xff] %v5932_v3  ;;  %v1846_v3 = vld [vmem:[%s7486_s5 + $0x160] sm:$0xff] }
 0x1f5   : > { %v5934_v55 = vpop.f32.mrf.mxu1 }
 0x1f6   : > { %7628 = vst [vmem:[#allocation102_spill] sm:$0xff] %v5934_v55 }
 0x1f7   : > { %v5936_v44 = vpop.f32.mrf.mxu1 }
 0x1f8   : > { %7629 = vst [vmem:[#allocation103_spill] sm:$0xff] %v5936_v44 }
 0x1f9   : > { %v5938_v56 = vpop.f32.mrf.mxu1 }
 0x1fa   : > { %7630 = vst [vmem:[#allocation104_spill] sm:$0xff] %v5938_v56 }
 0x1fb   : > { %v5940_v40 = vpop.f32.mrf.mxu1 }
 0x1fc   : > { %7631 = vst [vmem:[#allocation105_spill] sm:$0xff] %v5940_v40 }
 0x1fd   : > { %v5942_v32 = vpop.f32.mrf.mxu1 }
 0x1fe   : > { %7632 = vst [vmem:[#allocation106_spill] sm:$0xff] %v5942_v32 }
 0x22a   : > { %v5946_v45 = vpop.f32.mrf.mxu1 }
 0x22c   : > { %v1643_v28 = vpop.f32.mrf.mxu0  ;;  %v1356_v23 = vpop.f32.mrf.mxu1 }
 0x22d   : > { %1963 = vmatmul.mubr.f32.vlgmr.msra.gmra.mxu1 %v1643_v28  ;;  %4097 = vmatprep.mubr.f32.mxu0 %v1643_v28  ;;  %v1845_v23 = vld [vmem:[%s7486_s5 + $0x158] sm:$0xff]  ;;  %v1843_v28 = vld [vmem:[%s7486_s5 + $0x148] sm:$0xff] }
 0x22e   : > { %v1645_v55 = vpop.f32.mrf.mxu0  ;;  %1968 = vmatprep.mubr.f32.mxu1 %v7557_v4  ;;  %v5952_v56 = vpop.f32.mrf.mxu1  ;;  %4146 = vmatpush3.msra.mxu1 %v1849_v14  ;;  %v1844_v14 = vld [vmem:[%s7486_s5 + $0x150] sm:$0xff] }
 0x22f   : > { %4147 = vmatprep.subr.mxu1 %v1846_v3 }
 0x230   : > { %v1648_v32 = vpop.f32.mrf.mxu0  ;;  %v1361_v40 = vpop.f32.mrf.mxu1  ;;  %4148 = vmatpush3.msra.mxu1 %v1846_v3  ;;  %v1842_v3 = vld [vmem:[%s7486_s5 + $0x140] sm:$0xff] }
 0x231   : > { %1969 = vmatmul.mubr.f32.gmra.mxu1 %v1648_v32  ;;  %4098 = vmatmul.mubr.f32.vlgmr.msra.gmra.mxu0 %v1648_v32  ;;  %v1841_v32 = vld [vmem:[%s7486_s5 + $0x138] sm:$0xff] }
 0x232   : > { %v1650_v55 = vpop.f32.mrf.mxu0  ;;  %1974 = vmatprep.mubr.f32.mxu1 %v7557_v4  ;;  %2381 = vmatpush1.msra.mxu0 %v1847_v49  ;;  %v5967_v44 = vpop.f32.mrf.mxu1  ;;  %v1840_v49 = vld [vmem:[%s7486_s5 + $0x130] sm:$0xff] }
 0x233   : > { %2382 = vmatprep.subr.mxu0 %v1845_v23  ;;  %4149 = vmatprep.subr.mxu1 %v1843_v28  ;;  %v1839_v23 = vld [vmem:[%s7486_s5 + $0x128] sm:$0xff] }
 0x234   : > { %v1653_v40 = vpop.f32.mrf.mxu0  ;;  %2383 = vmatpush1.msra.mxu0 %v1844_v14  ;;  %v1366_v51 = vpop.f32.mrf.mxu1  ;;  %4150 = vmatpush3.msra.mxu1 %v1843_v28  ;;  %v1838_v28 = vld [vmem:[%s7486_s5 + $0x120] sm:$0xff] }
 0x235   : > { %1975 = vmatmul.mubr.f32.gmra.mxu1 %v1653_v40  ;;  %4100 = vmatprep.mubr.f32.mxu0 %v1653_v40  ;;  %v1836_v40 = vld [vmem:[%s7486_s5 + $0x110] sm:$0xff] }
 0x236   : > { %v1655_v55 = vpop.f32.mrf.mxu0  ;;  %1980 = vmatprep.mubr.f32.mxu1 %v7557_v4  ;;  %2384 = vmatprep.subr.mxu0 %v1842_v3  ;;  %v5982_v51 = vpop.f32.mrf.mxu1  ;;  %v1837_v3 = vld [vmem:[%s7486_s5 + $0x118] sm:$0xff] }
 0x237   : > { %2385 = vmatpush1.msra.mxu0 %v1841_v32  ;;  %4151 = vmatprep.subr.mxu1 %v1840_v49  ;;  %v1835_v32 = vld [vmem:[%s7486_s5 + $0x108] sm:$0xff] }
 0x238   : > { %v1658_v14 = vpop.f32.mrf.mxu0  ;;  %2386 = vmatprep.subr.mxu0 %v1839_v23  ;;  %v1371_v9 = vpop.f32.mrf.mxu1  ;;  %4152 = vmatpush3.msra.mxu1 %v1840_v49  ;;  %v1833_v49 = vld [vmem:[%s7486_s5 + $0xf8] sm:$0xff] }
 0x239   : > { %1981 = vmatmul.mubr.f32.gmra.mxu1 %v1658_v14  ;;  %4101 = vmatmul.mubr.f32.gmra.mxu0 %v1658_v14  ;;  %v1832_v14 = vld [vmem:[%s7486_s5 + $0xf0] sm:$0xff] }
 0x23a   : > { %v1660_v55 = vpop.f32.mrf.mxu0  ;;  %1986 = vmatprep.mubr.f32.mxu1 %v7557_v4  ;;  %2387 = vmatpush1.msra.mxu0 %v1838_v28  ;;  %v5997_v9 = vpop.f32.mrf.mxu1  ;;  %v1834_v28 = vld [vmem:[%s7486_s5 + $0x100] sm:$0xff] }
 0x23b   : > { %2388 = vmatprep.subr.mxu0 %v1836_v40  ;;  %4153 = vmatprep.subr.mxu1 %v1837_v3  ;;  %v1830_v40 = vld [vmem:[%s7486_s5 + $0xe0] sm:$0xff] }
 0x23c   : > { %v1663_v23 = vpop.f32.mrf.mxu0  ;;  %v1376_v5 = vpop.f32.mrf.mxu1  ;;  %2389 = vmatpush1.msra.mxu0 %v1835_v32  ;;  %4154 = vmatpush3.msra.mxu1 %v1837_v3  ;;  %v1829_v3 = vld [vmem:[%s7486_s5 + $0xd8] sm:$0xff] }
 0x23d   : > { %1987 = vmatmul.mubr.f32.gmra.mxu1 %v1663_v23  ;;  %4103 = vmatprep.mubr.f32.mxu0 %v1663_v23  ;;  %v1827_v23 = vld [vmem:[%s7486_s5 + $0xc8] sm:$0xff] }
 0x23e   : > { %v1665_v55 = vpop.f32.mrf.mxu0  ;;  %1992 = vmatprep.mubr.f32.mxu1 %v7557_v4  ;;  %v6012_v5 = vpop.f32.mrf.mxu1  ;;  %2390 = vmatprep.subr.mxu0 %v1833_v49  ;;  %v1826_v49 = vld [vmem:[%s7486_s5 + $0xc0] sm:$0xff] }
 0x23f   : > { %2391 = vmatpush1.msra.mxu0 %v1832_v14  ;;  %4155 = vmatprep.subr.mxu1 %v1834_v28  ;;  %v1831_v55 = vld [vmem:[%s7486_s5 + $0xe8] sm:$0xff] }
 0x240   : > { %v1668_v32 = vpop.f32.mrf.mxu0  ;;  %v1381_v47 = vpop.f32.mrf.mxu1  ;;  %2392 = vmatprep.subr.mxu0 %v1830_v40  ;;  %4156 = vmatpush3.msra.mxu1 %v1834_v28  ;;  %v1824_v28 = vld [vmem:[%s7486_s5 + $0xb0] sm:$0xff] }
 0x241   : > { %1993 = vmatmul.mubr.f32.gmra.mxu1 %v1668_v32  ;;  %4104 = vmatmul.mubr.f32.gmra.mxu0 %v1668_v32  ;;  %v1823_v32 = vld [vmem:[%s7486_s5 + $0xa8] sm:$0xff] }
 0x242   : > { %v1670_v14 = vpop.f32.mrf.mxu0  ;;  %1998 = vmatprep.mubr.f32.mxu1 %v7557_v4  ;;  %v6027_v47 = vpop.f32.mrf.mxu1  ;;  %2393 = vmatpush1.msra.mxu0 %v1829_v3  ;;  %v1821_v3 = vld [vmem:[%s7486_s5 + $0x98] sm:$0xff] }
 0x243   : > { %2394 = vmatprep.subr.mxu0 %v1827_v23  ;;  %4157 = vmatprep.subr.mxu1 %v1831_v55  ;;  %v1828_v14 = vld [vmem:[%s7486_s5 + $0xd0] sm:$0xff] }
 0x244   : > { %v1673_v40 = vpop.f32.mrf.mxu0  ;;  %v1386_v58 = vpop.f32.mrf.mxu1  ;;  %2395 = vmatpush1.msra.mxu0 %v1826_v49  ;;  %4158 = vmatpush3.msra.mxu1 %v1831_v55  ;;  %v1820_v55 = vld [vmem:[%s7486_s5 + $0x90] sm:$0xff] }
 0x245   : > { %1999 = vmatmul.mubr.f32.gmra.mxu1 %v1673_v40  ;;  %4106 = vmatprep.mubr.f32.mxu0 %v1673_v40  ;;  %v1818_v40 = vld [vmem:[%s7486_s5 + $0x80] sm:$0xff] }
 0x246   : > { %v1675_v23 = vpop.f32.mrf.mxu0  ;;  %2004 = vmatprep.mubr.f32.mxu1 %v7557_v4  ;;  %v6042_v58 = vpop.f32.mrf.mxu1  ;;  %2396 = vmatprep.subr.mxu0 %v1824_v28  ;;  %v1817_v28 = vld [vmem:[%s7486_s5 + $0x78] sm:$0xff] }
 0x247   : > { %2397 = vmatpush1.msra.mxu0 %v1823_v32  ;;  %4159 = vmatprep.subr.mxu1 %v1828_v14  ;;  %v1825_v23 = vld [vmem:[%s7486_s5 + $0xb8] sm:$0xff] }
 0x248   : > { %v1678_v49 = vpop.f32.mrf.mxu0  ;;  %v1391_v53 = vpop.f32.mrf.mxu1  ;;  %2398 = vmatprep.subr.mxu0 %v1821_v3  ;;  %4160 = vmatpush3.msra.mxu1 %v1828_v14  ;;  %v1815_v14 = vld [vmem:[%s7486_s5 + $0x68] sm:$0xff] }
 0x249   : > { %2005 = vmatmul.mubr.f32.gmra.mxu1 %v1678_v49  ;;  %4107 = vmatmul.mubr.f32.gmra.mxu0 %v1678_v49  ;;  %v1814_v49 = vld [vmem:[%s7486_s5 + $0x60] sm:$0xff] }
 0x24a   : > { %v1680_v32 = vpop.f32.mrf.mxu0  ;;  %2010 = vmatprep.mubr.f32.mxu1 %v7557_v4  ;;  %v6057_v53 = vpop.f32.mrf.mxu1  ;;  %2399 = vmatpush1.msra.mxu0 %v1820_v55  ;;  %v1812_v55 = vld [vmem:[%s7486_s5 + $0x50] sm:$0xff] }
 0x24b   : > { %2400 = vmatprep.subr.mxu0 %v1818_v40  ;;  %4161 = vmatprep.subr.mxu1 %v1825_v23  ;;  %v1822_v32 = vld [vmem:[%s7486_s5 + $0xa0] sm:$0xff] }
 0x24c   : > { %v1683_v3 = vpop.f32.mrf.mxu0  ;;  %v1396_v41 = vpop.f32.mrf.mxu1  ;;  %2401 = vmatpush1.msra.mxu0 %v1817_v28  ;;  %4162 = vmatpush3.msra.mxu1 %v1825_v23  ;;  %v1811_v23 = vld [vmem:[%s7486_s5 + $0x48] sm:$0xff] }
 0x24d   : > { %2011 = vmatmul.mubr.f32.gmra.mxu1 %v1683_v3  ;;  %4109 = vmatprep.mubr.f32.mxu0 %v1683_v3  ;;  %v1809_v3 = vld [vmem:[%s7486_s5 + $0x38] sm:$0xff] }
 0x24e   : > { %v1685_v40 = vpop.f32.mrf.mxu0  ;;  %2016 = vmatprep.mubr.f32.mxu1 %v7557_v4  ;;  %v6072_v41 = vpop.f32.mrf.mxu1  ;;  %2402 = vmatprep.subr.mxu0 %v1815_v14  ;;  %v1808_v14 = vld [vmem:[%s7486_s5 + $0x30] sm:$0xff] }
 0x24f   : > { %2403 = vmatpush1.msra.mxu0 %v1814_v49  ;;  %4163 = vmatprep.subr.mxu1 %v1822_v32  ;;  %v1819_v40 = vld [vmem:[%s7486_s5 + $0x88] sm:$0xff] }
 0x250   : > { %v1688_v28 = vpop.f32.mrf.mxu0  ;;  %v1401_v0 = vpop.f32.mrf.mxu1  ;;  %2404 = vmatprep.subr.mxu0 %v1812_v55  ;;  %4164 = vmatpush3.msra.mxu1 %v1822_v32  ;;  %v1816_v32 = vld [vmem:[%s7486_s5 + $0x70] sm:$0xff] }
 0x251   : > { %2017 = vmatmul.mubr.f32.gmra.mxu1 %v1688_v28  ;;  %4110 = vmatmul.mubr.f32.gmra.mxu0 %v1688_v28  ;;  %v1806_v28 = vld [vmem:[%s7486_s5 + $0x20] sm:$0xff] }
 0x252   : > { %v1690_v49 = vpop.f32.mrf.mxu0  ;;  %2022 = vmatprep.mubr.f32.mxu1 %v7557_v4  ;;  %v6087_v0 = vpop.f32.mrf.mxu1  ;;  %2405 = vmatpush1.msra.mxu0 %v1811_v23  ;;  %v1813_v23 = vld [vmem:[%s7486_s5 + $0x58] sm:$0xff] }
 0x253   : > { %2406 = vmatprep.subr.mxu0 %v1809_v3  ;;  %4165 = vmatprep.subr.mxu1 %v1819_v40  ;;  %v1805_v3 = vld [vmem:[%s7486_s5 + $0x18] sm:$0xff] }
 0x254   : > { %v1693_v55 = vpop.f32.mrf.mxu0  ;;  %v1406_v57 = vpop.f32.mrf.mxu1  ;;  %2407 = vmatpush1.msra.mxu0 %v1808_v14  ;;  %4166 = vmatpush3.msra.mxu1 %v1819_v40 }
 0x255   : > { %2023 = vmatmul.mubr.f32.gmra.mxu1 %v1693_v55  ;;  %4112 = vmatprep.mubr.f32.mxu0 %v1693_v55  ;;  %v1810_v55 = vld [vmem:[%s7486_s5 + $0x40] sm:$0xff] }
 0x256   : > { %v1695_v49 = vpop.f32.mrf.mxu0  ;;  %2028 = vmatprep.mubr.f32.mxu1 %v7557_v4  ;;  %v6102_v57 = vpop.f32.mrf.mxu1  ;;  %4167 = vmatprep.subr.mxu1 %v1816_v32 }
 0x257   : > { %4168 = vmatpush3.msra.mxu1 %v1816_v32  ;;  %2408 = vmatprep.subr.mxu0 %v1806_v28  ;;  %v1802_v49 = vld [vmem:[%s7486_s5] sm:$0xff] }
 0x258   : > { %v1698_v40 = vpop.f32.mrf.mxu0  ;;  %v1411_v14 = vpop.f32.mrf.mxu1  ;;  %4169 = vmatprep.subr.mxu1 %v1813_v23  ;;  %2409 = vmatpush1.msra.mxu0 %v1805_v3  ;;  %v1807_v3 = vld [vmem:[%s7486_s5 + $0x28] sm:$0xff] }
 0x259   : > { %2029 = vmatmul.mubr.f32.gmra.mxu1 %v1698_v40  ;;  %4113 = vmatmul.mubr.f32.gmra.mxu0 %v1698_v40  ;;  %v1804_v40 = vld [vmem:[%s7486_s5 + $0x10] sm:$0xff] }
 0x25a   : > { %v1700_v32 = vpop.f32.mrf.mxu0  ;;  %2034 = vmatprep.mubr.f32.mxu1 %v7557_v4  ;;  %v6114_v28 = vpop.f32.mrf.mxu1  ;;  %4170 = vmatpush3.msra.mxu1 %v1813_v23 }
 0x25b   : > { %4171 = vmatprep.subr.mxu1 %v1810_v55  ;;  %2410 = vmatprep.subr.mxu0 %v1803_v34 }
 0x25c   : > { %v1703_v14 = vpop.f32.mrf.mxu0  ;;  %v1416_v17 = vpop.f32.mrf.mxu1  ;;  %4172 = vmatpush3.msra.mxu1 %v1810_v55  ;;  %2411 = vmatpush1.msra.mxu0 %v1802_v49 }
 0x25d   : > { %2035 = vmatmul.mubr.f32.gmra.mxu1 %v1703_v14  ;;  %4115 = vmatprep.mubr.f32.mxu0 %v1703_v14 }
 0x25e   : > { %v1705_v32 = vpop.f32.mrf.mxu0  ;;  %2040 = vmatprep.mubr.f32.mxu1 %v7557_v4  ;;  %v6123_v23 = vpop.f32.mrf.mxu1  ;;  %4173 = vmatprep.subr.mxu1 %v1807_v3 }
 0x25f   : > { %4174 = vmatpush3.msra.mxu1 %v1807_v3 }
 0x260   : > { %v1708_v34 = vpop.f32.mrf.mxu0  ;;  %v1421_v59 = vpop.f32.mrf.mxu1  ;;  %4175 = vmatprep.subr.mxu1 %v1804_v40 }
 0x261   : > { %2041 = vmatmul.mubr.f32.gmra.mxu1 %v1708_v34  ;;  %4116 = vmatmul.mubr.f32.gmra.mxu0 %v1708_v34 }
 0x262   : > { %v1710_v17 = vpop.f32.mrf.mxu0  ;;  %2046 = vmatprep.mubr.f32.mxu1 %v7557_v4  ;;  %v6126_v55 = vpop.f32.mrf.mxu1  ;;  %4176 = vmatpush3.msra.mxu1 %v1804_v40 }
 0x264   : > { %v1713_v49 = vpop.f32.mrf.mxu0  ;;  %v1426_v14 = vpop.f32.mrf.mxu1 }
 0x265   : > { %2047 = vmatmul.mubr.f32.gmra.mxu1 %v1713_v49  ;;  %4118 = vmatprep.mubr.f32.mxu0 %v1713_v49 }
 0x266   : > { %v1715_v32 = vpop.f32.mrf.mxu0  ;;  %2052 = vmatprep.mubr.f32.mxu1 %v7557_v4  ;;  %v6129_v15 = vpop.f32.mrf.mxu1 }
 0x268   : > { %v1718_v3 = vpop.f32.mrf.mxu0  ;;  %v1431_v59 = vpop.f32.mrf.mxu1 }
 0x269   : > { %2053 = vmatmul.mubr.f32.gmra.mxu1 %v1718_v3  ;;  %4119 = vmatmul.mubr.f32.gmra.mxu0 %v1718_v3 }
 0x26a   : > { %v1720_v34 = vpop.f32.mrf.mxu0  ;;  %2058 = vmatprep.mubr.f32.mxu1 %v7557_v4  ;;  %v6132_v17 = vpop.f32.mrf.mxu1 }
 0x26c   : > { %v1723_v63 = vpop.f32.mrf.mxu0  ;;  %v1436_v40 = vpop.f32.mrf.mxu1 }
 0x26d   : > { %2059 = vmatmul.mubr.f32.gmra.mxu1 %v1723_v63  ;;  %4121 = vmatprep.mubr.f32.mxu0 %v1723_v63 }
 0x26e   : > { %v1725_v14 = vpop.f32.mrf.mxu0  ;;  %2064 = vmatprep.mubr.f32.mxu1 %v7557_v4  ;;  %v6135_v49 = vpop.f32.mrf.mxu1 }
 0x270   : > { %v1728_v32 = vpop.f32.mrf.mxu0  ;;  %v1441_v12 = vpop.f32.mrf.mxu1 }
 0x271   : > { %2065 = vmatmul.mubr.f32.gmra.mxu1 %v1728_v32  ;;  %4122 = vmatmul.mubr.f32.gmra.mxu0 %v1728_v32 }
 0x272   : > { %v1730_v59 = vpop.f32.mrf.mxu0  ;;  %2070 = vmatprep.mubr.f32.mxu1 %v7557_v4  ;;  %v6138_v3 = vpop.f32.mrf.mxu1 }
 0x274   : > { %v1733_v34 = vpop.f32.mrf.mxu0  ;;  %v1446_v26 = vpop.f32.mrf.mxu1 }
 0x275   : > { %2071 = vmatmul.mubr.f32.gmra.mxu1 %v1733_v34  ;;  %4124 = vmatprep.mubr.f32.mxu0 %v1733_v34 }
 0x276   : > { %v1735_v40 = vpop.f32.mrf.mxu0  ;;  %2076 = vmatprep.mubr.f32.mxu1 %v7557_v4  ;;  %v6141_v63 = vpop.f32.mrf.mxu1 }
 0x278   : > { %v1738_v14 = vpop.f32.mrf.mxu0  ;;  %v1451_v18 = vpop.f32.mrf.mxu1 }
 0x279   : > { %2077 = vmatmul.mubr.f32.gmra.mxu1 %v1738_v14  ;;  %4125 = vmatmul.mubr.f32.gmra.mxu0 %v1738_v14 }
 0x27a   : > { %v1740_v12 = vpop.f32.mrf.mxu0  ;;  %2082 = vmatprep.mubr.f32.mxu1 %v7557_v4  ;;  %v6144_v32 = vpop.f32.mrf.mxu1 }
 0x27c   : > { %v1743_v59 = vpop.f32.mrf.mxu0  ;;  %v1456_v31 = vpop.f32.mrf.mxu1 }
 0x27d   : > { %2083 = vmatmul.mubr.f32.gmra.mxu1 %v1743_v59  ;;  %4127 = vmatprep.mubr.f32.mxu0 %v1743_v59 }
 0x27e   : > { %v1745_v26 = vpop.f32.mrf.mxu0  ;;  %2088 = vmatprep.mubr.f32.mxu1 %v7557_v4  ;;  %v6147_v34 = vpop.f32.mrf.mxu1 }
 0x280   : > { %v1748_v40 = vpop.f32.mrf.mxu0  ;;  %v1461_v16 = vpop.f32.mrf.mxu1 }
 0x281   : > { %2089 = vmatmul.mubr.f32.gmra.mxu1 %v1748_v40  ;;  %4128 = vmatmul.mubr.f32.gmra.mxu0 %v1748_v40 }
 0x282   : > { %v1750_v18 = vpop.f32.mrf.mxu0  ;;  %2094 = vmatprep.mubr.f32.mxu1 %v7557_v4  ;;  %v6150_v14 = vpop.f32.mrf.mxu1 }
 0x284   : > { %v1753_v12 = vpop.f32.mrf.mxu0  ;;  %v1466_v35 = vpop.f32.mrf.mxu1 }
 0x285   : > { %2095 = vmatmul.mubr.f32.gmra.mxu1 %v1753_v12  ;;  %4130 = vmatprep.mubr.f32.mxu0 %v1753_v12 }
 0x286   : > { %v1755_v31 = vpop.f32.mrf.mxu0  ;;  %2100 = vmatprep.mubr.f32.mxu1 %v7557_v4  ;;  %v6153_v59 = vpop.f32.mrf.mxu1 }
 0x288   : > { %v1758_v26 = vpop.f32.mrf.mxu0  ;;  %v1471_v43 = vpop.f32.mrf.mxu1 }
 0x289   : > { %2101 = vmatmul.mubr.f32.gmra.mxu1 %v1758_v26  ;;  %4131 = vmatmul.mubr.f32.gmra.mxu0 %v1758_v26 }
 0x28a   : > { %v1760_v16 = vpop.f32.mrf.mxu0  ;;  %2106 = vmatprep.mubr.f32.mxu1 %v7557_v4  ;;  %v6156_v40 = vpop.f32.mrf.mxu1 }
 0x28c   : > { %v1763_v18 = vpop.f32.mrf.mxu0  ;;  %v1476_v19 = vpop.f32.mrf.mxu1 }
 0x28d   : > { %2107 = vmatmul.mubr.f32.gmra.mxu1 %v1763_v18  ;;  %4133 = vmatprep.mubr.f32.mxu0 %v1763_v18 }
 0x28e   : > { %v1765_v35 = vpop.f32.mrf.mxu0  ;;  %2112 = vmatprep.mubr.f32.mxu1 %v7557_v4  ;;  %v6159_v12 = vpop.f32.mrf.mxu1 }
 0x290   : > { %v1768_v31 = vpop.f32.mrf.mxu0  ;;  %v1481_v62 = vpop.f32.mrf.mxu1 }
 0x291   : > { %2113 = vmatmul.mubr.f32.gmra.mxu1 %v1768_v31  ;;  %4134 = vmatmul.mubr.f32.gmra.mxu0 %v1768_v31 }
 0x292   : > { %v1770_v43 = vpop.f32.mrf.mxu0  ;;  %2118 = vmatprep.mubr.f32.mxu1 %v7557_v4  ;;  %v6162_v26 = vpop.f32.mrf.mxu1 }
 0x294   : > { %v1773_v16 = vpop.f32.mrf.mxu0  ;;  %v1486_v24 = vpop.f32.mrf.mxu1 }
 0x295   : > { %2119 = vmatmul.mubr.f32.gmra.mxu1 %v1773_v16  ;;  %4136 = vmatprep.mubr.f32.mxu0 %v1773_v16 }
 0x296   : > { %v1775_v19 = vpop.f32.mrf.mxu0  ;;  %2124 = vmatprep.mubr.f32.mxu1 %v7557_v4  ;;  %v6165_v18 = vpop.f32.mrf.mxu1 }
 0x298   : > { %v1778_v35 = vpop.f32.mrf.mxu0  ;;  %v1491_v48 = vpop.f32.mrf.mxu1 }
 0x299   : > { %2125 = vmatmul.mubr.f32.gmra.mxu1 %v1778_v35  ;;  %4137 = vmatmul.mubr.f32.gmra.mxu0 %v1778_v35 }
 0x29a   : > { %v1780_v62 = vpop.f32.mrf.mxu0  ;;  %2130 = vmatprep.mubr.f32.mxu1 %v7557_v4  ;;  %v6168_v31 = vpop.f32.mrf.mxu1 }
 0x29c   : > { %v1783_v43 = vpop.f32.mrf.mxu0  ;;  %v1496_v39 = vpop.f32.mrf.mxu1 }
 0x29d   : > { %2131 = vmatmul.mubr.f32.gmra.mxu1 %v1783_v43  ;;  %4139 = vmatprep.mubr.f32.mxu0 %v1783_v43 }
 0x29e   : > { %v1785_v24 = vpop.f32.mrf.mxu0  ;;  %2136 = vmatprep.mubr.f32.mxu1 %v7557_v4  ;;  %v6171_v16 = vpop.f32.mrf.mxu1 }
 0x2a0   : > { %v1788_v19 = vpop.f32.mrf.mxu0  ;;  %v1501_v52 = vpop.f32.mrf.mxu1 }
 0x2a1   : > { %2137 = vmatmul.mubr.f32.gmra.mxu1 %v1788_v19  ;;  %4140 = vmatmul.mubr.f32.gmra.mxu0 %v1788_v19 }
 0x2a2   : > { %v1790_v48 = vpop.f32.mrf.mxu0  ;;  %2142 = vmatprep.mubr.f32.mxu1 %v7557_v4  ;;  %v6174_v35 = vpop.f32.mrf.mxu1 }
 0x2a4   : > { %v1793_v62 = vpop.f32.mrf.mxu0  ;;  %v1506_v30 = vpop.f32.mrf.mxu1 }
 0x2a5   : > { %2143 = vmatmul.mubr.f32.gmra.mxu1 %v1793_v62  ;;  %4142 = vmatprep.mubr.f32.mxu0 %v1793_v62 }
 0x2a6   : > { %v1795_v39 = vpop.f32.mrf.mxu0  ;;  %2148 = vmatprep.mubr.f32.mxu1 %v7557_v4  ;;  %v6177_v43 = vpop.f32.mrf.mxu1 }
 0x2a8   : > { %v1798_v24 = vpop.f32.mrf.mxu0  ;;  %v1511_v2 = vpop.f32.mrf.mxu1 }
 0x2a9   : > { %2149 = vmatmul.mubr.f32.gmra.mxu1 %v1798_v24  ;;  %4143 = vmatmul.mubr.f32.gmra.mxu0 %v1798_v24 }
 0x2aa   : > { %v1800_v52 = vpop.f32.mrf.mxu0  ;;  %2444 = vmatprep.mubr.f32.mxu0 %v7557_v4  ;;  %4177 = vmatprep.mubr.f32.mxu1 %v5946_v45 }
 0x2ad   : > { %2445 = vmatmul.mubr.f32.vlgmr.msra.gmra.mxu0 %v5946_v45  ;;  %4178 = vmatmul.mubr.f32.vlgmr.msra.gmra.mxu1 %v5952_v56 }
 0x2ae   : > { %2450 = vmatprep.mubr.f32.mxu0 %v7557_v4  ;;  %4180 = vmatprep.mubr.f32.mxu1 %v5967_v44 }
 0x2b1   : > { %2451 = vmatmul.mubr.f32.gmra.mxu0 %v5952_v56  ;;  %4181 = vmatmul.mubr.f32.gmra.mxu1 %v5982_v51 }
 0x2b2   : > { %2456 = vmatprep.mubr.f32.mxu0 %v7557_v4  ;;  %4183 = vmatprep.mubr.f32.mxu1 %v5997_v9 }
 0x2b5   : > { %2457 = vmatmul.mubr.f32.gmra.mxu0 %v5967_v44  ;;  %4184 = vmatmul.mubr.f32.gmra.mxu1 %v6012_v5 }
 0x2b6   : > { %2462 = vmatprep.mubr.f32.mxu0 %v7557_v4  ;;  %4186 = vmatprep.mubr.f32.mxu1 %v6027_v47 }
 0x2b9   : > { %2463 = vmatmul.mubr.f32.gmra.mxu0 %v5982_v51  ;;  %4187 = vmatmul.mubr.f32.gmra.mxu1 %v6042_v58 }
 0x2ba   : > { %2468 = vmatprep.mubr.f32.mxu0 %v7557_v4  ;;  %4189 = vmatprep.mubr.f32.mxu1 %v6057_v53 }
 0x2bd   : > { %2469 = vmatmul.mubr.f32.gmra.mxu0 %v5997_v9  ;;  %4190 = vmatmul.mubr.f32.gmra.mxu1 %v6072_v41 }
 0x2be   : > { %2474 = vmatprep.mubr.f32.mxu0 %v7557_v4  ;;  %4192 = vmatprep.mubr.f32.mxu1 %v6087_v0 }
 0x2c1   : > { %2475 = vmatmul.mubr.f32.gmra.mxu0 %v6012_v5  ;;  %4193 = vmatmul.mubr.f32.gmra.mxu1 %v6102_v57 }
 0x2c2   : > { %2480 = vmatprep.mubr.f32.mxu0 %v7557_v4  ;;  %4195 = vmatprep.mubr.f32.mxu1 %v6114_v28 }
 0x2c5   : > { %2481 = vmatmul.mubr.f32.gmra.mxu0 %v6027_v47  ;;  %4196 = vmatmul.mubr.f32.gmra.mxu1 %v6123_v23 }
 0x2c6   : > { %2486 = vmatprep.mubr.f32.mxu0 %v7557_v4  ;;  %4198 = vmatprep.mubr.f32.mxu1 %v6126_v55 }
 0x2c9   : > { %2487 = vmatmul.mubr.f32.gmra.mxu0 %v6042_v58  ;;  %4199 = vmatmul.mubr.f32.gmra.mxu1 %v6129_v15 }
 0x2ca   : > { %2492 = vmatprep.mubr.f32.mxu0 %v7557_v4  ;;  %4201 = vmatprep.mubr.f32.mxu1 %v6132_v17 }
 0x2cd   : > { %2493 = vmatmul.mubr.f32.gmra.mxu0 %v6057_v53  ;;  %4202 = vmatmul.mubr.f32.gmra.mxu1 %v6135_v49 }
 0x2ce   : > { %2498 = vmatprep.mubr.f32.mxu0 %v7557_v4  ;;  %4204 = vmatprep.mubr.f32.mxu1 %v6138_v3 }
 0x2d1   : > { %2499 = vmatmul.mubr.f32.gmra.mxu0 %v6072_v41  ;;  %4205 = vmatmul.mubr.f32.gmra.mxu1 %v6141_v63 }
 0x2d2   : > { %2504 = vmatprep.mubr.f32.mxu0 %v7557_v4  ;;  %4207 = vmatprep.mubr.f32.mxu1 %v6144_v32 }
 0x2d5   : > { %2505 = vmatmul.mubr.f32.gmra.mxu0 %v6087_v0  ;;  %4208 = vmatmul.mubr.f32.gmra.mxu1 %v6147_v34 }
 0x2d6   : > { %2510 = vmatprep.mubr.f32.mxu0 %v7557_v4  ;;  %4210 = vmatprep.mubr.f32.mxu1 %v6150_v14 }
 0x2d9   : > { %2511 = vmatmul.mubr.f32.gmra.mxu0 %v6102_v57  ;;  %4211 = vmatmul.mubr.f32.gmra.mxu1 %v6153_v59 }
 0x2da   : > { %2516 = vmatprep.mubr.f32.mxu0 %v7557_v4  ;;  %4213 = vmatprep.mubr.f32.mxu1 %v6156_v40 }
 0x2dd   : > { %2517 = vmatmul.mubr.f32.gmra.mxu0 %v6114_v28  ;;  %4214 = vmatmul.mubr.f32.gmra.mxu1 %v6159_v12 }
 0x2de   : > { %2522 = vmatprep.mubr.f32.mxu0 %v7557_v4  ;;  %4216 = vmatprep.mubr.f32.mxu1 %v6162_v26 }
 0x2e1   : > { %2523 = vmatmul.mubr.f32.gmra.mxu0 %v6123_v23  ;;  %4217 = vmatmul.mubr.f32.gmra.mxu1 %v6165_v18 }
 0x2e2   : > { %2528 = vmatprep.mubr.f32.mxu0 %v7557_v4  ;;  %4219 = vmatprep.mubr.f32.mxu1 %v6168_v31 }
 0x2e5   : > { %2529 = vmatmul.mubr.f32.gmra.mxu0 %v6126_v55  ;;  %4220 = vmatmul.mubr.f32.gmra.mxu1 %v6171_v16 }
 0x2e6   : > { %2534 = vmatprep.mubr.f32.mxu0 %v7557_v4  ;;  %4222 = vmatprep.mubr.f32.mxu1 %v6174_v35 }
 0x2e9   : > { %2535 = vmatmul.mubr.f32.gmra.mxu0 %v6129_v15  ;;  %4223 = vmatmul.mubr.f32.gmra.mxu1 %v6177_v43 }
 0x2ea   : > { %2540 = vmatprep.mubr.f32.mxu0 %v7557_v4 }
 0x2ed   : > { %v6244_v2 = vpop.f32.mrf.mxu1  ;;  %2541 = vmatmul.mubr.f32.gmra.mxu0 %v6132_v17 }
 0x2ee   : > { %2546 = vmatprep.mubr.f32.mxu0 %v7557_v4 }
 0x2ef   : > { %v6248_v30 = vpop.f32.mrf.mxu1 }
 0x2f1   : > { %v6250_v45 = vpop.f32.mrf.mxu1  ;;  %2547 = vmatmul.mubr.f32.gmra.mxu0 %v6135_v49  ;;  %v6296_v55 = vpop.f32.mrf.mxu0 }
 0x2f2   : > { %2552 = vmatprep.mubr.f32.mxu0 %v7557_v4 }
 0x2f3   : > { %v6254_v44 = vpop.f32.mrf.mxu1 }
 0x2f5   : > { %v6256_v15 = vpop.f32.mrf.mxu1  ;;  %2553 = vmatmul.mubr.f32.gmra.mxu0 %v6138_v3  ;;  %v6304_v3 = vpop.f32.mrf.mxu0 }
 0x2f6   : > { %2558 = vmatprep.mubr.f32.mxu0 %v7557_v4 }
 0x2f7   : > { %v6260_v56 = vpop.f32.mrf.mxu1 }
 0x2f9   : > { %v6262_v51 = vpop.f32.mrf.mxu1  ;;  %2559 = vmatmul.mubr.f32.gmra.mxu0 %v6141_v63 }
 0x2fa   : > { %2564 = vmatprep.mubr.f32.mxu0 %v7557_v4 }
 0x2fb   : > { %v6266_v9 = vpop.f32.mrf.mxu1 }
 0x2fd   : > { %v6268_v5 = vpop.f32.mrf.mxu1  ;;  %2565 = vmatmul.mubr.f32.gmra.mxu0 %v6144_v32  ;;  %v6308_v32 = vpop.f32.mrf.mxu0 }
 0x2fe   : > { %2570 = vmatprep.mubr.f32.mxu0 %v7557_v4 }
 0x2ff   : > { %v6272_v47 = vpop.f32.mrf.mxu1 }
 0x301   : > { %v6274_v58 = vpop.f32.mrf.mxu1  ;;  %2571 = vmatmul.mubr.f32.gmra.mxu0 %v6147_v34 }
 0x302   : > { %2576 = vmatprep.mubr.f32.mxu0 %v7557_v4 }
 0x303   : > { %v6278_v53 = vpop.f32.mrf.mxu1 }
 0x305   : > { %v6280_v41 = vpop.f32.mrf.mxu1  ;;  %2577 = vmatmul.mubr.f32.gmra.mxu0 %v6150_v14 }
 0x306   : > { %2582 = vmatprep.mubr.f32.mxu0 %v7557_v4 }
 0x307   : > { %v6284_v0 = vpop.f32.mrf.mxu1 }
 0x309   : > { %v6286_v57 = vpop.f32.mrf.mxu1  ;;  %2583 = vmatmul.mubr.f32.gmra.mxu0 %v6153_v59  ;;  %v6316_v59 = vpop.f32.mrf.mxu0 }
 0x30a   : > { %2588 = vmatprep.mubr.f32.mxu0 %v7557_v4 }
 0x30b   : > { %v6290_v28 = vpop.f32.mrf.mxu1 }
 0x30d   : > { %v6292_v23 = vpop.f32.mrf.mxu1  ;;  %2589 = vmatmul.mubr.f32.gmra.mxu0 %v6156_v40 }
 0x30e   : > { %2594 = vmatprep.mubr.f32.mxu0 %v7557_v4 }
 0x30f   : > { %v6298_v17 = vpop.f32.mrf.mxu1 }
 0x311   : > { %v6300_v49 = vpop.f32.mrf.mxu1  ;;  %2595 = vmatmul.mubr.f32.gmra.mxu0 %v6159_v12  ;;  %v6322_v12 = vpop.f32.mrf.mxu0 }
 0x312   : > { %2600 = vmatprep.mubr.f32.mxu0 %v7557_v4 }
 0x313   : > { %v6306_v63 = vpop.f32.mrf.mxu1 }
 0x314   : > { %7634 = vst [vmem:[#allocation108_spill] sm:$0xff] %v6306_v63  ;;  %v7735_v63 = vld [vmem:[#allocation50_spill] sm:$0xff] }
 0x315   : > { %v6310_v34 = vpop.f32.mrf.mxu1  ;;  %2601 = vmatmul.mubr.f32.gmra.mxu0 %v6162_v26  ;;  %v6330_v26 = vpop.f32.mrf.mxu0 }
 0x316   : > { %7635 = vst [vmem:[#allocation109_spill] sm:$0xff] %v6310_v34  ;;  %2606 = vmatprep.mubr.f32.mxu0 %v7557_v4 }
 0x317   : > { %v6314_v14 = vpop.f32.mrf.mxu1  ;;  %v6334_v39 = vpop.f32.mrf.mxu0 }
 0x318   : > { %7636 = vst [vmem:[#allocation110_spill] sm:$0xff] %v6314_v14 }
 0x319   : > { %v6318_v40 = vpop.f32.mrf.mxu1  ;;  %2607 = vmatmul.mubr.f32.gmra.mxu0 %v6165_v18  ;;  %v6342_v52 = vpop.f32.mrf.mxu0 }
 0x31a   : > { %7637 = vst [vmem:[#allocation111_spill] sm:$0xff] %v6318_v40  ;;  %2612 = vmatprep.mubr.f32.mxu0 %v7557_v4 }
 0x31b   : > { %v6324_v19 = vpop.f32.mrf.mxu1 }
 0x31c   : > { %7638 = vst [vmem:[#allocation112_spill] sm:$0xff] %v6324_v19 }
 0x31d   : > { %v6326_v48 = vpop.f32.mrf.mxu1  ;;  %2613 = vmatmul.mubr.f32.gmra.mxu0 %v6168_v31  ;;  %v6348_v31 = vpop.f32.mrf.mxu0 }
 0x31e   : > { %7639 = vst [vmem:[#allocation113_spill] sm:$0xff] %v6326_v48  ;;  %2618 = vmatprep.mubr.f32.mxu0 %v7557_v4  ;;  %7644 = vst [vmem:[#allocation118_spill] sm:$0xff] %v6348_v31 }
 0x31f   : > { %v6332_v62 = vpop.f32.mrf.mxu1 }
 0x320   : > { %7640 = vst [vmem:[#allocation114_spill] sm:$0xff] %v6332_v62 }
 0x321   : > { %v6336_v24 = vpop.f32.mrf.mxu1  ;;  %2619 = vmatmul.mubr.f32.gmra.mxu0 %v6171_v16  ;;  %v6355_v16 = vpop.f32.mrf.mxu0 }
 0x322   : > { %7641 = vst [vmem:[#allocation115_spill] sm:$0xff] %v6336_v24  ;;  %2624 = vmatprep.mubr.f32.mxu0 %v7557_v4  ;;  %7647 = vst [vmem:[#allocation121_spill] sm:$0xff] %v6355_v16 }
 0x323   : > { %v6340_v18 = vpop.f32.mrf.mxu1 }
 0x324   : > { %7642 = vst [vmem:[#allocation116_spill] sm:$0xff] %v6340_v18  ;;  %v6359_v18 = vpop.f32.mrf.mxu0 }
 0x325   : > { %v6344_v48 = vpop.f32.mrf.mxu1  ;;  %2625 = vmatmul.mubr.f32.gmra.mxu0 %v6174_v35  ;;  %7649 = vst [vmem:[#allocation123_spill] sm:$0xff] %v6359_v18 }
 0x326   : > { %7643 = vst [vmem:[#allocation117_spill] sm:$0xff] %v6344_v48  ;;  %2630 = vmatprep.mubr.f32.mxu0 %v7557_v4  ;;  %v6365_v35 = vpop.f32.mrf.mxu0 }
 0x327   : > { %v6350_v62 = vpop.f32.mrf.mxu1  ;;  %7652 = vst [vmem:[#allocation126_spill] sm:$0xff] %v6365_v35 }
 0x328   : > { %7645 = vst [vmem:[#allocation119_spill] sm:$0xff] %v6350_v62  ;;  %v6369_v14 = vpop.f32.mrf.mxu0 }
 0x329   : > { %v6352_v19 = vpop.f32.mrf.mxu1  ;;  %2631 = vmatmul.mubr.f32.gmra.mxu0 %v6177_v43  ;;  %7654 = vst [vmem:[#allocation128_spill] sm:$0xff] %v6369_v14 }
 0x32a   : > { %7646 = vst [vmem:[#allocation120_spill] sm:$0xff] %v6352_v19  ;;  %v6375_v43 = vpop.f32.mrf.mxu0 }
 0x32b   : > { %v6357_v24 = vpop.f32.mrf.mxu1  ;;  %7657 = vst [vmem:[#allocation131_spill] sm:$0xff] %v6375_v43 }
 0x32c   : > { %7648 = vst [vmem:[#allocation122_spill] sm:$0xff] %v6357_v24  ;;  %v6379_v24 = vpop.f32.mrf.mxu0 }
 0x32d   : > { %v6361_v40 = vpop.f32.mrf.mxu1  ;;  %7659 = vst [vmem:[#allocation133_spill] sm:$0xff] %v6379_v24 }
 0x32e   : > { %7650 = vst [vmem:[#allocation124_spill] sm:$0xff] %v6361_v40 }
 0x32f   : > { %v6363_v48 = vpop.f32.mrf.mxu1 }
 0x330   : > { %7651 = vst [vmem:[#allocation125_spill] sm:$0xff] %v6363_v48  ;;  %v6385_v48 = vpop.f32.mrf.mxu0 }
 0x331   : > { %v6367_v4 = vpop.f32.mrf.mxu1  ;;  %7662 = vst [vmem:[#allocation136_spill] sm:$0xff] %v6385_v48 }
 0x332   : > { %7653 = vst [vmem:[#allocation127_spill] sm:$0xff] %v6367_v4  ;;  %v6389_v4 = vpop.f32.mrf.mxu0 }
 0x333   : > { %v6371_v62 = vpop.f32.mrf.mxu1  ;;  %7664 = vst [vmem:[#allocation138_spill] sm:$0xff] %v6389_v4 }
 0x334   : > { %7655 = vst [vmem:[#allocation129_spill] sm:$0xff] %v6371_v62 }
 0x335   : > { %v6373_v19 = vpop.f32.mrf.mxu1 }
 0x336   : > { %7656 = vst [vmem:[#allocation130_spill] sm:$0xff] %v6373_v19  ;;  %v6395_v19 = vpop.f32.mrf.mxu0 }
 0x337   : > { %v6377_v34 = vpop.f32.mrf.mxu1  ;;  %7667 = vst [vmem:[#allocation141_spill] sm:$0xff] %v6395_v19 }
 0x338   : > { %7658 = vst [vmem:[#allocation132_spill] sm:$0xff] %v6377_v34 }
 0x339   : > { %v6381_v18 = vpop.f32.mrf.mxu1  ;;  %v6399_v34 = vpop.f32.mrf.mxu0 }
 0x33a   : > { %7660 = vst [vmem:[#allocation134_spill] sm:$0xff] %v6381_v18  ;;  %7669 = vst [vmem:[#allocation143_spill] sm:$0xff] %v6399_v34 }
 0x33b   : > { %v6383_v40 = vpop.f32.mrf.mxu1 }
 0x33c   : > { %7661 = vst [vmem:[#allocation135_spill] sm:$0xff] %v6383_v40  ;;  %v6405_v40 = vpop.f32.mrf.mxu0 }
 0x33d   : > { %v6387_v35 = vpop.f32.mrf.mxu1  ;;  %7672 = vst [vmem:[#allocation146_spill] sm:$0xff] %v6405_v40 }
 0x33e   : > { %7663 = vst [vmem:[#allocation137_spill] sm:$0xff] %v6387_v35 }
 0x33f   : > { %v6391_v14 = vpop.f32.mrf.mxu1 }
 0x340   : > { %7665 = vst [vmem:[#allocation139_spill] sm:$0xff] %v6391_v14 }
 0x341   : > { %v6393_v62 = vpop.f32.mrf.mxu1  ;;  %v6409_v35 = vpop.f32.mrf.mxu0 }
 0x342   : > { %7666 = vst [vmem:[#allocation140_spill] sm:$0xff] %v6393_v62  ;;  %7674 = vst [vmem:[#allocation148_spill] sm:$0xff] %v6409_v35 }
 0x343   : > { %v6397_v43 = vpop.f32.mrf.mxu1  ;;  %v6415_v62 = vpop.f32.mrf.mxu0 }
 0x344   : > { %7668 = vst [vmem:[#allocation142_spill] sm:$0xff] %v6397_v43  ;;  %7677 = vst [vmem:[#allocation151_spill] sm:$0xff] %v6415_v62 }
 0x345   : > { %v6401_v24 = vpop.f32.mrf.mxu1 }
 0x346   : > { %7670 = vst [vmem:[#allocation144_spill] sm:$0xff] %v6401_v24 }
 0x347   : > { %v6403_v18 = vpop.f32.mrf.mxu1 }
 0x348   : > { %7671 = vst [vmem:[#allocation145_spill] sm:$0xff] %v6403_v18 }
 0x349   : > { %v6407_v48 = vpop.f32.mrf.mxu1  ;;  %v6419_v43 = vpop.f32.mrf.mxu0 }
 0x34a   : > { %7673 = vst [vmem:[#allocation147_spill] sm:$0xff] %v6407_v48  ;;  %7679 = vst [vmem:[#allocation153_spill] sm:$0xff] %v6419_v43  ;;  %v7523_v43 = vsub.s32 2, %v5222_v33 }
 0x34b   : > { %v6411_v4 = vpop.f32.mrf.mxu1  ;;  %v6425_v18 = vpop.f32.mrf.mxu0 }
 0x34c   : > { %7675 = vst [vmem:[#allocation149_spill] sm:$0xff] %v6411_v4  ;;  %7682 = vst [vmem:[#allocation156_spill] sm:$0xff] %v6425_v18 }
 0x34d   : > { %v6413_v14 = vpop.f32.mrf.mxu1 }
 0x34e   : > { %7676 = vst [vmem:[#allocation150_spill] sm:$0xff] %v6413_v14 }
 0x34f   : > { %v6417_v19 = vpop.f32.mrf.mxu1 }
 0x350   : > { %7678 = vst [vmem:[#allocation152_spill] sm:$0xff] %v6417_v19 }
 0x351   : > { %v6421_v34 = vpop.f32.mrf.mxu1  ;;  %v6429_v48 = vpop.f32.mrf.mxu0 }
 0x352   : > { %7680 = vst [vmem:[#allocation154_spill] sm:$0xff] %v6421_v34  ;;  %7684 = vst [vmem:[#allocation158_spill] sm:$0xff] %v6429_v48  ;;  %v474_v34 = vsub.s32 3, %v5222_v33  ;;  %v4586_v48 = vld [vmem:[%s7485_s4] sm:$0x1f] }
 0x353   : > { %v6423_v24 = vpop.f32.mrf.mxu1  ;;  %v6435_v14 = vpop.f32.mrf.mxu0 }
 0x354   : > { %7681 = vst [vmem:[#allocation155_spill] sm:$0xff] %v6423_v24  ;;  %7687 = vst [vmem:[#allocation161_spill] sm:$0xff] %v6435_v14  ;;  %v6454_v14 = vrot.slane %v4586_v48, %v474_v34  ;;  %v6474_v34 = vadd.f32 %v5482_v20, %v5598_v42 }
 0x355   : > { %v6427_v40 = vpop.f32.mrf.mxu1 }
 0x356   : > { %7683 = vst [vmem:[#allocation157_spill] sm:$0xff] %v6427_v40  ;;  %v6494_v20 = vadd.f32 %v5497_v54, %v6454_v14 }
 0x357   : > { %v6431_v35 = vpop.f32.mrf.mxu1 }
 0x358   : > { %7685 = vst [vmem:[#allocation159_spill] sm:$0xff] %v6431_v35 }
 0x359   : > { %v6433_v4 = vpop.f32.mrf.mxu1  ;;  %v6441_v19 = vpop.f32.mrf.mxu0 }
 0x35a   : > { %7686 = vst [vmem:[#allocation160_spill] sm:$0xff] %v6433_v4  ;;  %7689 = vst [vmem:[#allocation163_spill] sm:$0xff] %v6441_v19  ;;  %v6452_v4 = vrot.slane %v4586_v48, %v7523_v43  ;;  %v6462_v19 = vadd.f32 %v5473_v22, %v5598_v42  ;;  %v6478_v48 = vadd.f32 %v5479_v25, %v6454_v14 }
 0x35b   : > { %v6437_v62 = vpop.f32.mrf.mxu1  ;;  %v6486_v43 = vadd.f32 %v5491_v1, %v5598_v42  ;;  %v6508_v1 = vadd.f32 %v5521_v8, %v5598_v42  ;;  %v6528_v8 = vadd.f32 %v5539_v29, %v6454_v14  ;;  %v6548_v29 = vadd.f32 %v5563_v11, %v6454_v14 }
 0x35c   : > { %7688 = vst [vmem:[#allocation162_spill] sm:$0xff] %v6437_v62  ;;  %v6456_v62 = vpop.f32.mrf.mxu0  ;;  %7694 = vst [vmem:[#allocation168_spill] sm:$0xff] %v6462_v19  ;;  %v6470_v40 = vadd.f32 %v5470_v38, %v6452_v4  ;;  %v6482_v22 = vadd.f32 %v5488_v36, %v6452_v4  ;;  %v6490_v38 = vadd.f32 %v5500_v6, %v5598_v42 }
 0x35d   : > { %v6443_v24 = vpop.f32.mrf.mxu1  ;;  %7692 = vst [vmem:[#allocation166_spill] sm:$0xff] %v6456_v62  ;;  %7697 = vst [vmem:[#allocation171_spill] sm:$0xff] %v6486_v43  ;;  %v6498_v25 = vadd.f32 %v5506_v61, %v6452_v4  ;;  %v6504_v36 = vadd.f32 %v5512_v46, %v5598_v42  ;;  %v6512_v6 = vadd.f32 %v5515_v7, %v6454_v14 }
 0x35e   : > { %7690 = vst [vmem:[#allocation164_spill] sm:$0xff] %v6443_v24  ;;  %7698 = vst [vmem:[#allocation172_spill] sm:$0xff] %v6490_v38  ;;  %v6516_v54 = vadd.f32 %v5527_v13, %v6452_v4  ;;  %v6520_v61 = vadd.f32 %v5533_v60, %v5598_v42  ;;  %v6524_v46 = vadd.f32 %v5545_v10, %v5598_v42  ;;  %v7731_v38 = vld [vmem:[#allocation48_spill] sm:$0xff] }
 0x35f   : > { %v6445_v18 = vpop.f32.mrf.mxu1  ;;  %7700 = vst [vmem:[#allocation174_spill] sm:$0xff] %v6504_v36  ;;  %7701 = vst [vmem:[#allocation175_spill] sm:$0xff] %v6508_v1  ;;  %v6532_v7 = vadd.f32 %v5551_v37, %v6452_v4  ;;  %v6540_v60 = vadd.f32 %v5557_v27, %v5598_v42  ;;  %v6544_v10 = vadd.f32 %v5569_v50, %v5598_v42  ;;  %v7723_v36 = vld [vmem:[#allocation44_spill] sm:$0xff]  ;;  %v7727_v1 = vld [vmem:[#allocation46_spill] sm:$0xff] }
 0x360   : > { %7691 = vst [vmem:[#allocation165_spill] sm:$0xff] %v6445_v18  ;;  %7702 = vst [vmem:[#allocation176_spill] sm:$0xff] %v6520_v61  ;;  %v6552_v37 = vadd.f32 %v5576_v21, %v6452_v4  ;;  %v7721_v61 = vld [vmem:[#allocation43_spill] sm:$0xff] }
 0x361   : > { %v6458_v35 = vpop.f32.mrf.mxu1  ;;  %v6464_v24 = vpop.f32.mrf.mxu0  ;;  %7703 = vst [vmem:[#allocation177_spill] sm:$0xff] %v6524_v46  ;;  %7706 = vst [vmem:[#allocation180_spill] sm:$0xff] %v6540_v60  ;;  %v6597_v46 = vadd.f32 %v7721_v61, %v5598_v42  ;;  %v6617_v61 = vadd.f32 %v7731_v38, %v6452_v4  ;;  %v7740_v38 = vld [vmem:[#allocation55_spill] sm:$0xff] }
 0x362   : > { %7693 = vst [vmem:[#allocation167_spill] sm:$0xff] %v6458_v35  ;;  %7695 = vst [vmem:[#allocation169_spill] sm:$0xff] %v6464_v24  ;;  %v7713_v35 = vld [vmem:[#allocation36_spill] sm:$0xff] }
 0x363   : > { %v6466_v18 = vpop.f32.mrf.mxu1  ;;  %v6534_v62 = vpop.f32.mrf.mxu0  ;;  %7707 = vst [vmem:[#allocation181_spill] sm:$0xff] %v6544_v10  ;;  %v6568_v11 = vadd.f32 %v7713_v35, %v6452_v4  ;;  %v7719_v35 = vld [vmem:[#allocation40_spill] sm:$0xff]  ;;  %7732 = vst [vmem:[#allocation46_spill] sm:$0xff] %v6617_v61  ;;  %v6638_v61 = vadd.f32 %v7740_v38, %v5598_v42 }
 0x364   : > { %7696 = vst [vmem:[#allocation170_spill] sm:$0xff] %v6466_v18  ;;  %7704 = vst [vmem:[#allocation178_spill] sm:$0xff] %v6534_v62  ;;  %v7708_v62 = vld [vmem:[#allocation32_spill] sm:$0xff]  ;;  %v7712_v18 = vld [vmem:[#allocation33_spill] sm:$0xff]  ;;  %v6589_v10 = vadd.f32 %v7719_v35, %v6452_v4  ;;  %v6609_v35 = vadd.f32 %v7727_v1, %v6454_v14 }
 0x365   : > { %v6500_v24 = vpop.f32.mrf.mxu1  ;;  %v6564_v50 = vadd.f32 %v7712_v18, %v6454_v14  ;;  %v7718_v18 = vld [vmem:[#allocation38_spill] sm:$0xff] }
 0x366   : > { %7699 = vst [vmem:[#allocation173_spill] sm:$0xff] %v6500_v24  ;;  %v6556_v24 = vadd.f32 %v7708_v62, %v5598_v42  ;;  %v6577_v62 = vld [vmem:[%s7488_s7] sm:$0x7]  ;;  %7722 = vst [vmem:[#allocation38_spill] sm:$0xff] %v6597_v46  ;;  %v7733_v46 = vld [vmem:[#allocation51_spill] sm:$0xff] }
 0x367   : > { %v6536_v13 = vpop.f32.mrf.mxu1  ;;  %7728 = vst [vmem:[#allocation43_spill] sm:$0xff] %v6609_v35 }
 0x368   : > { %7705 = vst [vmem:[#allocation179_spill] sm:$0xff] %v6536_v13  ;;  %7709 = vst [vmem:[#allocation32_spill] sm:$0xff] %v6556_v24  ;;  %v7710_v13 = vld [vmem:[#allocation34_spill] sm:$0xff] }
 0x369   : > { %v6560_v27 = vadd.f32 %v7710_v13, %v5598_v42  ;;  %v6570_v60 = vpop.f32.mrf.mxu1  ;;  %v6572_v21 = vpop.f32.mrf.mxu0  ;;  %v7716_v13 = vld [vmem:[#allocation39_spill] sm:$0xff] }
 0x36a   : > { %7714 = vst [vmem:[#allocation33_spill] sm:$0xff] %v6570_v60  ;;  %7715 = vst [vmem:[#allocation36_spill] sm:$0xff] %v6572_v21  ;;  %v6581_v24 = vadd.f32 %v7716_v13, %v5598_v42  ;;  %v7720_v60 = vld [vmem:[#allocation42_spill] sm:$0xff]  ;;  %v6601_v13 = vadd.f32 %v7723_v36, %v6452_v4  ;;  %v6621_v36 = vadd.f32 %v7733_v46, %v5598_v42 }
 0x36b   : > { %7711 = vst [vmem:[#allocation34_spill] sm:$0xff] %v6560_v27  ;;  %v6585_v27 = vadd.f32 %v7718_v18, %v6454_v14  ;;  %v6593_v21 = vadd.f32 %v7720_v60, %v6454_v14  ;;  %v6611_v43 = vpop.f32.mrf.mxu1  ;;  %v6613_v60 = vpop.f32.mrf.mxu0  ;;  %v7742_v46 = vld [vmem:[#allocation54_spill] sm:$0xff] }
 0x36c   : > { %7717 = vst [vmem:[#allocation39_spill] sm:$0xff] %v6581_v24  ;;  %7724 = vst [vmem:[#allocation40_spill] sm:$0xff] %v6601_v13  ;;  %v7725_v24 = vld [vmem:[#allocation47_spill] sm:$0xff] }
 0x36d   : > { %v6605_v18 = vadd.f32 %v7725_v24, %v5598_v42  ;;  %7729 = vst [vmem:[#allocation44_spill] sm:$0xff] %v6611_v43  ;;  %7730 = vst [vmem:[#allocation47_spill] sm:$0xff] %v6613_v60  ;;  %v6625_v24 = vadd.f32 %v7735_v63, %v6454_v14  ;;  %v7738_v43 = vld [vmem:[#allocation52_spill] sm:$0xff]  ;;  %v2446_v16 = vpop.f32.mrf.mxu0  ;;  %v6648_v31 = vpop.f32.mrf.mxu1 }
 0x36e   : > { %7734 = vst [vmem:[#allocation48_spill] sm:$0xff] %v6621_v36  ;;  %v6634_v60 = vadd.f32 %v7738_v43, %v6452_v4  ;;  %7741 = vst [vmem:[#allocation52_spill] sm:$0xff] %v6638_v61  ;;  %v6642_v36 = vadd.f32 %v7742_v46, %v6454_v14  ;;  %v7744_v63 = vld [vmem:[#allocation56_spill] sm:$0xff]  ;;  %v7748_v43 = vld [vmem:[#allocation58_spill] sm:$0xff]  ;;  %v2447_v38 = vadd.f32 %v2446_v16, %v6244_v2  ;;  %v7750_v46 = vsub.s32 1, %v5222_v33 }
 0x36f   : > { %7726 = vst [vmem:[#allocation42_spill] sm:$0xff] %v6605_v18  ;;  %7736 = vst [vmem:[#allocation51_spill] sm:$0xff] %v6625_v24  ;;  %v7737_v18 = vsub.s32 0, %v5222_v33  ;;  %v6646_v24 = vadd.f32 %v7744_v63, %v6452_v4  ;;  %v7751_v63 = vld [vmem:[#allocation60_spill] sm:$0xff]  ;;  %v2448_v16 = vpop.f32.mrf.mxu0 }
 0x370   : > { %7739 = vst [vmem:[#allocation50_spill] sm:$0xff] %v6634_v60  ;;  %7743 = vst [vmem:[#allocation55_spill] sm:$0xff] %v6642_v36  ;;  %v6656_v60 = vadd.f32 %v7748_v43, %v6454_v14  ;;  %v6662_v61 = vrot.slane %v6577_v62, %v7750_v46  ;;  %v7753_v36 = vld [vmem:[#allocation63_spill] sm:$0xff]  ;;  %v7757_v43 = vld [vmem:[#allocation64_spill] sm:$0xff] }
 0x371   : > { %v6630_v1 = vrot.slane %v6577_v62, %v7737_v18  ;;  %7745 = vst [vmem:[#allocation54_spill] sm:$0xff] %v6646_v24  ;;  %v7746_v18 = vld [vmem:[#allocation59_spill] sm:$0xff]  ;;  %v6666_v24 = vadd.f32 %v7751_v63, %v6452_v4  ;;  %v6670_v35 = vadd.f32 %v7753_v36, %v5598_v42  ;;  %v6678_v2 = vadd.f32 %v7757_v43, %v6452_v4  ;;  %v7759_v46 = vld [vmem:[#allocation66_spill] sm:$0xff]  ;;  %v7761_v63 = vld [vmem:[#allocation68_spill] sm:$0xff] }
 0x372   : > { %v6652_v19 = vadd.f32 %v7746_v18, %v5598_v42  ;;  %7749 = vst [vmem:[#allocation59_spill] sm:$0xff] %v6656_v60  ;;  %v7755_v18 = vld [vmem:[#allocation62_spill] sm:$0xff]  ;;  %v6682_v60 = vadd.f32 %v7759_v46, %v6454_v14  ;;  %v2449_v42 = vadd.f32 %v2448_v16, %v6248_v30  ;;  %v7765_v43 = vld [vmem:[#allocation72_spill] sm:$0xff] }
 0x373   : > { %7752 = vst [vmem:[#allocation58_spill] sm:$0xff] %v6666_v24  ;;  %7754 = vst [vmem:[#allocation60_spill] sm:$0xff] %v6670_v35  ;;  %v6686_v24 = vadd.f32 %v7761_v63, %v6452_v4  ;;  %v2879_v36 = vadd.f32 %v6630_v1, %v2447_v38  ;;  %v6690_v35 = vpop.f32.mrf.mxu1  ;;  %v7767_v46 = vld [vmem:[#allocation74_spill] sm:$0xff]  ;;  %v7769_v63 = vld [vmem:[#allocation75_spill] sm:$0xff]  ;;  %v2452_v38 = vpop.f32.mrf.mxu0 }
 0x374   : > { %7747 = vst [vmem:[#allocation56_spill] sm:$0xff] %v6652_v19  ;;  %v6674_v19 = vadd.f32 %v7755_v18, %v6454_v14  ;;  %7758 = vst [vmem:[#allocation62_spill] sm:$0xff] %v6678_v2  ;;  %v7763_v18 = vld [vmem:[#allocation70_spill] sm:$0xff]  ;;  %v6698_v2 = vadd.f32 %v7765_v43, %v6452_v4  ;;  %v7771_v30 = vld [vmem:[#allocation76_spill] sm:$0xff]  ;;  %v2453_v43 = vadd.f32 %v2452_v38, %v6250_v45 }
 0x375   : > { %7760 = vst [vmem:[#allocation64_spill] sm:$0xff] %v6682_v60  ;;  %7762 = vst [vmem:[#allocation66_spill] sm:$0xff] %v6686_v24  ;;  %v6702_v60 = vadd.f32 %v7767_v46, %v6454_v14  ;;  %v6706_v24 = vadd.f32 %v7769_v63, %v6452_v4  ;;  %v6710_v16 = vadd.f32 %v7771_v30, %v6454_v14  ;;  %v7774_v46 = vld [vmem:[#allocation78_spill] sm:$0xff]  ;;  %v7776_v63 = vld [vmem:[#allocation79_spill] sm:$0xff] }
 0x376   : > { %7756 = vst [vmem:[#allocation63_spill] sm:$0xff] %v6674_v19  ;;  %v6694_v19 = vadd.f32 %v7763_v18, %v6454_v14  ;;  %7766 = vst [vmem:[#allocation70_spill] sm:$0xff] %v6698_v2  ;;  %v2975_v18 = vadd.f32 %v2879_v36, %v6470_v40  ;;  %v7773_v2 = vld [vmem:[#allocation77_spill] sm:$0xff]  ;;  %v7778_v30 = vld [vmem:[#allocation80_spill] sm:$0xff]  ;;  %v2454_v40 = vpop.f32.mrf.mxu0  ;;  %v2882_v36 = vadd.f32 %v6630_v1, %v2453_v43 }
 0x377   : > { %7768 = vst [vmem:[#allocation72_spill] sm:$0xff] %v6702_v60  ;;  %7770 = vst [vmem:[#allocation74_spill] sm:$0xff] %v6706_v24  ;;  %v6717_v13 = vadd.f32 %v7773_v2, %v6452_v4  ;;  %v6721_v60 = vadd.f32 %v7774_v46, %v6454_v14  ;;  %v6725_v24 = vadd.f32 %v7776_v63, %v6452_v4  ;;  %v6733_v2 = vpop.f32.mrf.mxu1  ;;  %v7780_v46 = vld [vmem:[#allocation81_spill] sm:$0xff]  ;;  %v7782_v63 = vld [vmem:[#allocation82_spill] sm:$0xff] }
 0x378   : > { %7764 = vst [vmem:[#allocation68_spill] sm:$0xff] %v6694_v19  ;;  %7772 = vst [vmem:[#allocation75_spill] sm:$0xff] %v6710_v16  ;;  %v2880_v19 = vadd.f32 %v6662_v61, %v2449_v42  ;;  %v6729_v16 = vadd.f32 %v7778_v30, %v6454_v14  ;;  %v3771_v42 = vmul.f32 -1.442695, %v2975_v18  ;;  %v2455_v38 = vadd.f32 %v2454_v40, %v6254_v44  ;;  %v7784_v30 = vld [vmem:[#allocation83_spill] sm:$0xff]  ;;  %v2458_v18 = vpop.f32.mrf.mxu0 }
 0x379   : > { %7775 = vst [vmem:[#allocation76_spill] sm:$0xff] %v6721_v60  ;;  %7777 = vst [vmem:[#allocation77_spill] sm:$0xff] %v6725_v24  ;;  %v6738_v60 = vadd.f32 %v7780_v46, %v6452_v4  ;;  %v6742_v24 = vadd.f32 %v7782_v63, %v6454_v14  ;;  %v2976_v44 = vadd.f32 %v2882_v36, %v6482_v22  ;;  %v7787_v46 = vld [vmem:[#allocation85_spill] sm:$0xff]  ;;  %v7789_v63 = vld [vmem:[#allocation86_spill] sm:$0xff]  ;;  %v6768_v36 = vpop.f32.mrf.mxu1 }
 0x37a   : > { %7779 = vst [vmem:[#allocation78_spill] sm:$0xff] %v6729_v16  ;;  %v3199_v45 = vadd.f32 %v2880_v19, %v6478_v48  ;;  %v6746_v16 = vadd.f32 %v7784_v30, %v6452_v4  ;;  %v7786_v19 = vld [vmem:[#allocation84_spill] sm:$0xff]  ;;  %4266 = vpow2.f32 %v3771_v42  ;;  %v2883_v40 = vadd.f32 %v6662_v61, %v2455_v38  ;;  %v7791_v30 = vld [vmem:[#allocation87_spill] sm:$0xff]  ;;  %v2460_v42 = vpop.f32.mrf.mxu0 }
 0x37b   : > { %7781 = vst [vmem:[#allocation79_spill] sm:$0xff] %v6738_v60  ;;  %7783 = vst [vmem:[#allocation80_spill] sm:$0xff] %v6742_v24  ;;  %v6750_v48 = vadd.f32 %v7786_v19, %v6454_v14  ;;  %v6756_v60 = vadd.f32 %v7787_v46, %v6452_v4  ;;  %v6760_v24 = vadd.f32 %v7789_v63, %v6454_v14  ;;  %v7792_v46 = vld [vmem:[#allocation88_spill] sm:$0xff]  ;;  %v7793_v63 = vld [vmem:[#allocation89_spill] sm:$0xff] }
 0x37c   : > { %7785 = vst [vmem:[#allocation81_spill] sm:$0xff] %v6746_v16  ;;  %v3803_v43 = vmul.f32 -1.442695, %v3199_v45  ;;  %v6764_v16 = vadd.f32 %v7791_v30, %v6452_v4  ;;  %v2459_v19 = vadd.f32 %v2458_v18, %v6256_v15  ;;  %v3772_v45 = vmul.f32 -1.442695, %v2976_v44  ;;  %v7794_v30 = vld [vmem:[#allocation90_spill] sm:$0xff] }
 0x37d   : > { %7788 = vst [vmem:[#allocation82_spill] sm:$0xff] %v6756_v60  ;;  %7790 = vst [vmem:[#allocation83_spill] sm:$0xff] %v6760_v24  ;;  %v3200_v22 = vadd.f32 %v2883_v40, %v6494_v20  ;;  %v2461_v38 = vadd.f32 %v2460_v42, %v6260_v56  ;;  %v6773_v60 = vadd.f32 %v7792_v46, %v6454_v14  ;;  %v7796_v40 = vld [vmem:[#allocation91_spill] sm:$0xff]  ;;  %v7798_v46 = vld [vmem:[#allocation92_spill] sm:$0xff] }
 0x37e   : > { %4268 = vpow2.f32 %v3803_v43  ;;  %v6777_v24 = vadd.f32 %v7793_v63, %v6452_v4  ;;  %v6781_v15 = vadd.f32 %v7794_v30, %v6454_v14  ;;  %v2885_v18 = vadd.f32 %v6630_v1, %v2459_v19  ;;  %v2464_v43 = vpop.f32.mrf.mxu0  ;;  %v7800_v30 = vld [vmem:[#allocation93_spill] sm:$0xff] }
 0x37f   : > { %4270 = vpow2.f32 %v3772_v45  ;;  %v3804_v20 = vmul.f32 -1.442695, %v3200_v22  ;;  %v2886_v44 = vadd.f32 %v6662_v61, %v2461_v38  ;;  %v2465_v56 = vadd.f32 %v2464_v43, %v6262_v51  ;;  %v6799_v22 = vpop.f32.mrf.mxu1 }
 0x380   : > { %7795 = vst [vmem:[#allocation84_spill] sm:$0xff] %v6781_v15  ;;  %v6788_v42 = vadd.f32 %v7796_v40, %v6452_v4  ;;  %v6792_v63 = vadd.f32 %v7798_v46, %v6454_v14  ;;  %v6796_v15 = vadd.f32 %v7800_v30, %v6452_v4  ;;  %v2977_v19 = vadd.f32 %v2885_v18, %v6498_v25  ;;  %v2466_v45 = vpop.f32.mrf.mxu0  ;;  %v7802_v40 = vld [vmem:[#allocation94_spill] sm:$0xff]  ;;  %v7804_v25 = vld [vmem:[#allocation96_spill] sm:$0xff] }
 0x381   : > { %4272 = vpow2.f32 %v3804_v20  ;;  %v3201_v51 = vadd.f32 %v2886_v44, %v6512_v6  ;;  %v2888_v38 = vadd.f32 %v6630_v1, %v2465_v56  ;;  %v2467_v43 = vadd.f32 %v2466_v45, %v6266_v9  ;;  %v7806_v56 = vld [vmem:[#allocation97_spill] sm:$0xff] }
 0x382   : > { %7797 = vst [vmem:[#allocation85_spill] sm:$0xff] %v6788_v42  ;;  %7799 = vst [vmem:[#allocation86_spill] sm:$0xff] %v6792_v63  ;;  %v6806_v46 = vadd.f32 %v7802_v40, %v6454_v14  ;;  %v7803_v63 = vld [vmem:[#allocation95_spill] sm:$0xff]  ;;  %v6814_v18 = vadd.f32 %v7804_v25, %v6454_v14  ;;  %v3773_v20 = vmul.f32 -1.442695, %v2977_v19  ;;  %v6821_v45 = vadd.f32 %v7806_v56, %v6452_v4  ;;  %v7812_v56 = vld [vmem:[#allocation101_spill] sm:$0xff] }
 0x383   : > { %7801 = vst [vmem:[#allocation87_spill] sm:$0xff] %v6796_v15  ;;  %v6810_v30 = vadd.f32 %v7803_v63, %v6452_v4  ;;  %v2470_v15 = vpop.f32.mrf.mxu0  ;;  %v3805_v42 = vmul.f32 -1.442695, %v3201_v51  ;;  %v2978_v6 = vadd.f32 %v2888_v38, %v6516_v54  ;;  %v2889_v44 = vadd.f32 %v6662_v61, %v2467_v43  ;;  %v7807_v63 = vld [vmem:[#allocation98_spill] sm:$0xff]  ;;  %v7808_v25 = vld [vmem:[#allocation99_spill] sm:$0xff]  ;;  %v6831_v54 = vpop.f32.mrf.mxu1  ;;  %v7810_v38 = vld [vmem:[#allocation100_spill] sm:$0xff] }
 0x384   : > { %7805 = vst [vmem:[#allocation88_spill] sm:$0xff] %v6814_v18  ;;  %v2471_v9 = vadd.f32 %v2470_v15, %v6268_v5  ;;  %v6825_v40 = vadd.f32 %v7807_v63, %v6454_v14  ;;  %v6829_v18 = vadd.f32 %v7808_v25, %v6452_v4  ;;  %4274 = vpow2.f32 %v3773_v20  ;;  %v7814_v25 = vld [vmem:[#allocation102_spill] sm:$0xff] }
 0x385   : > { %v2472_v19 = vpop.f32.mrf.mxu0  ;;  %4276 = vpow2.f32 %v3805_v42  ;;  %v3774_v51 = vmul.f32 -1.442695, %v2978_v6  ;;  %v3202_v5 = vadd.f32 %v2889_v44, %v6528_v8  ;;  %v6837_v43 = vadd.f32 %v7810_v38, %v6454_v14  ;;  %v7816_v38 = vld [vmem:[#allocation103_spill] sm:$0xff] }
 0x386   : > { %7809 = vst [vmem:[#allocation89_spill] sm:$0xff] %v6829_v18  ;;  %v2891_v15 = vadd.f32 %v6630_v1, %v2471_v9  ;;  %v6841_v63 = vadd.f32 %v7812_v56, %v6452_v4  ;;  %v6845_v20 = vadd.f32 %v7814_v25, %v6454_v14  ;;  %v2473_v42 = vadd.f32 %v2472_v19, %v6272_v47  ;;  %v7817_v56 = vld [vmem:[#allocation104_spill] sm:$0xff]  ;;  %v7819_v25 = vld [vmem:[#allocation105_spill] sm:$0xff] }
 0x387   : > { %7811 = vst [vmem:[#allocation90_spill] sm:$0xff] %v6837_v43  ;;  %v2476_v18 = vpop.f32.mrf.mxu0  ;;  %4278 = vpow2.f32 %v3774_v51  ;;  %v3806_v6 = vmul.f32 -1.442695, %v3202_v5  ;;  %v4267_v9 = vpop.eup %4266  ;;  %v6852_v43 = vadd.f32 %v7816_v38, %v6452_v4 }
 0x388   : > { %7813 = vst [vmem:[#allocation91_spill] sm:$0xff] %v6841_v63  ;;  %7815 = vst [vmem:[#allocation92_spill] sm:$0xff] %v6845_v20  ;;  %v2979_v8 = vadd.f32 %v2891_v15, %v6532_v7  ;;  %v2477_v44 = vadd.f32 %v2476_v18, %v6274_v58  ;;  %v6856_v63 = vadd.f32 %v7817_v56, %v6454_v14  ;;  %v3103_v51 = vadd.f32 1.0, %v4267_v9  ;;  %v6863_v7 = vpop.f32.mrf.mxu1  ;;  %v7821_v15 = vld [vmem:[#allocation106_spill] sm:$0xff] }
 0x389   : > { %v6860_v20 = vadd.f32 %v7819_v25, %v6452_v4  ;;  %v2892_v47 = vadd.f32 %v6662_v61, %v2473_v42  ;;  %v2478_v19 = vpop.f32.mrf.mxu0  ;;  %4280 = vpow2.f32 %v3806_v6  ;;  %v6868_v38 = vadd.f32 %v7821_v15, %v6454_v14 }
 0x38a   : > { %7818 = vst [vmem:[#allocation93_spill] sm:$0xff] %v6856_v63  ;;  %v3775_v58 = vmul.f32 -1.442695, %v2979_v8  ;;  %v2894_v18 = vadd.f32 %v6630_v1, %v2477_v44  ;;  %v7823_v56 = vsub.s32 2, %v5222_v33  ;;  %v2479_v9 = vadd.f32 %v2478_v19, %v6278_v53  ;;  %v2733_v19 = vpop.f32.mrf.mxu1  ;;  %v7884_v63 = vld [vmem:[#allocation72_spill] sm:$0xff] }
 0x38b   : > { %7820 = vst [vmem:[#allocation94_spill] sm:$0xff] %v6860_v20  ;;  %v4269_v5 = vpop.eup %4268  ;;  %7822 = vst [vmem:[#allocation95_spill] sm:$0xff] %v6868_v38  ;;  %v3203_v42 = vadd.f32 %v2892_v47, %v6548_v29  ;;  %v2482_v25 = vpop.f32.mrf.mxu0  ;;  %4282 = vrcp.f32 %v3103_v51  ;;  %v2709_v6 = vadd.f32 %v6648_v31, %v6296_v55  ;;  %v2704_v33 = vadd.f32 %v6690_v35, %v6304_v3 }
 0x38c   : > { %v6873_v4 = vrot.slane %v6577_v62, %v7823_v56  ;;  %v2980_v8 = vadd.f32 %v2894_v18, %v6552_v37  ;;  %v2483_v44 = vadd.f32 %v2482_v25, %v6280_v41  ;;  %v4271_v14 = vpop.eup %4270  ;;  %4284 = vpow2.f32 %v3775_v58 }
 0x38d   : > { %v3807_v62 = vmul.f32 -1.442695, %v3203_v42  ;;  %v2895_v15 = vadd.f32 %v6662_v61, %v2479_v9  ;;  %v2484_v29 = vpop.f32.mrf.mxu0  ;;  %v3327_v47 = vadd.f32 1.0, %v4269_v5  ;;  %v3104_v53 = vadd.f32 1.0, %v4271_v14  ;;  %v6897_v9 = vpop.f32.mrf.mxu1 }
 0x38e   : > { %v3776_v51 = vmul.f32 -1.442695, %v2980_v8  ;;  %v2897_v56 = vadd.f32 %v6630_v1, %v2483_v44  ;;  %v4273_v55 = vpop.eup %4272  ;;  %v2719_v31 = vadd.f32 %v6733_v2, %v6308_v32  ;;  %v2485_v3 = vadd.f32 %v2484_v29, %v6284_v0 }
 0x38f   : > { %4286 = vpow2.f32 %v3807_v62  ;;  %v3204_v41 = vadd.f32 %v2895_v15, %v6564_v50  ;;  %v2488_v37 = vpop.f32.mrf.mxu0  ;;  %v6890_v35 = vadd.f32 %v6873_v4, %v2709_v6  ;;  %v2714_v58 = vadd.f32 %v6768_v36, %v6316_v59 }
 0x390   : > { %4288 = vrcp.f32 %v3104_v53  ;;  %v2981_v18 = vadd.f32 %v2897_v56, %v6568_v11  ;;  %v2881_v5 = vadd.f32 %v6873_v4, %v2704_v33  ;;  %v2898_v32 = vadd.f32 %v6662_v61, %v2485_v3 }
 0x391   : > { %4290 = vpow2.f32 %v3776_v51  ;;  %v3808_v42 = vmul.f32 -1.442695, %v3204_v41  ;;  %v2490_v2 = vpop.f32.mrf.mxu0  ;;  %v4275_v50 = vpop.eup %4274  ;;  %v3328_v0 = vadd.f32 1.0, %v4273_v55  ;;  %v2489_v6 = vadd.f32 %v2488_v37, %v6286_v57 }
 0x392   : > { %4292 = vrcp.f32 %v3327_v47  ;;  %v3777_v25 = vmul.f32 -1.442695, %v2981_v18  ;;  %v4277_v8 = vpop.eup %4276  ;;  %v6901_v59 = vadd.f32 %v6873_v4, %v2719_v31  ;;  %v3105_v11 = vadd.f32 1.0, %v4275_v50 }
 0x393   : > { %4294 = vpow2.f32 %v3808_v42  ;;  %v3205_v36 = vadd.f32 %v2898_v32, %v6585_v27  ;;  %v2494_v44 = vpop.f32.mrf.mxu0  ;;  %v6905_v14 = vadd.f32 %v6873_v4, %v2714_v58  ;;  %v2900_v33 = vadd.f32 %v6630_v1, %v2489_v6  ;;  %v2743_v27 = vpop.f32.mrf.mxu1 }
 0x394   : > { %4296 = vpow2.f32 %v3777_v25  ;;  %v2491_v62 = vadd.f32 %v2490_v2, %v6290_v28  ;;  %v4279_v15 = vpop.eup %4278  ;;  %v2729_v57 = vadd.f32 %v6799_v22, %v6322_v12  ;;  %v3329_v29 = vadd.f32 1.0, %v4277_v8 }
 0x395   : > { %4298 = vrcp.f32 %v3105_v11  ;;  %v3809_v47 = vmul.f32 -1.442695, %v3205_v36  ;;  %v2496_v53 = vpop.f32.mrf.mxu0  ;;  %v3106_v51 = vadd.f32 1.0, %v4279_v15  ;;  %v2982_v56 = vadd.f32 %v2900_v33, %v6589_v10  ;;  %v7825_v36 = vld [vmem:[#allocation43_spill] sm:$0xff]  ;;  %v7826_v15 = vld [vmem:[#allocation168_spill] sm:$0xff] }
 0x396   : > { %4300 = vrcp.f32 %v3328_v0  ;;  %v2901_v55 = vadd.f32 %v6662_v61, %v2491_v62  ;;  %v4281_v31 = vpop.eup %4280  ;;  %v2724_v41 = vadd.f32 %v6831_v54, %v6330_v26  ;;  %v2739_v28 = vadd.f32 %v6863_v7, %v6334_v39 }
 0x397   : > { %4302 = vpow2.f32 %v3809_v47  ;;  %v2495_v12 = vadd.f32 %v2494_v44, %v6292_v23  ;;  %v2500_v22 = vpop.f32.mrf.mxu0  ;;  %v3330_v3 = vadd.f32 1.0, %v4281_v31  ;;  %v3778_v37 = vmul.f32 -1.442695, %v2982_v56  ;;  %v4194_v23 = vpop.f32.mrf.mxu1  ;;  %v7827_v56 = vld [vmem:[#allocation118_spill] sm:$0xff] }
 0x398   : > { %4304 = vrcp.f32 %v3106_v51  ;;  %v3206_v58 = vadd.f32 %v2901_v55, %v6593_v21  ;;  %v4283_v18 = vpop.eup %4282  ;;  %v2734_v10 = vadd.f32 %v2733_v19, %v6342_v52  ;;  %v2497_v26 = vadd.f32 %v2496_v53, %v6298_v17  ;;  %v7824_v21 = vld [vmem:[#allocation40_spill] sm:$0xff] }
 0x399   : > { %4306 = vrcp.f32 %v3329_v29  ;;  %v2903_v42 = vadd.f32 %v6630_v1, %v2495_v12  ;;  %v2502_v54 = vpop.f32.mrf.mxu0  ;;  %v4285_v32 = vpop.eup %4284  ;;  %v3423_v39 = vmul.f32 %v4283_v18, %v6474_v34  ;;  %v2501_v2 = vadd.f32 %v2500_v22, %v6300_v49 }
 0x39a   : > { %4308 = vrcp.f32 %v3330_v3  ;;  %v3810_v7 = vmul.f32 -1.442695, %v3206_v58  ;;  %v3107_v50 = vadd.f32 1.0, %v4285_v32  ;;  %v2904_v25 = vadd.f32 %v6662_v61, %v2497_v26  ;;  %v7830_v26 = vld [vmem:[#allocation108_spill] sm:$0xff] }
 0x39b   : > { %4310 = vpow2.f32 %v3778_v37  ;;  %v2983_v0 = vadd.f32 %v2903_v42, %v7824_v21  ;;  %v2506_v52 = vpop.f32.mrf.mxu0  ;;  %v3455_v6 = vadd.f32 %v3423_v39, %v2881_v5  ;;  %v6927_v17 = vadd.f32 %v6873_v4, %v2729_v57  ;;  %v2753_v57 = vpop.f32.mrf.mxu1  ;;  %v7829_v37 = vld [vmem:[#allocation46_spill] sm:$0xff] }
 0x39c   : > { %v4287_v19 = vpop.eup %4286  ;;  %v6930_v8 = vadd.f32 %v6873_v4, %v2724_v41  ;;  %4312 = vpow2.f32 %v3810_v7  ;;  %v3207_v44 = vadd.f32 %v2904_v25, %v7825_v36  ;;  %v6937_v5 = vadd.f32 %v6873_v4, %v2739_v28  ;;  %v7828_v28 = vld [vmem:[#allocation121_spill] sm:$0xff]  ;;  %v7831_v7 = vld [vmem:[#allocation123_spill] sm:$0xff] }
 0x39d   : > { %v4289_v34 = vpop.eup %4288  ;;  %4314 = vrcp.f32 %v3107_v50  ;;  %v3331_v11 = vadd.f32 1.0, %v4287_v19  ;;  %v3779_v49 = vmul.f32 -1.442695, %v2983_v0  ;;  %v6933_v33 = vpop.f32.mrf.mxu0  ;;  %v2906_v47 = vadd.f32 %v6630_v1, %v2501_v2  ;;  %v7833_v19 = vld [vmem:[#allocation126_spill] sm:$0xff]  ;;  %v7834_v36 = vld [vmem:[#allocation109_spill] sm:$0xff] }
 0x39e   : > { %v4291_v62 = vpop.eup %4290  ;;  %4316 = vtanh.f32 %v3455_v6  ;;  %v3424_v29 = vmul.f32 %v4289_v34, %v7826_v15  ;;  %v6943_v51 = vadd.f32 %v6873_v4, %v2734_v10  ;;  %v2749_v55 = vadd.f32 %v6897_v9, %v7827_v56  ;;  %v4197_v21 = vpop.f32.mrf.mxu1 }
 0x39f   : > { %v6940_v53 = vpop.eup %4292  ;;  %4318 = vrcp.f32 %v3331_v11  ;;  %v3108_v31 = vadd.f32 1.0, %v4291_v62  ;;  %v6947_v41 = vpop.f32.mrf.mxu0  ;;  %v2744_v3 = vadd.f32 %v2743_v27, %v7828_v28  ;;  %v2984_v58 = vadd.f32 %v2906_v47, %v7829_v37  ;;  %v7832_v27 = vld [vmem:[#allocation172_spill] sm:$0xff] }
 0x3a0   : > { %v4295_v12 = vpop.eup %4294  ;;  %v3456_v22 = vadd.f32 %v3424_v29, %v6890_v35  ;;  %4320 = vpow2.f32 %v3779_v49  ;;  %v3811_v10 = vmul.f32 -1.442695, %v3207_v44  ;;  %v2503_v32 = vadd.f32 %v2502_v54, %v7830_v26  ;;  %v7837_v26 = vld [vmem:[#allocation128_spill] sm:$0xff] }
 0x3a1   : > { %v4297_v18 = vpop.eup %4296  ;;  %4322 = vrcp.f32 %v3108_v31  ;;  %v3332_v42 = vadd.f32 1.0, %v4295_v12  ;;  %v6953_v39 = vpop.f32.mrf.mxu0  ;;  %v2759_v2 = vadd.f32 %v4194_v23, %v7831_v7  ;;  %v3780_v35 = vmul.f32 -1.442695, %v2984_v58  ;;  %v7836_v12 = vld [vmem:[#allocation171_spill] sm:$0xff] }
 0x3a2   : > { %v4299_v9 = vpop.eup %4298  ;;  %4324 = vtanh.f32 %v3456_v22  ;;  %v3109_v50 = vadd.f32 1.0, %v4297_v18  ;;  %v2754_v6 = vadd.f32 %v2753_v57, %v7833_v19  ;;  %v2907_v34 = vadd.f32 %v6662_v61, %v2503_v32  ;;  %v7835_v57 = vld [vmem:[#allocation51_spill] sm:$0xff] }
 0x3a3   : > { %v6956_v0 = vpop.eup %4300  ;;  %v3425_v25 = vmul.f32 %v4299_v9, %v7832_v27  ;;  %4326 = vrcp.f32 %v3332_v42  ;;  %v6961_v11 = vpop.f32.mrf.mxu0  ;;  %v6964_v49 = vadd.f32 %v6873_v4, %v2749_v55  ;;  %v6967_v23 = vadd.f32 %v6873_v4, %v2744_v3  ;;  %v7838_v9 = vld [vmem:[#allocation110_spill] sm:$0xff] }
 0x3a4   : > { %v4303_v54 = vpop.eup %4302  ;;  %4328 = vrcp.f32 %v3109_v50  ;;  %v2507_v44 = vadd.f32 %v2506_v52, %v7834_v36  ;;  %v3208_v47 = vadd.f32 %v2907_v34, %v7835_v57  ;;  %v3519_v55 = vsub.f32 1.0, %v6940_v53  ;;  %v2763_v3 = vpop.f32.mrf.mxu1  ;;  %v7839_v50 = vld [vmem:[#allocation131_spill] sm:$0xff] }
 0x3a5   : > { %v4305_v62 = vpop.eup %4304  ;;  %v3457_v15 = vadd.f32 %v3425_v25, %v6905_v14  ;;  %v3333_v29 = vadd.f32 1.0, %v4303_v54  ;;  %4330 = vpow2.f32 %v3811_v10  ;;  %v6972_v56 = vpop.f32.mrf.mxu0  ;;  %v6979_v28 = vadd.f32 %v6873_v4, %v2759_v2  ;;  %v7840_v25 = vld [vmem:[#allocation50_spill] sm:$0xff] }
 0x3a6   : > { %v6974_v31 = vpop.eup %4306  ;;  %v3426_v22 = vmul.f32 %v4305_v62, %v7836_v12  ;;  %4332 = vpow2.f32 %v3780_v35  ;;  %v6984_v14 = vadd.f32 %v6873_v4, %v2754_v6  ;;  %v3812_v37 = vmul.f32 -1.442695, %v3208_v47  ;;  %v4587_v54 = vld [vmem:[%s4754_s10] sm:$0xff] }
 0x3a7   : > { %v6981_v52 = vpop.eup %4308  ;;  %4334 = vtanh.f32 %v3457_v15  ;;  %v2909_v58 = vadd.f32 %v6630_v1, %v2507_v44  ;;  %v6987_v18 = vpop.f32.mrf.mxu0  ;;  %v2769_v32 = vadd.f32 %v4197_v21, %v7837_v26  ;;  %v2509_v7 = vadd.f32 %v6933_v33, %v7838_v9  ;;  %v7841_v15 = vld [vmem:[#allocation175_spill] sm:$0xff] }
 0x3a8   : > { %v4311_v42 = vpop.eup %4310  ;;  %v3458_v10 = vadd.f32 %v3426_v22, %v6901_v59  ;;  %4336 = vrcp.f32 %v3333_v29  ;;  %v2764_v35 = vadd.f32 %v2763_v3, %v7839_v50  ;;  %v3551_v36 = vmul.f32 %v4587_v54, %v3519_v55  ;;  %v4200_v59 = vpop.f32.mrf.mxu1  ;;  %v7842_v55 = vld [vmem:[#allocation55_spill] sm:$0xff] }
 0x3a9   : > { %v4313_v2 = vpop.eup %4312  ;;  %v3110_v27 = vadd.f32 1.0, %v4311_v42  ;;  %4338 = vpow2.f32 %v3812_v37  ;;  %v2985_v19 = vadd.f32 %v2909_v58, %v7840_v25  ;;  %v6995_v6 = vpop.f32.mrf.mxu0  ;;  %v2910_v44 = vadd.f32 %v6662_v61, %v2509_v7  ;;  %v7843_v37 = vld [vmem:[#allocation111_spill] sm:$0xff] }
 0x3aa   : > { %v4315_v34 = vpop.eup %4314  ;;  %4340 = vtanh.f32 %v3458_v10  ;;  %v3334_v21 = vadd.f32 1.0, %v4313_v2  ;;  %v3520_v33 = vsub.f32 1.0, %v6956_v0  ;;  %v2513_v58 = vadd.f32 %v6947_v41, %v7843_v37  ;;  %v2773_v50 = vpop.f32.mrf.mxu1  ;;  %v4588_v54 = vld [vmem:[%s4754_s10 + $0x8] sm:$0xff] }
 0x3ab   : > { %v4317_v62 = vpop.eup %4316  ;;  %v3427_v29 = vmul.f32 %v4315_v34, %v7841_v15  ;;  %4342 = vrcp.f32 %v3110_v27  ;;  %v3781_v57 = vmul.f32 -1.442695, %v2985_v19  ;;  %v7001_v47 = vpop.f32.mrf.mxu0  ;;  %v3209_v3 = vadd.f32 %v2910_v44, %v7842_v55  ;;  %v7846_v15 = vld [vmem:[#allocation54_spill] sm:$0xff] }
 0x3ac   : > { %v7003_v12 = vpop.eup %4318  ;;  %v3583_v22 = vmul.f32 %v4317_v62, %v6940_v53  ;;  %4344 = vrcp.f32 %v3334_v21  ;;  %v7018_v26 = vadd.f32 %v6873_v4, %v2769_v32  ;;  %v7844_v53 = vld [vmem:[#allocation133_spill] sm:$0xff]  ;;  %v2912_v19 = vadd.f32 %v6630_v1, %v2513_v58 }
 0x3ad   : > { %v4321_v42 = vpop.eup %4320  ;;  %v3459_v10 = vadd.f32 %v3427_v29, %v6930_v8  ;;  %v2779_v9 = vadd.f32 %v4200_v59, %v7844_v53  ;;  %4346 = vpow2.f32 %v3781_v57  ;;  %v7021_v7 = vpop.f32.mrf.mxu0  ;;  %v3813_v25 = vmul.f32 -1.442695, %v3209_v3  ;;  %v7845_v8 = vld [vmem:[#allocation174_spill] sm:$0xff]  ;;  %v7847_v57 = vld [vmem:[#allocation112_spill] sm:$0xff] }
 0x3ae   : > { %v4323_v2 = vpop.eup %4322  ;;  %v3615_v41 = vadd.f32 %v3583_v22, %v3551_v36  ;;  %v3111_v27 = vadd.f32 1.0, %v4321_v42  ;;  %v3552_v21 = vmul.f32 %v4588_v54, %v3520_v33  ;;  %v7027_v44 = vadd.f32 %v6873_v4, %v2764_v35  ;;  %v7848_v42 = vld [vmem:[#allocation177_spill] sm:$0xff]  ;;  %v4203_v53 = vpop.f32.mrf.mxu1 }
 0x3af   : > { %v4325_v34 = vpop.eup %4324  ;;  %4348 = vtanh.f32 %v3459_v10  ;;  %v3428_v32 = vmul.f32 %v4323_v2, %v7845_v8  ;;  %v7029_v59 = vpop.f32.mrf.mxu0  ;;  %v2986_v29 = vadd.f32 %v2912_v19, %v7846_v15  ;;  %v2515_v22 = vadd.f32 %v6953_v39, %v7847_v57  ;;  %v7850_v8 = vld [vmem:[#allocation59_spill] sm:$0xff]  ;;  %v7851_v15 = vld [vmem:[#allocation4_spill] sm:$0xff] }
 0x3b0   : > { %v7031_v62 = vpop.eup %4326  ;;  %3647 = vst [vmem:[%s7014_s23] sm:$0xff] %v3615_v41  ;;  %v3584_v36 = vmul.f32 %v4325_v34, %v6956_v0  ;;  %4350 = vrcp.f32 %v3111_v27  ;;  %v3521_v55 = vsub.f32 1.0, %v6974_v31  ;;  %v7041_v35 = vadd.f32 %v6873_v4, %v2779_v9 }
 0x3b1   : > { %v4329_v33 = vpop.eup %4328  ;;  %v3460_v3 = vadd.f32 %v3428_v32, %v6927_v17  ;;  %4352 = vpow2.f32 %v3813_v25  ;;  %v7043_v37 = vpop.f32.mrf.mxu0  ;;  %v3782_v2 = vmul.f32 -1.442695, %v2986_v29  ;;  %v2913_v39 = vadd.f32 %v6662_v61, %v2515_v22  ;;  %v7849_v17 = vld [vmem:[#allocation136_spill] sm:$0xff]  ;;  %v7852_v22 = vld [vmem:[#allocation113_spill] sm:$0xff] }
 0x3b2   : > { %v4331_v58 = vpop.eup %4330  ;;  %v3616_v0 = vadd.f32 %v3584_v36, %v3552_v21  ;;  %v3429_v10 = vmul.f32 %v4329_v33, %v7848_v42  ;;  %v3522_v27 = vsub.f32 1.0, %v6981_v52  ;;  %v2774_v19 = vadd.f32 %v2773_v50, %v7849_v17 }
 0x3b3   : > { %v4333_v41 = vpop.eup %4332  ;;  %4354 = vtanh.f32 %v3460_v3  ;;  %v3335_v9 = vadd.f32 1.0, %v4331_v58  ;;  %v7049_v34 = vpop.f32.mrf.mxu0  ;;  %v3210_v32 = vadd.f32 %v2913_v39, %v7850_v8  ;;  %v3553_v29 = vmul.f32 %v3521_v55, %v7851_v15  ;;  %v7853_v58 = vld [vmem:[#allocation138_spill] sm:$0xff] }
 0x3b4   : > { %v4335_v25 = vpop.eup %4334  ;;  %3648 = vst [vmem:[%s7014_s23 + $0x8] sm:$0xff] %v3616_v0  ;;  %v3461_v54 = vadd.f32 %v3429_v10, %v6943_v51  ;;  %v3112_v21 = vadd.f32 1.0, %v4333_v41  ;;  %4356 = vpow2.f32 %v3782_v2  ;;  %v2519_v50 = vadd.f32 %v6961_v11, %v7852_v22  ;;  %v2783_v0 = vpop.f32.mrf.mxu1  ;;  %v7854_v10 = vld [vmem:[#allocation114_spill] sm:$0xff] }
 0x3b5   : > { %v7054_v36 = vpop.eup %4336  ;;  %v3585_v57 = vmul.f32 %v4335_v25, %v6974_v31  ;;  %4358 = vrcp.f32 %v3335_v9  ;;  %v7060_v33 = vpop.f32.mrf.mxu0  ;;  %v2789_v51 = vadd.f32 %v4203_v53, %v7853_v58  ;;  %v3814_v42 = vmul.f32 -1.442695, %v3210_v32  ;;  %v7855_v9 = vld [vmem:[#allocation6_spill] sm:$0xff]  ;;  %v7858_v58 = vld [vmem:[#allocation115_spill] sm:$0xff] }
 0x3b6   : > { %v4339_v3 = vpop.eup %4338  ;;  %4360 = vtanh.f32 %v3461_v54  ;;  %v2521_v2 = vadd.f32 %v6972_v56, %v7854_v10  ;;  %v2915_v41 = vadd.f32 %v6630_v1, %v2519_v50  ;;  %v3554_v25 = vmul.f32 %v3522_v27, %v7855_v9  ;;  %v7856_v56 = vld [vmem:[#allocation176_spill] sm:$0xff]  ;;  %v7857_v15 = vld [vmem:[#allocation58_spill] sm:$0xff] }
 0x3b7   : > { %v4341_v39 = vpop.eup %4340  ;;  %v3617_v55 = vadd.f32 %v3585_v57, %v3553_v29  ;;  %4362 = vrcp.f32 %v3112_v21  ;;  %v3336_v31 = vadd.f32 1.0, %v4339_v3  ;;  %v7066_v17 = vpop.f32.mrf.mxu0  ;;  %v3523_v53 = vsub.f32 1.0, %v7003_v12  ;;  %v7860_v9 = vld [vmem:[#allocation8_spill] sm:$0xff] }
 0x3b8   : > { %v4343_v11 = vpop.eup %4342  ;;  %v3586_v54 = vmul.f32 %v4341_v39, %v6981_v52  ;;  %4364 = vpow2.f32 %v3814_v42  ;;  %v7076_v21 = vadd.f32 %v6873_v4, %v2774_v19  ;;  %v2987_v29 = vadd.f32 %v2915_v41, %v7857_v15  ;;  %v4206_v3 = vpop.f32.mrf.mxu1 }
 0x3b9   : > { %v7071_v8 = vpop.eup %4344  ;;  %3649 = vst [vmem:[%s7014_s23 + $0x10] sm:$0xff] %v3617_v55  ;;  %v3430_v32 = vmul.f32 %v4343_v11, %v7856_v56  ;;  %v2916_v57 = vadd.f32 %v6662_v61, %v2521_v2  ;;  %v7080_v22 = vpop.f32.mrf.mxu0  ;;  %v3524_v50 = vsub.f32 1.0, %v7031_v62  ;;  %4366 = vrcp.f32 %v3336_v31  ;;  %v7859_v55 = vld [vmem:[#allocation63_spill] sm:$0xff] }
 0x3ba   : > { %v4347_v27 = vpop.eup %4346  ;;  %v3618_v52 = vadd.f32 %v3586_v54, %v3554_v25  ;;  %v2525_v42 = vadd.f32 %v6987_v18, %v7858_v58  ;;  %v3783_v39 = vmul.f32 -1.442695, %v2987_v29  ;;  %v3555_v56 = vmul.f32 %v3523_v53, %v7860_v9  ;;  %v7861_v54 = vld [vmem:[#allocation141_spill] sm:$0xff]  ;;  %v7862_v29 = vld [vmem:[#allocation116_spill] sm:$0xff]  ;;  %v7863_v58 = vld [vmem:[#allocation10_spill] sm:$0xff]  ;;  %v2793_v9 = vpop.f32.mrf.mxu1 }
 0x3bb   : > { %v3462_v10 = vadd.f32 %v3430_v32, %v6937_v5  ;;  %v3113_v19 = vadd.f32 1.0, %v4347_v27  ;;  %v3211_v11 = vadd.f32 %v2916_v57, %v7859_v55  ;;  %v7087_v41 = vpop.f32.mrf.mxu0  ;;  %v7092_v25 = vadd.f32 %v6873_v4, %v2789_v51  ;;  %v7864_v55 = vld [vmem:[#allocation181_spill] sm:$0xff] }
 0x3bc   : > { %v4349_v2 = vpop.eup %4348  ;;  %3650 = vst [vmem:[%s7014_s23 + $0x18] sm:$0xff] %v3618_v52  ;;  %v2784_v31 = vadd.f32 %v2783_v0, %v7861_v54  ;;  %v2918_v15 = vadd.f32 %v6630_v1, %v2525_v42  ;;  %v2527_v57 = vadd.f32 %v6995_v6, %v7862_v29  ;;  %v3556_v53 = vmul.f32 %v3524_v50, %v7863_v58  ;;  %v7865_v0 = vld [vmem:[#allocation62_spill] sm:$0xff]  ;;  %v4209_v58 = vpop.f32.mrf.mxu1 }
 0x3bd   : > { %v4351_v18 = vpop.eup %4350  ;;  %v3587_v5 = vmul.f32 %v4349_v2, %v7003_v12  ;;  %4368 = vtanh.f32 %v3462_v10  ;;  %v3815_v32 = vmul.f32 -1.442695, %v3211_v11  ;;  %v7099_v27 = vpop.f32.mrf.mxu0  ;;  %v3525_v11 = vsub.f32 1.0, %v7054_v36 }
 0x3be   : > { %v4353_v52 = vpop.eup %4352  ;;  %v3431_v51 = vmul.f32 %v4351_v18, %v7864_v55  ;;  %4370 = vrcp.f32 %v3113_v19  ;;  %v2988_v42 = vadd.f32 %v2918_v15, %v7865_v0  ;;  %v2919_v12 = vadd.f32 %v6662_v61, %v2527_v57  ;;  %v7866_v15 = vld [vmem:[#allocation64_spill] sm:$0xff]  ;;  %v7867_v18 = vld [vmem:[#allocation117_spill] sm:$0xff] }
 0x3bf   : > { %v3619_v54 = vadd.f32 %v3587_v5, %v3555_v56  ;;  %v3337_v38 = vadd.f32 1.0, %v4353_v52  ;;  %4372 = vpow2.f32 %v3783_v39  ;;  %v7105_v10 = vpop.f32.mrf.mxu0  ;;  %v2531_v39 = vadd.f32 %v7001_v47, %v7867_v18 }
 0x3c0   : > { %v4355_v6 = vpop.eup %4354  ;;  %v3463_v2 = vadd.f32 %v3431_v51, %v6967_v23  ;;  %4374 = vpow2.f32 %v3815_v32  ;;  %v3784_v50 = vmul.f32 -1.442695, %v2988_v42  ;;  %v3212_v56 = vadd.f32 %v2919_v12, %v7866_v15  ;;  %v7868_v23 = vld [vmem:[#allocation143_spill] sm:$0xff]  ;;  %v7869_v51 = vld [vmem:[#allocation146_spill] sm:$0xff]  ;;  %v7870_v12 = vld [vmem:[#allocation12_spill] sm:$0xff] }
 0x3c1   : > { %v4357_v29 = vpop.eup %4356  ;;  %3651 = vst [vmem:[%s7014_s23 + $0x20] sm:$0xff] %v3619_v54  ;;  %v3588_v19 = vmul.f32 %v4355_v6, %v7031_v62  ;;  %4376 = vrcp.f32 %v3337_v38  ;;  %v7114_v5 = vpop.f32.mrf.mxu0  ;;  %v7119_v52 = vadd.f32 %v6873_v4, %v2784_v31  ;;  %v2799_v32 = vadd.f32 %v4206_v3, %v7868_v23  ;;  %v7871_v3 = vld [vmem:[#allocation180_spill] sm:$0xff]  ;;  %v7874_v23 = vld [vmem:[#allocation66_spill] sm:$0xff] }
 0x3c2   : > { %v7116_v57 = vpop.eup %4358  ;;  %4378 = vtanh.f32 %v3463_v2  ;;  %v3114_v55 = vadd.f32 1.0, %v4357_v29  ;;  %v2794_v0 = vadd.f32 %v2793_v9, %v7869_v51  ;;  %v3816_v42 = vmul.f32 -1.442695, %v3212_v56  ;;  %v7873_v9 = vld [vmem:[#allocation119_spill] sm:$0xff]  ;;  %v7875_v51 = vld [vmem:[#allocation120_spill] sm:$0xff] }
 0x3c3   : > { %v4361_v62 = vpop.eup %4360  ;;  %v3620_v38 = vadd.f32 %v3588_v19, %v3556_v53  ;;  %4380 = vpow2.f32 %v3784_v50  ;;  %v7123_v47 = vpop.f32.mrf.mxu0  ;;  %v3557_v6 = vmul.f32 %v3525_v11, %v7870_v12  ;;  %v2921_v31 = vadd.f32 %v6630_v1, %v2531_v39  ;;  %v7872_v53 = vld [vmem:[#allocation148_spill] sm:$0xff] }
 0x3c4   : > { %v4363_v54 = vpop.eup %4362  ;;  %v3589_v2 = vmul.f32 %v4361_v62, %v7054_v36  ;;  %4382 = vrcp.f32 %v3114_v55  ;;  %v2809_v19 = vadd.f32 %v4209_v58, %v7872_v53  ;;  %v2533_v50 = vadd.f32 %v7021_v7, %v7873_v9 }
 0x3c5   : > { %v4365_v15 = vpop.eup %4364  ;;  %3652 = vst [vmem:[%s7014_s23 + $0x28] sm:$0xff] %v3620_v38  ;;  %v3432_v29 = vmul.f32 %v4363_v54, %v7871_v3  ;;  %4384 = vpow2.f32 %v3816_v42  ;;  %v7133_v56 = vpop.f32.mrf.mxu0  ;;  %v3526_v11 = vsub.f32 1.0, %v7071_v8  ;;  %v2989_v55 = vadd.f32 %v2921_v31, %v7874_v23  ;;  %v7877_v3 = vld [vmem:[#allocation14_spill] sm:$0xff] }
 0x3c6   : > { %v3621_v18 = vadd.f32 %v3589_v2, %v3557_v6  ;;  %v3338_v36 = vadd.f32 1.0, %v4365_v15  ;;  %v7137_v39 = vpop.eup %4366  ;;  %v7141_v38 = vadd.f32 %v6873_v4, %v2799_v32  ;;  %v2922_v58 = vadd.f32 %v6662_v61, %v2533_v50  ;;  %v7876_v32 = vld [vmem:[#allocation68_spill] sm:$0xff] }
 0x3c7   : > { %v3464_v62 = vadd.f32 %v3432_v29, %v6964_v49  ;;  %v2537_v7 = vadd.f32 %v7029_v59, %v7875_v51  ;;  %v7146_v42 = vpop.f32.mrf.mxu0  ;;  %v3527_v54 = vsub.f32 1.0, %v7116_v57  ;;  %v7151_v12 = vadd.f32 %v6873_v4, %v2794_v0  ;;  %v7878_v0 = vld [vmem:[#allocation122_spill] sm:$0xff] }
 0x3c8   : > { %3653 = vst [vmem:[%s7014_s23 + $0x30] sm:$0xff] %v3621_v18  ;;  %4386 = vrcp.f32 %v3338_v36  ;;  %v3785_v6 = vmul.f32 -1.442695, %v2989_v55  ;;  %v7154_v49 = vadd.f32 %v6873_v4, %v2809_v19  ;;  %v3213_v2 = vadd.f32 %v2922_v58, %v7876_v32  ;;  %v7879_v36 = vld [vmem:[#allocation70_spill] sm:$0xff]  ;;  %v7880_v55 = vld [vmem:[#allocation124_spill] sm:$0xff] }
 0x3c9   : > { %4388 = vtanh.f32 %v3464_v62  ;;  %v2924_v31 = vadd.f32 %v6630_v1, %v2537_v7  ;;  %v7158_v15 = vpop.f32.mrf.mxu0  ;;  %v3558_v29 = vmul.f32 %v3526_v11, %v7877_v3  ;;  %v3528_v53 = vsub.f32 1.0, %v7137_v39  ;;  %v7881_v7 = vld [vmem:[#allocation16_spill] sm:$0xff]  ;;  %v7882_v32 = vld [vmem:[#allocation34_spill] sm:$0xff] }
 0x3ca   : > { %v4369_v59 = vpop.eup %4368  ;;  %4390 = vpow2.f32 %v3785_v6  ;;  %v2539_v9 = vadd.f32 %v7043_v37, %v7878_v0  ;;  %v3817_v19 = vmul.f32 -1.442695, %v3213_v2  ;;  %v2543_v62 = vadd.f32 %v7049_v34, %v7880_v55  ;;  %v7883_v37 = vld [vmem:[#allocation125_spill] sm:$0xff] }
 0x3cb   : > { %v4371_v50 = vpop.eup %4370  ;;  %v3590_v18 = vmul.f32 %v4369_v59, %v7071_v8  ;;  %v2990_v23 = vadd.f32 %v2924_v31, %v7879_v36  ;;  %v7168_v58 = vpop.f32.mrf.mxu0  ;;  %v3559_v11 = vmul.f32 %v3527_v54, %v7881_v7  ;;  %v2545_v0 = vadd.f32 %v7060_v33, %v7883_v37 }
 0x3cc   : > { %v4373_v51 = vpop.eup %4372  ;;  %v3433_v6 = vmul.f32 %v4371_v50, %v7882_v32  ;;  %v2925_v3 = vadd.f32 %v6662_v61, %v2539_v9  ;;  %4392 = vpow2.f32 %v3817_v19  ;;  %v2927_v54 = vadd.f32 %v6630_v1, %v2543_v62  ;;  %v7885_v9 = vld [vmem:[#allocation17_spill] sm:$0xff] }
 0x3cd   : > { %v4375_v8 = vpop.eup %4374  ;;  %v3622_v2 = vadd.f32 %v3590_v18, %v3558_v29  ;;  %v3115_v59 = vadd.f32 1.0, %v4373_v51  ;;  %v3786_v31 = vmul.f32 -1.442695, %v2990_v23  ;;  %v3560_v7 = vmul.f32 %v3528_v53, %v7885_v9  ;;  %v7886_v29 = vld [vmem:[#allocation127_spill] sm:$0xff]  ;;  %v7185_v19 = vpop.f32.mrf.mxu0 }
 0x3ce   : > { %v7175_v36 = vpop.eup %4376  ;;  %v3465_v34 = vadd.f32 %v3433_v6, %v6984_v14  ;;  %v3339_v55 = vadd.f32 1.0, %v4375_v8  ;;  %v3214_v20 = vadd.f32 %v2925_v3, %v7884_v63  ;;  %v2928_v33 = vadd.f32 %v6662_v61, %v2545_v0  ;;  %v7887_v63 = vld [vmem:[#allocation74_spill] sm:$0xff]  ;;  %v7888_v3 = vld [vmem:[#allocation75_spill] sm:$0xff] }
 0x3cf   : > { %v4379_v50 = vpop.eup %4378  ;;  %3654 = vst [vmem:[%s7014_s23 + $0x38] sm:$0xff] %v3622_v2  ;;  %4394 = vrcp.f32 %v3115_v59  ;;  %v2549_v18 = vadd.f32 %v7066_v17, %v7886_v29  ;;  %v2991_v32 = vadd.f32 %v2927_v54, %v7887_v63  ;;  %v3529_v6 = vsub.f32 1.0, %v7175_v36  ;;  %v7889_v17 = vld [vmem:[#allocation32_spill] sm:$0xff]  ;;  %v7193_v54 = vpop.f32.mrf.mxu0 }
 0x3d0   : > { %v4381_v23 = vpop.eup %4380  ;;  %v3591_v14 = vmul.f32 %v4379_v50, %v7116_v57  ;;  %4396 = vtanh.f32 %v3465_v34  ;;  %v3818_v51 = vmul.f32 -1.442695, %v3214_v20  ;;  %v3215_v37 = vadd.f32 %v2928_v33, %v7888_v3  ;;  %v7891_v33 = vld [vmem:[#allocation130_spill] sm:$0xff] }
 0x3d1   : > { %v4383_v62 = vpop.eup %4382  ;;  %4398 = vrcp.f32 %v3339_v55  ;;  %v3116_v53 = vadd.f32 1.0, %v4381_v23  ;;  %v3787_v59 = vmul.f32 -1.442695, %v2991_v32  ;;  %v2930_v20 = vadd.f32 %v6630_v1, %v2549_v18  ;;  %v7890_v55 = vld [vmem:[#allocation129_spill] sm:$0xff]  ;;  %v7893_v18 = vld [vmem:[#allocation132_spill] sm:$0xff]  ;;  %v7213_v3 = vpop.f32.mrf.mxu0 }
 0x3d2   : > { %v4385_v0 = vpop.eup %4384  ;;  %v3623_v8 = vadd.f32 %v3591_v14, %v3559_v11  ;;  %v3434_v2 = vmul.f32 %v4383_v62, %v7889_v17  ;;  %4400 = vpow2.f32 %v3786_v31  ;;  %v3819_v34 = vmul.f32 -1.442695, %v3215_v37  ;;  %v7892_v31 = vld [vmem:[#allocation18_spill] sm:$0xff] }
 0x3d3   : > { %4402 = vrcp.f32 %v3116_v53  ;;  %v3340_v57 = vadd.f32 1.0, %v4385_v0  ;;  %v2551_v9 = vadd.f32 %v7080_v22, %v7890_v55  ;;  %v2555_v11 = vadd.f32 %v7087_v41, %v7891_v33  ;;  %v7894_v22 = vld [vmem:[#allocation134_spill] sm:$0xff]  ;;  %v7895_v0 = vld [vmem:[#allocation76_spill] sm:$0xff]  ;;  %v7898_v55 = vld [vmem:[#allocation135_spill] sm:$0xff] }
 0x3d4   : > { %3655 = vst [vmem:[%s7014_s23 + $0x40] sm:$0xff] %v3623_v8  ;;  %v3466_v50 = vadd.f32 %v3434_v2, %v6979_v28  ;;  %4404 = vpow2.f32 %v3818_v51  ;;  %v3561_v23 = vmul.f32 %v3529_v6, %v7892_v31  ;;  %v2992_v14 = vadd.f32 %v2930_v20, %v6717_v13  ;;  %v7896_v2 = vld [vmem:[#allocation77_spill] sm:$0xff] }
 0x3d5   : > { %v7201_v29 = vpop.eup %4386  ;;  %4406 = vrcp.f32 %v3340_v57  ;;  %v2557_v63 = vadd.f32 %v7099_v27, %v7893_v18  ;;  %v2931_v28 = vadd.f32 %v6662_v61, %v2551_v9  ;;  %v2933_v51 = vadd.f32 %v6630_v1, %v2555_v11  ;;  %v7897_v57 = vld [vmem:[#allocation78_spill] sm:$0xff]  ;;  %v7899_v31 = vld [vmem:[#allocation137_spill] sm:$0xff] }
 0x3d6   : > { %v4389_v32 = vpop.eup %4388  ;;  %4408 = vtanh.f32 %v3466_v50  ;;  %v2561_v62 = vadd.f32 %v7105_v10, %v7894_v22  ;;  %v3788_v6 = vmul.f32 -1.442695, %v2992_v14  ;;  %v3530_v27 = vsub.f32 1.0, %v7201_v29  ;;  %v7225_v14 = vpop.f32.mrf.mxu0  ;;  %v7901_v22 = vld [vmem:[#allocation139_spill] sm:$0xff] }
 0x3d7   : > { %v4391_v41 = vpop.eup %4390  ;;  %v3592_v53 = vmul.f32 %v4389_v32, %v7137_v39  ;;  %4410 = vpow2.f32 %v3787_v59  ;;  %v2934_v13 = vadd.f32 %v6662_v61, %v2557_v63  ;;  %v3216_v8 = vadd.f32 %v2931_v28, %v7895_v0  ;;  %v2803_v63 = vpop.f32.mrf.mxu1  ;;  %v7900_v32 = vld [vmem:[#allocation79_spill] sm:$0xff] }
 0x3d8   : > { %v3117_v37 = vadd.f32 1.0, %v4391_v41  ;;  %4412 = vpow2.f32 %v3819_v34  ;;  %v2993_v10 = vadd.f32 %v2933_v51, %v7896_v2  ;;  %v2936_v50 = vadd.f32 %v6630_v1, %v2561_v62  ;;  %v7902_v41 = vld [vmem:[#allocation39_spill] sm:$0xff] }
 0x3d9   : > { %v3624_v17 = vadd.f32 %v3592_v53, %v3560_v7  ;;  %4414 = vpow2.f32 %v3788_v6  ;;  %v3217_v20 = vadd.f32 %v2934_v13, %v7897_v57  ;;  %v4393_v39 = vpop.eup %4392  ;;  %v3820_v59 = vmul.f32 -1.442695, %v3216_v8  ;;  %v7903_v13 = vld [vmem:[#allocation140_spill] sm:$0xff]  ;;  %v7905_v57 = vld [vmem:[#allocation151_spill] sm:$0xff] }
 0x3da   : > { %4416 = vrcp.f32 %v3117_v37  ;;  %v2563_v9 = vadd.f32 %v7114_v5, %v7898_v55  ;;  %v3341_v33 = vadd.f32 1.0, %v4393_v39  ;;  %v3789_v11 = vmul.f32 -1.442695, %v2993_v10  ;;  %v7906_v39 = vld [vmem:[#allocation81_spill] sm:$0xff] }
 0x3db   : > { %3656 = vst [vmem:[%s7014_s23 + $0x48] sm:$0xff] %v3624_v17  ;;  %v3821_v34 = vmul.f32 -1.442695, %v3217_v20  ;;  %v2567_v7 = vadd.f32 %v7123_v47, %v7899_v31  ;;  %4418 = vpow2.f32 %v3820_v59  ;;  %v2994_v28 = vadd.f32 %v2936_v50, %v7900_v32  ;;  %v7904_v17 = vld [vmem:[#allocation80_spill] sm:$0xff]  ;;  %v7242_v50 = vpop.f32.mrf.mxu0 }
 0x3dc   : > { %v4395_v18 = vpop.eup %4394  ;;  %v2937_v51 = vadd.f32 %v6662_v61, %v2563_v9  ;;  %v2569_v62 = vadd.f32 %v7133_v56, %v7901_v22  ;;  %4420 = vrcp.f32 %v3341_v33  ;;  %v2573_v47 = vadd.f32 %v7146_v42, %v7903_v13 }
 0x3dd   : > { %v4397_v5 = vpop.eup %4396  ;;  %v3435_v53 = vmul.f32 %v4395_v18, %v7902_v41  ;;  %v2939_v6 = vadd.f32 %v6630_v1, %v2567_v7  ;;  %4422 = vpow2.f32 %v3789_v11  ;;  %v3790_v8 = vmul.f32 -1.442695, %v2994_v28  ;;  %v7907_v11 = vld [vmem:[#allocation19_spill] sm:$0xff]  ;;  %v7908_v7 = vld [vmem:[#allocation37_spill] sm:$0xff]  ;;  %v7255_v41 = vpop.f32.mrf.mxu0 }
 0x3de   : > { %v7235_v37 = vpop.eup %4398  ;;  %v3593_v0 = vmul.f32 %v4397_v5, %v7175_v36  ;;  %v3218_v2 = vadd.f32 %v2937_v51, %v7904_v17  ;;  %v2804_v56 = vadd.f32 %v2803_v63, %v7905_v57  ;;  %4424 = vpow2.f32 %v3821_v34 }
 0x3df   : > { %v4401_v10 = vpop.eup %4400  ;;  %v3467_v20 = vadd.f32 %v3435_v53, %v7027_v44  ;;  %v2995_v59 = vadd.f32 %v2939_v6, %v7906_v39  ;;  %4426 = vpow2.f32 %v3790_v8  ;;  %v3562_v31 = vmul.f32 %v3530_v27, %v7907_v11  ;;  %v7909_v27 = vld [vmem:[#allocation142_spill] sm:$0xff] }
 0x3e0   : > { %v4403_v42 = vpop.eup %4402  ;;  %v3625_v55 = vadd.f32 %v3593_v0, %v3561_v23  ;;  %v3118_v9 = vadd.f32 1.0, %v4401_v10  ;;  %v3822_v36 = vmul.f32 -1.442695, %v3218_v2  ;;  %v2940_v34 = vadd.f32 %v6662_v61, %v2569_v62  ;;  %v7910_v62 = vld [vmem:[#allocation82_spill] sm:$0xff] }
 0x3e1   : > { %v4405_v33 = vpop.eup %4404  ;;  %4428 = vtanh.f32 %v3467_v20  ;;  %v3436_v18 = vmul.f32 %v4403_v42, %v7908_v7  ;;  %v3791_v63 = vmul.f32 -1.442695, %v2995_v59  ;;  %v2942_v28 = vadd.f32 %v6630_v1, %v2573_v47  ;;  %v7911_v20 = vld [vmem:[#allocation20_spill] sm:$0xff]  ;;  %v7265_v42 = vpop.f32.mrf.mxu0  ;;  %v7915_v7 = vld [vmem:[#allocation83_spill] sm:$0xff] }
 0x3e2   : > { %v7246_v32 = vpop.eup %4406  ;;  %3657 = vst [vmem:[%s7014_s23 + $0x50] sm:$0xff] %v3625_v55  ;;  %4430 = vrcp.f32 %v3118_v9  ;;  %v3342_v44 = vadd.f32 1.0, %v4405_v33  ;;  %v3531_v51 = vsub.f32 1.0, %v7235_v37  ;;  %v2575_v5 = vadd.f32 %v7158_v15, %v7909_v27  ;;  %v7913_v9 = vld [vmem:[#allocation144_spill] sm:$0xff]  ;;  %v7914_v33 = vld [vmem:[#allocation145_spill] sm:$0xff] }
 0x3e3   : > { %v4409_v23 = vpop.eup %4408  ;;  %v3468_v22 = vadd.f32 %v3436_v18, %v7018_v26  ;;  %4432 = vpow2.f32 %v3822_v36  ;;  %v3219_v13 = vadd.f32 %v2940_v34, %v6750_v48  ;;  %v2996_v0 = vadd.f32 %v2942_v28, %v7910_v62  ;;  %v7917_v34 = vld [vmem:[#allocation149_spill] sm:$0xff] }
 0x3e4   : > { %v4411_v53 = vpop.eup %4410  ;;  %v3594_v6 = vmul.f32 %v4409_v23, %v7201_v29  ;;  %4434 = vrcp.f32 %v3342_v44  ;;  %v7261_v8 = vadd.f32 %v6873_v4, %v2804_v56  ;;  %v2943_v17 = vadd.f32 %v6662_v61, %v2575_v5  ;;  %v7912_v56 = vld [vmem:[#allocation38_spill] sm:$0xff] }
 0x3e5   : > { %v4413_v47 = vpop.eup %4412  ;;  %4436 = vtanh.f32 %v3468_v22  ;;  %v3119_v26 = vadd.f32 1.0, %v4411_v53  ;;  %v3823_v57 = vmul.f32 -1.442695, %v3219_v13  ;;  %v3563_v39 = vmul.f32 %v3531_v51, %v7911_v20 }
 0x3e6   : > { %v4415_v15 = vpop.eup %4414  ;;  %v3626_v2 = vadd.f32 %v3594_v6, %v3562_v31  ;;  %v3343_v10 = vadd.f32 1.0, %v4413_v47  ;;  %4438 = vpow2.f32 %v3791_v63  ;;  %v3792_v59 = vmul.f32 -1.442695, %v2996_v0  ;;  %v7916_v63 = vld [vmem:[#allocation147_spill] sm:$0xff] }
 0x3e7   : > { %v4417_v29 = vpop.eup %4416  ;;  %4440 = vrcp.f32 %v3119_v26  ;;  %v3120_v48 = vadd.f32 1.0, %v4415_v15  ;;  %v2579_v36 = vadd.f32 %v7168_v58, %v7913_v9  ;;  %v2581_v11 = vadd.f32 %v7185_v19, %v7914_v33  ;;  %v7919_v9 = vld [vmem:[#allocation41_spill] sm:$0xff] }
 0x3e8   : > { %3658 = vst [vmem:[%s7014_s23 + $0x58] sm:$0xff] %v3626_v2  ;;  %v3437_v55 = vmul.f32 %v4417_v29, %v7912_v56  ;;  %4442 = vrcp.f32 %v3343_v10  ;;  %v4419_v31 = vpop.eup %4418  ;;  %v3220_v18 = vadd.f32 %v2943_v17, %v7915_v7  ;;  %v2585_v44 = vadd.f32 %v7193_v54, %v7916_v63  ;;  %v7285_v54 = vpop.f32.mrf.mxu0 }
 0x3e9   : > { %4444 = vrcp.f32 %v3120_v48  ;;  %v2587_v28 = vadd.f32 %v7213_v3, %v7917_v34  ;;  %v7278_v23 = vpop.eup %4420  ;;  %v3344_v22 = vadd.f32 1.0, %v4419_v31  ;;  %v2945_v58 = vadd.f32 %v6630_v1, %v2579_v36  ;;  %v4212_v29 = vpop.f32.mrf.mxu1  ;;  %v7918_v48 = vld [vmem:[#allocation21_spill] sm:$0xff]  ;;  %v7920_v36 = vld [vmem:[#allocation84_spill] sm:$0xff] }
 0x3ea   : > { %v3469_v51 = vadd.f32 %v3437_v55, %v7076_v21  ;;  %4446 = vpow2.f32 %v3823_v57  ;;  %v4423_v27 = vpop.eup %4422  ;;  %v3532_v19 = vsub.f32 1.0, %v7246_v32  ;;  %v2946_v5 = vadd.f32 %v6662_v61, %v2581_v11  ;;  %v7294_v56 = vpop.f32.mrf.mxu0  ;;  %v7921_v11 = vld [vmem:[#allocation150_spill] sm:$0xff] }
 0x3eb   : > { %4448 = vpow2.f32 %v3792_v59  ;;  %v2948_v53 = vadd.f32 %v6630_v1, %v2585_v44  ;;  %v4425_v6 = vpop.eup %4424  ;;  %v3121_v3 = vadd.f32 1.0, %v4423_v27  ;;  %v2997_v13 = vadd.f32 %v2945_v58, %v6764_v16 }
 0x3ec   : > { %4450 = vtanh.f32 %v3469_v51  ;;  %v2949_v21 = vadd.f32 %v6662_v61, %v2587_v28  ;;  %v4427_v62 = vpop.eup %4426  ;;  %v3345_v0 = vadd.f32 1.0, %v4425_v6  ;;  %v3824_v47 = vmul.f32 -1.442695, %v3220_v18 }
 0x3ed   : > { %4452 = vrcp.f32 %v3344_v22  ;;  %v3221_v26 = vadd.f32 %v2946_v5, %v6773_v60  ;;  %v3122_v15 = vadd.f32 1.0, %v4427_v62  ;;  %v3793_v2 = vmul.f32 -1.442695, %v2997_v13  ;;  %v2813_v22 = vpop.f32.mrf.mxu1  ;;  %v7310_v5 = vpop.f32.mrf.mxu0 }
 0x3ee   : > { %v4429_v17 = vpop.eup %4428  ;;  %4454 = vrcp.f32 %v3121_v3  ;;  %v2998_v10 = vadd.f32 %v2948_v53, %v6777_v24  ;;  %v3564_v16 = vmul.f32 %v3532_v19, %v7918_v48  ;;  %v3533_v59 = vsub.f32 1.0, %v7278_v23  ;;  %v7924_v3 = vld [vmem:[#allocation85_spill] sm:$0xff] }
 0x3ef   : > { %v4431_v57 = vpop.eup %4430  ;;  %v3595_v20 = vmul.f32 %v4429_v17, %v7235_v37  ;;  %4456 = vrcp.f32 %v3345_v0  ;;  %v3222_v33 = vadd.f32 %v2949_v21, %v7920_v36  ;;  %v2591_v24 = vadd.f32 %v7225_v14, %v7921_v11  ;;  %v7922_v14 = vld [vmem:[#allocation152_spill] sm:$0xff]  ;;  %v7930_v36 = vld [vmem:[#allocation22_spill] sm:$0xff]  ;;  %v7931_v11 = vld [vmem:[#allocation87_spill] sm:$0xff] }
 0x3f0   : > { %v4433_v55 = vpop.eup %4432  ;;  %v3438_v60 = vmul.f32 %v4431_v57, %v7919_v9  ;;  %4458 = vrcp.f32 %v3122_v15  ;;  %v3825_v18 = vmul.f32 -1.442695, %v3221_v26  ;;  %v3794_v34 = vmul.f32 -1.442695, %v2998_v10  ;;  %v7926_v26 = vld [vmem:[#allocation153_spill] sm:$0xff]  ;;  %v7927_v17 = vld [vmem:[#allocation156_spill] sm:$0xff]  ;;  %v2610_v9 = vpop.f32.mrf.mxu0 }
 0x3f1   : > { %v7300_v31 = vpop.eup %4434  ;;  %v3627_v37 = vadd.f32 %v3595_v20, %v3563_v39  ;;  %v3346_v7 = vadd.f32 1.0, %v4433_v55  ;;  %4460 = vpow2.f32 %v3824_v47  ;;  %v2951_v28 = vadd.f32 %v6630_v1, %v2591_v24  ;;  %v7923_v39 = vld [vmem:[#allocation154_spill] sm:$0xff]  ;;  %v7928_v20 = vld [vmem:[#allocation45_spill] sm:$0xff] }
 0x3f2   : > { %v4437_v63 = vpop.eup %4436  ;;  %v3470_v44 = vadd.f32 %v3438_v60, %v7041_v35  ;;  %4462 = vpow2.f32 %v3793_v2  ;;  %v2593_v27 = vadd.f32 %v7242_v50, %v7922_v14  ;;  %v2597_v19 = vadd.f32 %v7255_v41, %v7923_v39  ;;  %v7933_v14 = vld [vmem:[#allocation157_spill] sm:$0xff] }
 0x3f3   : > { %v4439_v51 = vpop.eup %4438  ;;  %3659 = vst [vmem:[%s7014_s23 + $0x60] sm:$0xff] %v3627_v37  ;;  %v3596_v58 = vmul.f32 %v4437_v63, %v7246_v32  ;;  %4464 = vrcp.f32 %v3346_v7  ;;  %v3826_v6 = vmul.f32 -1.442695, %v3222_v33  ;;  %v2999_v13 = vadd.f32 %v2951_v28, %v7924_v3  ;;  %v7925_v32 = vld [vmem:[#allocation42_spill] sm:$0xff]  ;;  %v7932_v28 = vld [vmem:[#allocation155_spill] sm:$0xff] }
 0x3f4   : > { %v4441_v53 = vpop.eup %4440  ;;  %4466 = vtanh.f32 %v3470_v44  ;;  %v3123_v35 = vadd.f32 1.0, %v4439_v51  ;;  %v2952_v50 = vadd.f32 %v6662_v61, %v2593_v27  ;;  %v7318_v41 = vadd.f32 %v4212_v29, %v7926_v26  ;;  %v7339_v27 = vpop.f32.mrf.mxu0 }
 0x3f5   : > { %v7313_v21 = vpop.eup %4442  ;;  %v3628_v62 = vadd.f32 %v3596_v58, %v3564_v16  ;;  %v3439_v0 = vmul.f32 %v4441_v53, %v7925_v32  ;;  %4468 = vpow2.f32 %v3825_v18  ;;  %v7321_v15 = vadd.f32 %v2813_v22, %v7927_v17  ;;  %v7929_v16 = vld [vmem:[#allocation86_spill] sm:$0xff]  ;;  %v7937_v17 = vld [vmem:[#allocation23_spill] sm:$0xff] }
 0x3f6   : > { %v4445_v47 = vpop.eup %4444  ;;  %4470 = vrcp.f32 %v3123_v35  ;;  %v2954_v2 = vadd.f32 %v6630_v1, %v2597_v19  ;;  %v3223_v55 = vadd.f32 %v2952_v50, %v7929_v16  ;;  %v3565_v29 = vmul.f32 %v3533_v59, %v7930_v36 }
 0x3f7   : > { %v4447_v10 = vpop.eup %4446  ;;  %3660 = vst [vmem:[%s7014_s23 + $0x68] sm:$0xff] %v3628_v62  ;;  %v3471_v57 = vadd.f32 %v3439_v0, %v7119_v52  ;;  %v3440_v48 = vmul.f32 %v4445_v47, %v7928_v20  ;;  %4472 = vpow2.f32 %v3794_v34  ;;  %v3795_v63 = vmul.f32 -1.442695, %v2999_v13  ;;  %v7935_v13 = vld [vmem:[#allocation159_spill] sm:$0xff]  ;;  %v7936_v0 = vld [vmem:[#allocation49_spill] sm:$0xff]  ;;  %v2616_v20 = vpop.f32.mrf.mxu0 }
 0x3f8   : > { %v4449_v60 = vpop.eup %4448  ;;  %v3347_v33 = vadd.f32 1.0, %v4447_v10  ;;  %4474 = vpow2.f32 %v3826_v6  ;;  %v3000_v24 = vadd.f32 %v2954_v2, %v7931_v11  ;;  %v3827_v34 = vmul.f32 -1.442695, %v3223_v55 }
 0x3f9   : > { %v4451_v37 = vpop.eup %4450  ;;  %4476 = vtanh.f32 %v3471_v57  ;;  %v3472_v7 = vadd.f32 %v3440_v48, %v7092_v25  ;;  %v3124_v18 = vadd.f32 1.0, %v4449_v60  ;;  %v2599_v51 = vadd.f32 %v7265_v42, %v7932_v28  ;;  %v7938_v60 = vld [vmem:[#allocation24_spill] sm:$0xff] }
 0x3fa   : > { %v7331_v52 = vpop.eup %4452  ;;  %v3597_v44 = vmul.f32 %v4451_v37, %v7278_v23  ;;  %4478 = vrcp.f32 %v3347_v33  ;;  %v3534_v22 = vsub.f32 1.0, %v7300_v31  ;;  %v3796_v58 = vmul.f32 -1.442695, %v3000_v24  ;;  %v7934_v23 = vld [vmem:[#allocation48_spill] sm:$0xff] }
 0x3fb   : > { %v4455_v59 = vpop.eup %4454  ;;  %4480 = vtanh.f32 %v3472_v7  ;;  %v2603_v25 = vadd.f32 %v7285_v54, %v7933_v14  ;;  %v2955_v35 = vadd.f32 %v6662_v61, %v2599_v51  ;;  %v3535_v6 = vsub.f32 1.0, %v7313_v21  ;;  %v7940_v7 = vld [vmem:[#allocation162_spill] sm:$0xff]  ;;  %v7942_v28 = vld [vmem:[#allocation88_spill] sm:$0xff] }
 0x3fc   : > { %v7341_v39 = vpop.eup %4456  ;;  %v3629_v19 = vadd.f32 %v3597_v44, %v3565_v29  ;;  %v3441_v53 = vmul.f32 %v4455_v59, %v7934_v23  ;;  %4482 = vrcp.f32 %v3124_v18  ;;  %v2605_v62 = vadd.f32 %v7294_v56, %v7935_v13  ;;  %v2620_v59 = vpop.f32.mrf.mxu0  ;;  %v7943_v14 = vld [vmem:[#allocation52_spill] sm:$0xff] }
 0x3fd   : > { %v4459_v42 = vpop.eup %4458  ;;  %4484 = vpow2.f32 %v3795_v63  ;;  %v2957_v3 = vadd.f32 %v6630_v1, %v2603_v25  ;;  %v3224_v47 = vadd.f32 %v2955_v35, %v6806_v46  ;;  %v3566_v2 = vmul.f32 %v3534_v22, %v7937_v17 }
 0x3fe   : > { %v4461_v54 = vpop.eup %4460  ;;  %3661 = vst [vmem:[%s7014_s23 + $0x70] sm:$0xff] %v3629_v19  ;;  %v3473_v32 = vadd.f32 %v3441_v53, %v7151_v12  ;;  %v3442_v50 = vmul.f32 %v4459_v42, %v7936_v0  ;;  %4486 = vpow2.f32 %v3827_v34  ;;  %v3536_v10 = vsub.f32 1.0, %v7331_v52  ;;  %v2622_v0 = vpop.f32.mrf.mxu0 }
 0x3ff   : > { %v4463_v26 = vpop.eup %4462  ;;  %4488 = vpow2.f32 %v3796_v58  ;;  %v3001_v57 = vadd.f32 %v2957_v3, %v6810_v30  ;;  %v3348_v12 = vadd.f32 1.0, %v4461_v54  ;;  %v3567_v36 = vmul.f32 %v3535_v6, %v7938_v60  ;;  %v7939_v30 = vld [vmem:[#allocation160_spill] sm:$0xff] }
 0x400   : > { %v7356_v48 = vpop.eup %4464  ;;  %4490 = vtanh.f32 %v3473_v32  ;;  %v3474_v56 = vadd.f32 %v3442_v50, %v7141_v38  ;;  %v3125_v16 = vadd.f32 1.0, %v4463_v26  ;;  %v3828_v46 = vmul.f32 -1.442695, %v3224_v47  ;;  %v7941_v38 = vld [vmem:[#allocation25_spill] sm:$0xff]  ;;  %v7944_v54 = vld [vmem:[#allocation164_spill] sm:$0xff] }
 0x401   : > { %v4467_v55 = vpop.eup %4466  ;;  %v3797_v29 = vmul.f32 -1.442695, %v3001_v57  ;;  %v2958_v33 = vadd.f32 %v6662_v61, %v2605_v62  ;;  %v2609_v37 = vadd.f32 %v7310_v5, %v7939_v30  ;;  %v2611_v18 = vadd.f32 %v2610_v9, %v7940_v7  ;;  %v7945_v26 = vld [vmem:[#allocation165_spill] sm:$0xff]  ;;  %v7946_v57 = vld [vmem:[#allocation26_spill] sm:$0xff] }
 0x402   : > { %v4469_v11 = vpop.eup %4468  ;;  %v3598_v24 = vmul.f32 %v4467_v55, %v7300_v31  ;;  %4492 = vtanh.f32 %v3474_v56  ;;  %v3568_v44 = vmul.f32 %v3536_v10, %v7941_v38  ;;  %v3537_v34 = vsub.f32 1.0, %v7341_v39  ;;  %v7947_v56 = vld [vmem:[#allocation27_spill] sm:$0xff]  ;;  %v7949_v30 = vld [vmem:[#allocation89_spill] sm:$0xff] }
 0x403   : > { %v4471_v63 = vpop.eup %4470  ;;  %4494 = vrcp.f32 %v3125_v16  ;;  %v3225_v51 = vadd.f32 %v2958_v33, %v7942_v28  ;;  %v2960_v25 = vadd.f32 %v6630_v1, %v2609_v37  ;;  %v3538_v9 = vsub.f32 1.0, %v7356_v48  ;;  %v7948_v16 = vld [vmem:[#allocation53_spill] sm:$0xff]  ;;  %v7950_v38 = vld [vmem:[#allocation167_spill] sm:$0xff] }
 0x404   : > { %v4473_v22 = vpop.eup %4472  ;;  %v3630_v58 = vadd.f32 %v3598_v24, %v3566_v2  ;;  %v3443_v31 = vmul.f32 %v4471_v63, %v7943_v14  ;;  %4496 = vrcp.f32 %v3348_v12  ;;  %v2961_v23 = vadd.f32 %v6662_v61, %v2611_v18 }
 0x405   : > { %v4475_v5 = vpop.eup %4474  ;;  %v3126_v19 = vadd.f32 1.0, %v4473_v22  ;;  %4498 = vpow2.f32 %v3828_v46  ;;  %v3829_v42 = vmul.f32 -1.442695, %v3225_v51  ;;  %v3002_v6 = vadd.f32 %v2960_v25, %v6821_v45  ;;  %v7951_v51 = vld [vmem:[#allocation170_spill] sm:$0xff] }
 0x406   : > { %v4477_v53 = vpop.eup %4476  ;;  %3662 = vst [vmem:[%s7014_s23 + $0x78] sm:$0xff] %v3630_v58  ;;  %v3475_v35 = vadd.f32 %v3443_v31, %v7261_v8  ;;  %4500 = vpow2.f32 %v3797_v29  ;;  %v3226_v62 = vadd.f32 %v2961_v23, %v6825_v40  ;;  %v2615_v32 = vadd.f32 %v7339_v27, %v7944_v54  ;;  %v7952_v31 = vld [vmem:[#allocation90_spill] sm:$0xff] }
 0x407   : > { %v7375_v3 = vpop.eup %4478  ;;  %v3599_v13 = vmul.f32 %v4477_v53, %v7313_v21  ;;  %4502 = vrcp.f32 %v3126_v19  ;;  %v3349_v47 = vadd.f32 1.0, %v4469_v11  ;;  %v3798_v8 = vmul.f32 -1.442695, %v3002_v6 }
 0x408   : > { %v4481_v50 = vpop.eup %4480  ;;  %4504 = vtanh.f32 %v3475_v35  ;;  %v2617_v17 = vadd.f32 %v2616_v20, %v7945_v26  ;;  %v3569_v21 = vmul.f32 %v3537_v34, %v7946_v57  ;;  %v3570_v12 = vmul.f32 %v3538_v9, %v7947_v56 }
 0x409   : > { %v4483_v2 = vpop.eup %4482  ;;  %v3631_v45 = vadd.f32 %v3599_v13, %v3567_v36  ;;  %v3600_v10 = vmul.f32 %v4481_v50, %v7331_v52  ;;  %4506 = vpow2.f32 %v3829_v42  ;;  %v3830_v27 = vmul.f32 -1.442695, %v3226_v62  ;;  %v2626_v52 = vpop.f32.mrf.mxu0  ;;  %v7953_v42 = vld [vmem:[#allocation56_spill] sm:$0xff]  ;;  %v7954_v13 = vld [vmem:[#allocation91_spill] sm:$0xff] }
 0x40a   : > { %v4485_v40 = vpop.eup %4484  ;;  %v3444_v55 = vmul.f32 %v4483_v2, %v7948_v16  ;;  %v2963_v60 = vadd.f32 %v6630_v1, %v2615_v32  ;;  %4508 = vpow2.f32 %v3798_v8  ;;  %v2964_v36 = vadd.f32 %v6662_v61, %v2617_v17  ;;  %v7956_v8 = vld [vmem:[#allocation28_spill] sm:$0xff]  ;;  %v7957_v2 = vld [vmem:[#allocation173_spill] sm:$0xff] }
 0x40b   : > { %v4487_v46 = vpop.eup %4486  ;;  %3663 = vst [vmem:[%s7014_s23 + $0x80] sm:$0xff] %v3631_v45  ;;  %v3632_v29 = vadd.f32 %v3600_v10, %v3568_v44  ;;  %v3127_v20 = vadd.f32 1.0, %v4485_v40  ;;  %4510 = vrcp.f32 %v3349_v47  ;;  %v3350_v24 = vadd.f32 1.0, %v4475_v5  ;;  %v2628_v9 = vpop.f32.mrf.mxu0 }
 0x40c   : > { %v4489_v33 = vpop.eup %4488  ;;  %v3476_v11 = vadd.f32 %v3444_v55, %v7154_v49  ;;  %v3003_v37 = vadd.f32 %v2963_v60, %v7949_v30  ;;  %v3539_v18 = vsub.f32 1.0, %v7375_v3  ;;  %v2621_v44 = vadd.f32 %v2620_v59, %v7950_v38  ;;  %v4215_v49 = vpop.f32.mrf.mxu1 }
 0x40d   : > { %v4491_v7 = vpop.eup %4490  ;;  %3664 = vst [vmem:[%s7014_s23 + $0x88] sm:$0xff] %v3632_v29  ;;  %4512 = vrcp.f32 %v3127_v20  ;;  %v3128_v63 = vadd.f32 1.0, %v4489_v33  ;;  %v2623_v22 = vadd.f32 %v2622_v0, %v7951_v51  ;;  %v3351_v14 = vadd.f32 1.0, %v4487_v46  ;;  %v7955_v0 = vld [vmem:[#allocation158_spill] sm:$0xff]  ;;  %v2632_v10 = vpop.f32.mrf.mxu0  ;;  %v7960_v46 = vld [vmem:[#allocation179_spill] sm:$0xff] }
 0x40e   : > { %v3601_v34 = vmul.f32 %v4491_v7, %v7341_v39  ;;  %4514 = vtanh.f32 %v3476_v11  ;;  %v3799_v28 = vmul.f32 -1.442695, %v3003_v37  ;;  %v3227_v25 = vadd.f32 %v2964_v36, %v7952_v31 }
 0x40f   : > { %v4493_v58 = vpop.eup %4492  ;;  %4516 = vpow2.f32 %v3830_v27  ;;  %v2966_v5 = vadd.f32 %v6630_v1, %v2621_v44  ;;  %v2967_v39 = vadd.f32 %v6662_v61, %v2623_v22  ;;  %v2947_v35 = vadd.f32 %v6873_v4, %v7321_v15 }
 0x410   : > { %v4495_v19 = vpop.eup %4494  ;;  %v3633_v23 = vadd.f32 %v3601_v34, %v3569_v21  ;;  %v3602_v59 = vmul.f32 %v4493_v58, %v7356_v48  ;;  %4518 = vrcp.f32 %v3128_v63  ;;  %v2950_v32 = vadd.f32 %v6873_v4, %v7318_v41  ;;  %v2823_v21 = vpop.f32.mrf.mxu1  ;;  %v7958_v41 = vld [vmem:[#allocation92_spill] sm:$0xff] }
 0x411   : > { %v7400_v53 = vpop.eup %4496  ;;  %v3445_v6 = vmul.f32 %v4495_v19, %v7953_v42  ;;  %4520 = vpow2.f32 %v3799_v28  ;;  %v3004_v62 = vadd.f32 %v2966_v5, %v7954_v13  ;;  %v2829_v48 = vadd.f32 %v4215_v49, %v7955_v0  ;;  %v2634_v34 = vpop.f32.mrf.mxu0  ;;  %v7966_v13 = vld [vmem:[#allocation94_spill] sm:$0xff]  ;;  %v7967_v0 = vld [vmem:[#allocation93_spill] sm:$0xff] }
 0x412   : > { %v4499_v54 = vpop.eup %4498  ;;  %3665 = vst [vmem:[%s7014_s23 + $0x90] sm:$0xff] %v3633_v23  ;;  %v3634_v50 = vadd.f32 %v3602_v59, %v3570_v12  ;;  %4522 = vrcp.f32 %v3350_v24  ;;  %v3571_v26 = vmul.f32 %v3539_v18, %v7956_v8  ;;  %v2627_v45 = vadd.f32 %v2626_v52, %v7957_v2  ;;  %v7959_v12 = vld [vmem:[#allocation57_spill] sm:$0xff]  ;;  %v4218_v28 = vpop.f32.mrf.mxu1  ;;  %v7964_v23 = vld [vmem:[#allocation44_spill] sm:$0xff] }
 0x413   : > { %v4501_v47 = vpop.eup %4500  ;;  %v3477_v17 = vadd.f32 %v3445_v6, %v2947_v35  ;;  %v3800_v15 = vmul.f32 -1.442695, %v3004_v62  ;;  %4524 = vrcp.f32 %v3351_v14  ;;  %v3831_v40 = vmul.f32 -1.442695, %v3227_v25  ;;  %v7961_v52 = vld [vmem:[#allocation33_spill] sm:$0xff] }
 0x414   : > { %v4503_v57 = vpop.eup %4502  ;;  %3666 = vst [vmem:[%s7014_s23 + $0x98] sm:$0xff] %v3634_v50  ;;  %v3129_v56 = vadd.f32 1.0, %v4501_v47  ;;  %v3228_v16 = vadd.f32 %v2967_v39, %v7958_v41  ;;  %v2969_v60 = vadd.f32 %v6630_v1, %v2627_v45  ;;  %v2629_v29 = vadd.f32 %v2628_v9, %v7960_v46  ;;  %v7962_v24 = vld [vmem:[#allocation161_spill] sm:$0xff]  ;;  %v7963_v9 = vld [vmem:[#allocation60_spill] sm:$0xff] }
 0x415   : > { %v4505_v55 = vpop.eup %4504  ;;  %4526 = vtanh.f32 %v3477_v17  ;;  %v3446_v27 = vmul.f32 %v4503_v57, %v7959_v12  ;;  %v3352_v36 = vadd.f32 1.0, %v4499_v54  ;;  %v2633_v33 = vadd.f32 %v2632_v10, %v7961_v52  ;;  %v7965_v35 = vld [vmem:[#allocation29_spill] sm:$0xff]  ;;  %v7969_v10 = vld [vmem:[#allocation95_spill] sm:$0xff] }
 0x416   : > { %v3603_v20 = vmul.f32 %v4505_v55, %v7375_v3  ;;  %4528 = vrcp.f32 %v3129_v56  ;;  %v4507_v11 = vpop.eup %4506  ;;  %v2824_v30 = vadd.f32 %v2823_v21, %v7962_v24  ;;  %v3005_v7 = vadd.f32 %v2969_v60, %v6852_v43  ;;  %v7970_v21 = vld [vmem:[#allocation166_spill] sm:$0xff]  ;;  %v7971_v12 = vld [vmem:[#allocation35_spill] sm:$0xff] }
 0x417   : > { %v3478_v37 = vadd.f32 %v3446_v27, %v2950_v32  ;;  %4530 = vpow2.f32 %v3800_v15  ;;  %v4509_v18 = vpop.eup %4508  ;;  %v3540_v38 = vsub.f32 1.0, %v7400_v53  ;;  %v3832_v44 = vmul.f32 -1.442695, %v3228_v16  ;;  %v2833_v32 = vpop.f32.mrf.mxu1  ;;  %v7972_v27 = vld [vmem:[#allocation67_spill] sm:$0xff] }
 0x418   : > { %v3635_v63 = vadd.f32 %v3603_v20, %v3571_v26  ;;  %4532 = vpow2.f32 %v3831_v40  ;;  %v4511_v3 = vpop.eup %4510  ;;  %v3130_v51 = vadd.f32 1.0, %v4509_v18  ;;  %v3801_v22 = vmul.f32 -1.442695, %v3005_v7  ;;  %v7968_v26 = vld [vmem:[#allocation61_spill] sm:$0xff]  ;;  %v7973_v20 = vld [vmem:[#allocation30_spill] sm:$0xff]  ;;  %v7974_v18 = vld [vmem:[#allocation163_spill] sm:$0xff] }
 0x419   : > { %4534 = vtanh.f32 %v3478_v37  ;;  %v2970_v58 = vadd.f32 %v6662_v61, %v2629_v29  ;;  %v2956_v14 = vadd.f32 %v6873_v4, %v2829_v48  ;;  %v3353_v43 = vadd.f32 1.0, %v4507_v11 }
 0x41a   : > { %v4513_v49 = vpop.eup %4512  ;;  %3667 = vst [vmem:[%s7014_s23 + $0xa0] sm:$0xff] %v3635_v63  ;;  %4536 = vrcp.f32 %v3352_v36  ;;  %v2972_v31 = vadd.f32 %v6630_v1, %v2633_v33  ;;  %v2953_v5 = vadd.f32 %v6873_v4, %v2824_v30  ;;  %v2635_v59 = vadd.f32 %v2634_v34, %v7964_v23  ;;  %v4221_v30 = vpop.f32.mrf.mxu1 }
 0x41b   : > { %v4515_v25 = vpop.eup %4514  ;;  %v3447_v19 = vmul.f32 %v4513_v49, %v7963_v9  ;;  %4538 = vrcp.f32 %v3130_v51  ;;  %v3572_v42 = vmul.f32 %v3540_v38, %v7965_v35  ;;  %v3229_v48 = vadd.f32 %v2970_v58, %v7967_v0  ;;  %v7977_v35 = vld [vmem:[#allocation178_spill] sm:$0xff] }
 0x41c   : > { %v4517_v39 = vpop.eup %4516  ;;  %v3604_v6 = vmul.f32 %v4515_v25, %v7400_v53  ;;  %4540 = vpow2.f32 %v3832_v44  ;;  %v3006_v62 = vadd.f32 %v2972_v31, %v7966_v13  ;;  %v2973_v50 = vadd.f32 %v6662_v61, %v2635_v59 }
 0x41d   : > { %v4519_v54 = vpop.eup %4518  ;;  %v3479_v1 = vadd.f32 %v3447_v19, %v2953_v5  ;;  %4542 = vpow2.f32 %v3801_v22  ;;  %v3541_v53 = vsub.f32 1.0, %v4511_v3  ;;  %v2834_v56 = vadd.f32 %v2833_v32, %v7970_v21  ;;  %v7976_v19 = vld [vmem:[#allocation65_spill] sm:$0xff] }
 0x41e   : > { %v4521_v47 = vpop.eup %4520  ;;  %v3636_v8 = vadd.f32 %v3604_v6, %v3572_v42  ;;  %v3448_v17 = vmul.f32 %v4519_v54, %v7968_v26  ;;  %4544 = vrcp.f32 %v3353_v43  ;;  %v3802_v15 = vmul.f32 -1.442695, %v3006_v62  ;;  %v2843_v43 = vpop.f32.mrf.mxu1 }
 0x41f   : > { %v4523_v2 = vpop.eup %4522  ;;  %4546 = vtanh.f32 %v3479_v1  ;;  %v3131_v45 = vadd.f32 1.0, %v4521_v47  ;;  %v3230_v57 = vadd.f32 %v2973_v50, %v7969_v10  ;;  %v3354_v41 = vadd.f32 1.0, %v4517_v39  ;;  %v7978_v1 = vld [vmem:[#allocation71_spill] sm:$0xff] }
 0x420   : > { %3668 = vst [vmem:[%s7014_s23 + $0xa8] sm:$0xff] %v3636_v8  ;;  %v3480_v40 = vadd.f32 %v3448_v17, %v2956_v14  ;;  %4548 = vpow2.f32 %v3802_v15  ;;  %v4525_v16 = vpop.eup %4524  ;;  %v3833_v61 = vmul.f32 -1.442695, %v3229_v48  ;;  %v1196_v60 = vadd.f32 %v7972_v27, %v7971_v12  ;;  %v7979_v48 = vld [vmem:[#allocation2_spill] sm:$0xff]  ;;  %v7980_v10 = vld [vmem:[#allocation3_spill] sm:$0xff] }
 0x421   : > { %4550 = vrcp.f32 %v3131_v45  ;;  %v3834_v46 = vmul.f32 -1.442695, %v3230_v57  ;;  %v3573_v36 = vmul.f32 %v3541_v53, %v7973_v20  ;;  %v3542_v33 = vsub.f32 1.0, %v4523_v2 }
 0x422   : > { %v4527_v55 = vpop.eup %4526  ;;  %4552 = vtanh.f32 %v3480_v40  ;;  %v2959_v24 = vadd.f32 %v6873_v4, %v2834_v56  ;;  %v2839_v63 = vadd.f32 %v4218_v28, %v7974_v18  ;;  %v3543_v9 = vsub.f32 1.0, %v4525_v16  ;;  %v7981_v40 = vld [vmem:[#allocation169_spill] sm:$0xff] }
 0x423   : > { %v4529_v29 = vpop.eup %4528  ;;  %v3605_v52 = vmul.f32 %v4527_v55, %v4511_v3  ;;  %4554 = vrcp.f32 %v3354_v41  ;;  %v7975_v3 = vld [vmem:[#allocation31_spill] sm:$0xff]  ;;  %v2844_v42 = vadd.f32 %v2843_v43, %v7977_v35  ;;  %v1206_v0 = vadd.f32 %v7978_v1, %v7971_v12 }
 0x424   : > { %v4531_v11 = vpop.eup %4530  ;;  %v3449_v37 = vmul.f32 %v4529_v29, %v1196_v60  ;;  %4556 = vpow2.f32 %v3833_v61  ;;  %v3574_v58 = vmul.f32 %v3542_v33, %v7975_v3  ;;  %v2962_v28 = vadd.f32 %v6873_v4, %v2839_v63  ;;  %v7982_v33 = vld [vmem:[#allocation69_spill] sm:$0xff] }
 0x425   : > { %v4533_v7 = vpop.eup %4532  ;;  %v3637_v38 = vadd.f32 %v3605_v52, %v3573_v36  ;;  %v3132_v44 = vadd.f32 1.0, %v4531_v11  ;;  %4558 = vpow2.f32 %v3834_v46  ;;  %v3575_v50 = vmul.f32 %v3543_v9, %v7979_v48 }
 0x426   : > { %v4535_v34 = vpop.eup %4534  ;;  %v3481_v51 = vadd.f32 %v3449_v37, %v2959_v24  ;;  %v3355_v31 = vadd.f32 1.0, %v4533_v7  ;;  %v2849_v41 = vadd.f32 %v4221_v30, %v7981_v40  ;;  %v7983_v24 = vld [vmem:[#allocation5_spill] sm:$0xff] }
 0x427   : > { %v4537_v22 = vpop.eup %4536  ;;  %3669 = vst [vmem:[%s7014_s23 + $0xb0] sm:$0xff] %v3637_v38  ;;  %v3606_v49 = vmul.f32 %v4535_v34, %v4523_v2  ;;  %4560 = vrcp.f32 %v3132_v44  ;;  %v2965_v2 = vadd.f32 %v6873_v4, %v2844_v42  ;;  %v7984_v38 = vld [vmem:[#allocation47_spill] sm:$0xff]  ;;  %v7988_v42 = vld [vmem:[#allocation73_spill] sm:$0xff] }
 0x428   : > { %v4539_v14 = vpop.eup %4538  ;;  %4562 = vtanh.f32 %v3481_v51  ;;  %v3544_v54 = vsub.f32 1.0, %v4537_v22  ;;  %v2968_v36 = vadd.f32 %v6873_v4, %v2849_v41 }
 0x429   : > { %v4541_v25 = vpop.eup %4540  ;;  %v3638_v5 = vadd.f32 %v3606_v49, %v3574_v58  ;;  %v3450_v23 = vmul.f32 %v4539_v14, %v7976_v19  ;;  %4564 = vrcp.f32 %v3355_v31  ;;  %v7985_v58 = vld [vmem:[#allocation107_spill] sm:$0xff]  ;;  %v7986_v14 = vld [vmem:[#allocation36_spill] sm:$0xff] }
 0x42a   : > { %v4543_v59 = vpop.eup %4542  ;;  %v3356_v26 = vadd.f32 1.0, %v4541_v25  ;;  %v3576_v57 = vmul.f32 %v3544_v54, %v7980_v10  ;;  %v1216_v49 = vadd.f32 %v7985_v58, %v7971_v12  ;;  %v7987_v25 = vld [vmem:[#allocation7_spill] sm:$0xff] }
 0x42b   : > { %v4545_v39 = vpop.eup %4544  ;;  %3670 = vst [vmem:[%s7014_s23 + $0xb8] sm:$0xff] %v3638_v5  ;;  %v3482_v6 = vadd.f32 %v3450_v23, %v2962_v28  ;;  %v3133_v13 = vadd.f32 1.0, %v4543_v59 }
 0x42c   : > { %v4547_v62 = vpop.eup %4546  ;;  %v3545_v60 = vsub.f32 1.0, %v4545_v39 }
 0x42d   : > { %v4549_v32 = vpop.eup %4548  ;;  %v3607_v47 = vmul.f32 %v4547_v62, %v4525_v16  ;;  %4566 = vtanh.f32 %v3482_v6  ;;  %v4224_v16 = vpop.f32.mrf.mxu1 }
 0x42e   : > { %v4551_v8 = vpop.eup %4550  ;;  %4568 = vrcp.f32 %v3133_v13  ;;  %v3134_v17 = vadd.f32 1.0, %v4549_v32  ;;  %v3577_v30 = vmul.f32 %v3545_v60, %v7983_v24  ;;  %v2859_v43 = vadd.f32 %v4224_v16, %v7986_v14  ;;  %v7989_v32 = vld [vmem:[#allocation9_spill] sm:$0xff]  ;;  %v7992_v16 = vld [vmem:[#allocation15_spill] sm:$0xff] }
 0x42f   : > { %v4553_v15 = vpop.eup %4552  ;;  %v3639_v53 = vadd.f32 %v3607_v47, %v3575_v50  ;;  %v3451_v45 = vmul.f32 %v4551_v8, %v1206_v0  ;;  %v2853_v52 = vpop.f32.mrf.mxu1 }
 0x430   : > { %v3608_v21 = vmul.f32 %v4553_v15, %v4537_v22  ;;  %4570 = vrcp.f32 %v3134_v17  ;;  %v4555_v56 = vpop.eup %4554  ;;  %v2854_v44 = vadd.f32 %v2853_v52, %v7984_v38  ;;  %v2974_v35 = vadd.f32 %v6873_v4, %v2859_v43 }
 0x431   : > { %3671 = vst [vmem:[%s7014_s23 + $0xc0] sm:$0xff] %v3639_v53  ;;  %v3483_v61 = vadd.f32 %v3451_v45, %v2965_v2  ;;  %v4557_v55 = vpop.eup %4556  ;;  %4572 = vrcp.f32 %v3356_v26  ;;  %v3546_v18 = vsub.f32 1.0, %v4555_v56 }
 0x432   : > { %v3640_v27 = vadd.f32 %v3608_v21, %v3576_v57  ;;  %v4559_v46 = vpop.eup %4558  ;;  %v3357_v7 = vadd.f32 1.0, %v4557_v55  ;;  %v2971_v9 = vadd.f32 %v6873_v4, %v2854_v44  ;;  %v7990_v4 = vld [vmem:[#allocation11_spill] sm:$0xff]  ;;  %v7991_v57 = vld [vmem:[#allocation13_spill] sm:$0xff] }
 0x433   : > { %4574 = vtanh.f32 %v3483_v61  ;;  %v3358_v51 = vadd.f32 1.0, %v4559_v46  ;;  %v3578_v28 = vmul.f32 %v3546_v18, %v7987_v25 }
 0x434   : > { %v4561_v29 = vpop.eup %4560  ;;  %3672 = vst [vmem:[%s7014_s23 + $0xc8] sm:$0xff] %v3640_v27 }
 0x435   : > { %v4563_v20 = vpop.eup %4562  ;;  %v3452_v11 = vmul.f32 %v4561_v29, %v7982_v33 }
 0x436   : > { %v3609_v37 = vmul.f32 %v4563_v20, %v4545_v39  ;;  %v4565_v22 = vpop.eup %4564 }
 0x437   : > { %v3484_v63 = vadd.f32 %v3452_v11, %v2968_v36  ;;  %v3547_v39 = vsub.f32 1.0, %v4565_v22 }
 0x438   : > { %v3641_v34 = vadd.f32 %v3609_v37, %v3577_v30 }
 0x439   : > { %4576 = vtanh.f32 %v3484_v63  ;;  %v3579_v1 = vmul.f32 %v3547_v39, %v7989_v32 }
 0x43a   : > { %v4567_v3 = vpop.eup %4566  ;;  %3673 = vst [vmem:[%s7014_s23 + $0xd0] sm:$0xff] %v3641_v34  ;;  %4578 = vrcp.f32 %v3357_v7 }
 0x43b   : > { %v4569_v31 = vpop.eup %4568  ;;  %v3610_v5 = vmul.f32 %v4567_v3, %v4555_v56  ;;  %4580 = vrcp.f32 %v3358_v51 }
 0x43c   : > { %v3453_v19 = vmul.f32 %v4569_v31, %v1216_v49 }
 0x43d   : > { %v4571_v23 = vpop.eup %4570  ;;  %v3642_v59 = vadd.f32 %v3610_v5, %v3578_v28 }
 0x43e   : > { %v3485_v12 = vadd.f32 %v3453_v19, %v2971_v9  ;;  %v3454_v6 = vmul.f32 %v4571_v23, %v7988_v42  ;;  %v4573_v13 = vpop.eup %4572 }
 0x43f   : > { %3674 = vst [vmem:[%s7014_s23 + $0xd8] sm:$0xff] %v3642_v59  ;;  %v3548_v50 = vsub.f32 1.0, %v4573_v13 }
 0x440   : > { %v4575_v62 = vpop.eup %4574  ;;  %4582 = vtanh.f32 %v3485_v12  ;;  %v3486_v54 = vadd.f32 %v3454_v6, %v2974_v35 }
 0x441   : > { %v3611_v0 = vmul.f32 %v4575_v62, %v4565_v22  ;;  %v3580_v26 = vmul.f32 %v3548_v50, %v7990_v4 }
 0x442   : > { %4584 = vtanh.f32 %v3486_v54 }
 0x443   : > { %v3643_v48 = vadd.f32 %v3611_v0, %v3579_v1 }
 0x445   : > { %3675 = vst [vmem:[%s7014_s23 + $0xe0] sm:$0xff] %v3643_v48 }
 0x446   : > { %v4577_v47 = vpop.eup %4576 }
 0x447   : > { %v4579_v8 = vpop.eup %4578  ;;  %v3612_v17 = vmul.f32 %v4577_v47, %v4573_v13 }
 0x448   : > { %v4581_v15 = vpop.eup %4580  ;;  %v3549_v53 = vsub.f32 1.0, %v4579_v8 }
 0x449   : > { %v3644_v2 = vadd.f32 %v3612_v17, %v3580_v26  ;;  %v3550_v45 = vsub.f32 1.0, %v4581_v15 }
 0x44a   : > { %v3581_v21 = vmul.f32 %v3549_v53, %v7991_v57 }
 0x44b   : > { %3676 = vst [vmem:[%s7014_s23 + $0xe8] sm:$0xff] %v3644_v2  ;;  %v3582_v61 = vmul.f32 %v3550_v45, %v7992_v16 }
 0x44d   : > { %v4583_v10 = vpop.eup %4582 }
 0x44e   : > { %v3613_v56 = vmul.f32 %v4583_v10, %v4579_v8 }
 0x44f   : > { %v4585_v40 = vpop.eup %4584 }
 0x450   : > { %v3645_v41 = vadd.f32 %v3613_v56, %v3581_v21  ;;  %v3614_v55 = vmul.f32 %v4585_v40, %v4581_v15 }
 0x452   : > { %3677 = vst [vmem:[%s7014_s23 + $0xf0] sm:$0xff] %v3645_v41  ;;  %v3646_v27 = vadd.f32 %v3614_v55, %v3582_v61 }
 0x454   : > { %3678 = vst [vmem:[%s7014_s23 + $0xf8] sm:$0xff] %v3646_v27 }
 0x455 PF: > { %s18_s27 = sadd.s32 1, %s4595_s27  }
 0x456   : > { %p15_p4 = scmp.ge.s32.totalorder %s18_s27, 4  }
 0x458   :  { %17 = sbr.rel (!%p15_p4) target bundleno = 1 (0x1), region = 88 }

</bundles_post_ra>
